<compile_context>
chip_gen: v6e
topology: v6e:2x2x1
jax: 0.10.0
libtpu: 0.0.40
codegen_flags: <defaults>
</compile_context>

<pallas_src>
import functools

import jax
import jax.numpy as jnp
from jax import lax
from jax.experimental import pallas as pl
from jax.experimental.pallas import tpu as pltpu


# ---------------------------------------------------------------------------
# Host-side helpers (run under jit, tiny one-off XLA ops).
# ---------------------------------------------------------------------------
def _build_tap_matrix(w_avg, w_max, H, W):
    """Fold Conv2d(2, 1, 7, padding=9, dilation=3) into a dense (2*HW, HW) matrix.

    With a = mean_c(x), m = max_c(x) flattened row-major to (1, HW):
        conv_out = concat([a, m], axis=-1) @ M            # bias added separately
    """
    HW = H * W
    ih = jnp.arange(H)
    iw = jnp.arange(W)
    dH = ih[:, None] - ih[None, :]              # src_i - dst_i   (H_src, H_dst)
    dW = iw[:, None] - iw[None, :]              # src_j - dst_j   (W_src, W_dst)
    # out[dst] += w[a, b] * in[dst - 9 + 3a]  =>  a = (src - dst + 9) / 3
    a_idx = (dH + 9) // 3
    a_ok = ((dH + 9) % 3 == 0) & (a_idx >= 0) & (a_idx < 7)
    b_idx = (dW + 9) // 3
    b_ok = ((dW + 9) % 3 == 0) & (b_idx >= 0) & (b_idx < 7)
    a4 = jnp.clip(a_idx, 0, 6)[:, None, :, None]        # (H_src, 1, H_dst, 1)
    b4 = jnp.clip(b_idx, 0, 6)[None, :, None, :]        # (1, W_src, 1, W_dst)
    ok4 = a_ok[:, None, :, None] & b_ok[None, :, None, :]
    Ma = jnp.where(ok4, w_avg[a4, b4], 0.0).reshape(HW, HW)
    Mm = jnp.where(ok4, w_max[a4, b4], 0.0).reshape(HW, HW)
    return jnp.concatenate([Ma, Mm], axis=0).astype(jnp.float32)   # (2*HW, HW)


# ---------------------------------------------------------------------------
# The fused bridge kernel: one grid step == one sample, all four stages.
# ---------------------------------------------------------------------------
def _bridge_kernel(*refs, n_stage):
    # refs layout: [sp_bias(SMEM)] + t[ns] + tapM[ns] + W_eff[ns] + [bias_col] + out[ns]
    spb_ref = refs[0]
    t_refs = refs[1:1 + n_stage]
    m_refs = refs[1 + n_stage:1 + 2 * n_stage]
    w_refs = refs[1 + 2 * n_stage:1 + 3 * n_stage]
    bcol_ref = refs[1 + 3 * n_stage]
    o_refs = refs[2 + 3 * n_stage:]

    spb = spb_ref[0]
    z = bcol_ref[...]                                   # (Ctot, 1) running FC accumulator

    # ---- pass 1: spatial attention + pooled channel statistics per stage ----
    for t_ref, m_ref, w_ref, o_ref in zip(t_refs, m_refs, w_refs, o_refs):
        x = t_ref[0]                                    # (Ci, HWi)  lane-dense
        hw = x.shape[1]
        avg = jnp.mean(x, axis=0, keepdims=True)        # (1, HW)  sublane reduce
        mx = jnp.max(x, axis=0, keepdims=True)          # (1, HW)
        am = jnp.concatenate([avg, mx], axis=1)         # (1, 2*HW)
        am8 = jnp.broadcast_to(am, (8, 2 * hw))         # sublane-align the MXU op (free)
        conv = jnp.dot(am8, m_ref[...],
                       preferred_element_type=jnp.float32)[0:1] + spb   # (1, HW)
        satt = pl.reciprocal(1.0 + jnp.exp(-conv), approx=True)         # sigmoid on EUP
        t2 = x * (satt + 1.0)                           # t'' = satt*t + t
        o_ref[0] = t2                                   # stash t'' in the output VMEM block
        # channel-att contribution:  W_i @ mean_HW(t'')  ==  rowsum(W_i @ t'') / HW
        zz = jnp.dot(w_ref[...], t2, preferred_element_type=jnp.float32)   # (Ctot, HW)
        z = z + jnp.sum(zz, axis=1, keepdims=True) * (1.0 / hw)

    catt = pl.reciprocal(1.0 + jnp.exp(-z), approx=True)                # (Ctot, 1)

    # ---- pass 2: out = catt * t'' + satt*t  ==  (1 + catt) * t'' - t ----
    off = 0
    for t_ref, o_ref in zip(t_refs, o_refs):
        c = t_ref.shape[1]
        a = catt[off:off + c, :]                        # (Ci, 1) aligned sublane slice
        off += c
        o_ref[0] = (1.0 + a) * o_ref[0] - t_ref[0]


# ---------------------------------------------------------------------------
# Full SC_Att_Bridge forward (single pallas_call).
# ---------------------------------------------------------------------------
def sc_att_bridge(ts, sp_w, sp_b, k3, att_ws, att_bs):
    """ts: tuple of (N, Ci, Hi, Wi) float32 arrays. Returns same-shaped tuple."""
    n_stage = len(ts)
    N = ts[0].shape[0]
    chans = tuple(int(t.shape[1]) for t in ts)
    hws = tuple(int(t.shape[2] * t.shape[3]) for t in ts)
    ctot = sum(chans)

    # Fold Conv1d(1,1,3,padding=1,bias=False) over the concatenated pooled vector into the
    # fused per-stage Linear weights (column form: z = concat(W_i) @ (T @ pooled) + b).
    kf = k3.reshape(-1).astype(jnp.float32)
    T = (kf[0] * jnp.eye(ctot, k=-1, dtype=jnp.float32)
         + kf[1] * jnp.eye(ctot, dtype=jnp.float32)
         + kf[2] * jnp.eye(ctot, k=1, dtype=jnp.float32))
    W_all = jnp.concatenate([w.astype(jnp.float32) for w in att_ws], axis=0)   # (Ctot, Csum)
    W_eff = jnp.dot(W_all, T, precision=lax.Precision.HIGHEST)                 # (Ctot, Csum)
    bcol = jnp.concatenate([b.astype(jnp.float32) for b in att_bs]).reshape(ctot, 1)
    spb = sp_b.reshape(1).astype(jnp.float32)
    w_avg = sp_w[0, 0].astype(jnp.float32)
    w_max = sp_w[0, 1].astype(jnp.float32)

    t_flats, tap_mats, w_effs = [], [], []
    off = 0
    for t, c, hw in zip(ts, chans, hws):
        # TODO(synk): for very large H*W (> ~1024) the (2*HW, HW) tap matrix stops fitting
        # VMEM comfortably (esp. v7x's 64 MiB); fall back to a pltpu.roll-based tap loop there.
        assert hw <= 1024, "tap-matrix spatial conv is gated to H*W <= 1024"
        _, _, H, W = t.shape
        t_flats.append(t.reshape(N, c, hw).astype(jnp.float32))    # lane-dense view
        tap_mats.append(_build_tap_matrix(w_avg, w_max, H, W))     # (2*HW, HW)
        w_effs.append(W_eff[:, off:off + c])                       # (Ctot, Ci)
        off += c

    in_specs = [pl.BlockSpec(memory_space=pltpu.MemorySpace.SMEM)]
    in_specs += [pl.BlockSpec((1, c, hw), lambda n: (n, 0, 0))
                 for c, hw in zip(chans, hws)]
    in_specs += [pl.BlockSpec((2 * hw, hw), lambda n: (0, 0)) for hw in hws]
    in_specs += [pl.BlockSpec((ctot, c), lambda n: (0, 0)) for c in chans]
    in_specs += [pl.BlockSpec((ctot, 1), lambda n: (0, 0))]
    out_specs = tuple(pl.BlockSpec((1, c, hw), lambda n: (n, 0, 0))
                      for c, hw in zip(chans, hws))
    out_shape = tuple(jax.ShapeDtypeStruct((N, c, hw), jnp.float32)
                      for c, hw in zip(chans, hws))

    kernel = functools.partial(_bridge_kernel, n_stage=n_stage)
    outs = pl.pallas_call(
        kernel,
        grid=(N,),                     # one sample per grid step (megacore-sharded on v7x)
        in_specs=in_specs,
        out_specs=out_specs,
        out_shape=out_shape,
        compiler_params=pltpu.CompilerParams(dimension_semantics=("parallel",)),
    )(spb, *t_flats, *tap_mats, *w_effs, bcol)
    return tuple(o.reshape(t.shape) for o, t in zip(outs, ts))


# ---------------------------------------------------------------------------
# Pure-JAX reference matching the PyTorch module.
# ---------------------------------------------------------------------------
def reference_forward(ts, sp_w, sp_b, k3, att_ws, att_bs):
    HI = lax.Precision.HIGHEST
    satts = []
    for t in ts:
        avg = jnp.mean(t, axis=1, keepdims=True)
        mx = jnp.max(t, axis=1, keepdims=True)
        am = jnp.concatenate([avg, mx], axis=1)          # (N, 2, H, W)
        conv = lax.conv_general_dilated(
            am, sp_w, window_strides=(1, 1), padding=((9, 9), (9, 9)),
            rhs_dilation=(3, 3), dimension_numbers=("NCHW", "OIHW", "NCHW"),
            precision=HI)
        satts.append(jax.nn.sigmoid(conv + sp_b.reshape(1, 1, 1, 1)))
    t1s = [s * t for s, t in zip(satts, ts)]             # satt * t  (= r_)
    t2s = [a + b for a, b in zip(t1s, ts)]               # + residual
    pooled = jnp.concatenate([jnp.mean(t, axis=(2, 3)) for t in t2s], axis=1)
    kf = k3.reshape(-1)
    pp = jnp.pad(pooled, ((0, 0), (1, 1)))
    att = kf[0] * pp[:, :-2] + kf[1] * pp[:, 1:-1] + kf[2] * pp[:, 2:]
    outs = []
    for i, (t2, r_) in enumerate(zip(t2s, t1s)):
        a = jax.nn.sigmoid(jnp.dot(att, att_ws[i].T, precision=HI) + att_bs[i][None, :])
        outs.append(a[:, :, None, None] * t2 + r_)
    return tuple(outs)


if __name__ == "__main__":
    # c_list as in HSH_UNet (only the first 4 entries feed the bridge).
    N = 2
    c_list = (8, 16, 24, 32, 48)
    channels = c_list[:4]
    csum = sum(channels)
    H = W = 16

    key = jax.random.PRNGKey(0)
    keys = jax.random.split(key, 16)
    ts = tuple(jax.random.normal(keys[i], (N, c, H, W), jnp.float32)
               for i, c in enumerate(channels))

    # parameters (shapes per nn.Conv2d / nn.Conv1d / nn.Linear)
    sp_w = jax.random.normal(keys[4], (1, 2, 7, 7), jnp.float32) * 0.15   # shared_conv2d weight
    sp_b = jax.random.normal(keys[5], (1,), jnp.float32) * 0.1            # shared_conv2d bias
    k3 = jax.random.normal(keys[6], (1, 1, 3), jnp.float32) * 0.5         # get_all_att (no bias)
    att_ws = tuple(jax.random.normal(keys[7 + i], (c, csum), jnp.float32) * 0.2
                   for i, c in enumerate(channels))                       # att1..att4 weights
    att_bs = tuple(jax.random.normal(keys[11 + i], (c,), jnp.float32) * 0.1
                   for i, c in enumerate(channels))                       # att1..att4 biases

    fn = jax.jit(sc_att_bridge)
    outs = fn(ts, sp_w, sp_b, k3, att_ws, att_bs)
    outs = jax.block_until_ready(outs)

    refs = reference_forward(ts, sp_w, sp_b, k3, att_ws, att_bs)
    for o, r, c in zip(outs, refs, channels):
        assert o.shape == (N, c, H, W), o.shape
        err = float(jnp.max(jnp.abs(o - r)))
        # approx EUP sigmoid (pl.reciprocal approx=True) introduces ~1e-3-scale error,
        # so keep a tolerance-based check (as recommended by the perf review).
        assert jnp.allclose(o, r, atol=5e-3, rtol=5e-3), f"max abs err {err}"

    print("KERNEL_OK")
</pallas_src>

<mosaic_0001>
module attributes {stable_mosaic.version = 11 : i64} {
  func.func @_bridge_kernel(%arg0: i32, %arg1: memref<1xf32, #tpu.memory_space<smem>>, %arg2: memref<1x8x256xf32, #tpu.memory_space<vmem>>, %arg3: memref<1x16x256xf32, #tpu.memory_space<vmem>>, %arg4: memref<1x24x256xf32, #tpu.memory_space<vmem>>, %arg5: memref<1x32x256xf32, #tpu.memory_space<vmem>>, %arg6: memref<512x256xf32, #tpu.memory_space<vmem>>, %arg7: memref<512x256xf32, #tpu.memory_space<vmem>>, %arg8: memref<512x256xf32, #tpu.memory_space<vmem>>, %arg9: memref<512x256xf32, #tpu.memory_space<vmem>>, %arg10: memref<80x8xf32, #tpu.memory_space<vmem>>, %arg11: memref<80x16xf32, #tpu.memory_space<vmem>>, %arg12: memref<80x24xf32, #tpu.memory_space<vmem>>, %arg13: memref<80x32xf32, #tpu.memory_space<vmem>>, %arg14: memref<80x1xf32, #tpu.memory_space<vmem>>, %arg15: memref<1x8x256xf32, #tpu.memory_space<vmem>>, %arg16: memref<1x16x256xf32, #tpu.memory_space<vmem>>, %arg17: memref<1x24x256xf32, #tpu.memory_space<vmem>>, %arg18: memref<1x32x256xf32, #tpu.memory_space<vmem>>) attributes {dimension_semantics = [#tpu.dimension_semantics<parallel>], iteration_bounds = array<i64: 2>, scalar_prefetch = 0 : i64, scratch_operands = 0 : i64, tpu.core_type = #tpu.core_type<tc>, window_params = [{transform_indices = @transform_0, window_bounds = array<i64: 1>}, {transform_indices = @transform_1, window_bounds = array<i64: 1, 8, 256>}, {transform_indices = @transform_2, window_bounds = array<i64: 1, 16, 256>}, {transform_indices = @transform_3, window_bounds = array<i64: 1, 24, 256>}, {transform_indices = @transform_4, window_bounds = array<i64: 1, 32, 256>}, {pipeline_mode = #tpu.pipeline_mode<synchronous>, transform_indices = @transform_5, window_bounds = array<i64: 512, 256>}, {pipeline_mode = #tpu.pipeline_mode<synchronous>, transform_indices = @transform_6, window_bounds = array<i64: 512, 256>}, {pipeline_mode = #tpu.pipeline_mode<synchronous>, transform_indices = @transform_7, window_bounds = array<i64: 512, 256>}, {pipeline_mode = #tpu.pipeline_mode<synchronous>, transform_indices = @transform_8, window_bounds = array<i64: 512, 256>}, {pipeline_mode = #tpu.pipeline_mode<synchronous>, transform_indices = @transform_9, window_bounds = array<i64: 80, 8>}, {pipeline_mode = #tpu.pipeline_mode<synchronous>, transform_indices = @transform_10, window_bounds = array<i64: 80, 16>}, {pipeline_mode = #tpu.pipeline_mode<synchronous>, transform_indices = @transform_11, window_bounds = array<i64: 80, 24>}, {pipeline_mode = #tpu.pipeline_mode<synchronous>, transform_indices = @transform_12, window_bounds = array<i64: 80, 32>}, {pipeline_mode = #tpu.pipeline_mode<synchronous>, transform_indices = @transform_13, window_bounds = array<i64: 80, 1>}, {transform_indices = @transform_14, window_bounds = array<i64: 1, 8, 256>}, {transform_indices = @transform_15, window_bounds = array<i64: 1, 16, 256>}, {transform_indices = @transform_16, window_bounds = array<i64: 1, 24, 256>}, {transform_indices = @transform_17, window_bounds = array<i64: 1, 32, 256>}]} {
    %c0 = arith.constant 0 : index
    %0 = memref.load %arg1[%c0] : memref<1xf32, #tpu.memory_space<smem>>
    %c0_0 = arith.constant 0 : index
    %c0_1 = arith.constant 0 : index
    %1 = vector.load %arg14[%c0_0, %c0_1] : memref<80x1xf32, #tpu.memory_space<vmem>>, vector<80x1xf32>
    %c0_2 = arith.constant 0 : index
    %c0_3 = arith.constant 0 : index
    %c0_4 = arith.constant 0 : index
    %2 = vector.load %arg2[%c0_2, %c0_3, %c0_4] : memref<1x8x256xf32, #tpu.memory_space<vmem>>, vector<1x8x256xf32>
    %3 = vector.shape_cast %2 : vector<1x8x256xf32> to vector<8x256xf32>
    %cst = arith.constant dense<0.000000e+00> : vector<256xf32>
    %4 = vector.multi_reduction <add>, %3, %cst [0] : vector<8x256xf32> to vector<256xf32>
    %5 = vector.shape_cast %4 : vector<256xf32> to vector<1x256xf32>
    %cst_5 = arith.constant 8.000000e+00 : f32
    %6 = vector.broadcast %cst_5 : f32 to vector<1x256xf32>
    %7 = arith.divf %5, %6 : vector<1x256xf32>
    %cst_6 = arith.constant dense<0xFF800000> : vector<256xf32>
    %8 = vector.multi_reduction <maximumf>, %3, %cst_6 [0] : vector<8x256xf32> to vector<256xf32>
    %9 = vector.shape_cast %8 : vector<256xf32> to vector<1x256xf32>
    %10 = tpu.concatenate %7, %9 in 1 : vector<1x256xf32>, vector<1x256xf32> -> vector<1x512xf32>
    %11 = vector.shape_cast %10 : vector<1x512xf32> to vector<1x512xf32>
    %12 = vector.broadcast %11 : vector<1x512xf32> to vector<8x512xf32>
    %c0_7 = arith.constant 0 : index
    %c0_8 = arith.constant 0 : index
    %13 = vector.load %arg6[%c0_7, %c0_8] : memref<512x256xf32, #tpu.memory_space<vmem>>, vector<512x256xf32>
    %cst_9 = arith.constant dense<0.000000e+00> : vector<8x256xf32>
    %14 = tpu.matmul %12, %13, %cst_9 {dimension_numbers = #tpu.dot_dimension_numbers<[1], [0], [0], [1], [0, 0, 1, 1], [], []>} : vector<8x512xf32>, vector<512x256xf32>, vector<8x256xf32> -> vector<8x256xf32>
    %15 = vector.extract_strided_slice %14 {offsets = [0, 0], sizes = [1, 256], strides = [1, 1]} : vector<8x256xf32> to vector<1x256xf32>
    %16 = vector.broadcast %0 : f32 to vector<1x256xf32>
    %17 = arith.addf %15, %16 : vector<1x256xf32>
    %cst_10 = arith.constant 0.000000e+00 : f32
    %18 = vector.broadcast %cst_10 : f32 to vector<1x256xf32>
    %19 = arith.subf %18, %17 : vector<1x256xf32>
    %20 = math.exp %19 : vector<1x256xf32>
    %cst_11 = arith.constant 1.000000e+00 : f32
    %21 = vector.broadcast %cst_11 : f32 to vector<1x256xf32>
    %22 = arith.addf %21, %20 : vector<1x256xf32>
    %23 = tpu.reciprocal %22 {approx = true} : vector<1x256xf32> -> vector<1x256xf32>
    %cst_12 = arith.constant 1.000000e+00 : f32
    %24 = vector.broadcast %cst_12 : f32 to vector<1x256xf32>
    %25 = arith.addf %23, %24 : vector<1x256xf32>
    %26 = vector.broadcast %25 : vector<1x256xf32> to vector<8x256xf32>
    %27 = arith.mulf %3, %26 : vector<8x256xf32>
    %c0_13 = arith.constant 0 : index
    %c0_14 = arith.constant 0 : index
    %c0_15 = arith.constant 0 : index
    %28 = vector.load %arg15[%c0_13, %c0_14, %c0_15] : memref<1x8x256xf32, #tpu.memory_space<vmem>>, vector<1x8x256xf32>
    %29 = vector.shape_cast %28 : vector<1x8x256xf32> to vector<8x256xf32>
    %30 = vector.shape_cast %27 : vector<8x256xf32> to vector<1x8x256xf32>
    tpu.vector_store %arg15[%c0_13, %c0_14, %c0_15], %30 {strides = array<i32>} : memref<1x8x256xf32, #tpu.memory_space<vmem>>, vector<1x8x256xf32>,
    %c0_16 = arith.constant 0 : index
    %c0_17 = arith.constant 0 : index
    %31 = vector.load %arg10[%c0_16, %c0_17] : memref<80x8xf32, #tpu.memory_space<vmem>>, vector<80x8xf32>
    %cst_18 = arith.constant dense<0.000000e+00> : vector<80x256xf32>
    %32 = tpu.matmul %31, %27, %cst_18 {dimension_numbers = #tpu.dot_dimension_numbers<[1], [0], [0], [1], [0, 0, 1, 1], [], []>} : vector<80x8xf32>, vector<8x256xf32>, vector<80x256xf32> -> vector<80x256xf32>
    %cst_19 = arith.constant dense<0.000000e+00> : vector<80xf32>
    %33 = vector.multi_reduction <add>, %32, %cst_19 [1] : vector<80x256xf32> to vector<80xf32>
    %34 = vector.shape_cast %33 : vector<80xf32> to vector<80x1xf32>
    %cst_20 = arith.constant 3.906250e-03 : f32
    %35 = vector.broadcast %cst_20 : f32 to vector<80x1xf32>
    %36 = arith.mulf %34, %35 : vector<80x1xf32>
    %37 = arith.addf %1, %36 : vector<80x1xf32>
    %c0_21 = arith.constant 0 : index
    %c0_22 = arith.constant 0 : index
    %c0_23 = arith.constant 0 : index
    %38 = vector.load %arg3[%c0_21, %c0_22, %c0_23] : memref<1x16x256xf32, #tpu.memory_space<vmem>>, vector<1x16x256xf32>
    %39 = vector.shape_cast %38 : vector<1x16x256xf32> to vector<16x256xf32>
    %cst_24 = arith.constant dense<0.000000e+00> : vector<256xf32>
    %40 = vector.multi_reduction <add>, %39, %cst_24 [0] : vector<16x256xf32> to vector<256xf32>
    %41 = vector.shape_cast %40 : vector<256xf32> to vector<1x256xf32>
    %cst_25 = arith.constant 1.600000e+01 : f32
    %42 = vector.broadcast %cst_25 : f32 to vector<1x256xf32>
    %43 = arith.divf %41, %42 : vector<1x256xf32>
    %cst_26 = arith.constant dense<0xFF800000> : vector<256xf32>
    %44 = vector.multi_reduction <maximumf>, %39, %cst_26 [0] : vector<16x256xf32> to vector<256xf32>
    %45 = vector.shape_cast %44 : vector<256xf32> to vector<1x256xf32>
    %46 = tpu.concatenate %43, %45 in 1 : vector<1x256xf32>, vector<1x256xf32> -> vector<1x512xf32>
    %47 = vector.shape_cast %46 : vector<1x512xf32> to vector<1x512xf32>
    %48 = vector.broadcast %47 : vector<1x512xf32> to vector<8x512xf32>
    %c0_27 = arith.constant 0 : index
    %c0_28 = arith.constant 0 : index
    %49 = vector.load %arg7[%c0_27, %c0_28] : memref<512x256xf32, #tpu.memory_space<vmem>>, vector<512x256xf32>
    %cst_29 = arith.constant dense<0.000000e+00> : vector<8x256xf32>
    %50 = tpu.matmul %48, %49, %cst_29 {dimension_numbers = #tpu.dot_dimension_numbers<[1], [0], [0], [1], [0, 0, 1, 1], [], []>} : vector<8x512xf32>, vector<512x256xf32>, vector<8x256xf32> -> vector<8x256xf32>
    %51 = vector.extract_strided_slice %50 {offsets = [0, 0], sizes = [1, 256], strides = [1, 1]} : vector<8x256xf32> to vector<1x256xf32>
    %52 = vector.broadcast %0 : f32 to vector<1x256xf32>
    %53 = arith.addf %51, %52 : vector<1x256xf32>
    %cst_30 = arith.constant 0.000000e+00 : f32
    %54 = vector.broadcast %cst_30 : f32 to vector<1x256xf32>
    %55 = arith.subf %54, %53 : vector<1x256xf32>
    %56 = math.exp %55 : vector<1x256xf32>
    %cst_31 = arith.constant 1.000000e+00 : f32
    %57 = vector.broadcast %cst_31 : f32 to vector<1x256xf32>
    %58 = arith.addf %57, %56 : vector<1x256xf32>
    %59 = tpu.reciprocal %58 {approx = true} : vector<1x256xf32> -> vector<1x256xf32>
    %cst_32 = arith.constant 1.000000e+00 : f32
    %60 = vector.broadcast %cst_32 : f32 to vector<1x256xf32>
    %61 = arith.addf %59, %60 : vector<1x256xf32>
    %62 = vector.broadcast %61 : vector<1x256xf32> to vector<16x256xf32>
    %63 = arith.mulf %39, %62 : vector<16x256xf32>
    %c0_33 = arith.constant 0 : index
    %c0_34 = arith.constant 0 : index
    %c0_35 = arith.constant 0 : index
    %64 = vector.load %arg16[%c0_33, %c0_34, %c0_35] : memref<1x16x256xf32, #tpu.memory_space<vmem>>, vector<1x16x256xf32>
    %65 = vector.shape_cast %64 : vector<1x16x256xf32> to vector<16x256xf32>
    %66 = vector.shape_cast %63 : vector<16x256xf32> to vector<1x16x256xf32>
    tpu.vector_store %arg16[%c0_33, %c0_34, %c0_35], %66 {strides = array<i32>} : memref<1x16x256xf32, #tpu.memory_space<vmem>>, vector<1x16x256xf32>,
    %c0_36 = arith.constant 0 : index
    %c0_37 = arith.constant 0 : index
    %67 = vector.load %arg11[%c0_36, %c0_37] : memref<80x16xf32, #tpu.memory_space<vmem>>, vector<80x16xf32>
    %cst_38 = arith.constant dense<0.000000e+00> : vector<80x256xf32>
    %68 = tpu.matmul %67, %63, %cst_38 {dimension_numbers = #tpu.dot_dimension_numbers<[1], [0], [0], [1], [0, 0, 1, 1], [], []>} : vector<80x16xf32>, vector<16x256xf32>, vector<80x256xf32> -> vector<80x256xf32>
    %cst_39 = arith.constant dense<0.000000e+00> : vector<80xf32>
    %69 = vector.multi_reduction <add>, %68, %cst_39 [1] : vector<80x256xf32> to vector<80xf32>
    %70 = vector.shape_cast %69 : vector<80xf32> to vector<80x1xf32>
    %cst_40 = arith.constant 3.906250e-03 : f32
    %71 = vector.broadcast %cst_40 : f32 to vector<80x1xf32>
    %72 = arith.mulf %70, %71 : vector<80x1xf32>
    %73 = arith.addf %37, %72 : vector<80x1xf32>
    %c0_41 = arith.constant 0 : index
    %c0_42 = arith.constant 0 : index
    %c0_43 = arith.constant 0 : index
    %74 = vector.load %arg4[%c0_41, %c0_42, %c0_43] : memref<1x24x256xf32, #tpu.memory_space<vmem>>, vector<1x24x256xf32>
    %75 = vector.shape_cast %74 : vector<1x24x256xf32> to vector<24x256xf32>
    %cst_44 = arith.constant dense<0.000000e+00> : vector<256xf32>
    %76 = vector.multi_reduction <add>, %75, %cst_44 [0] : vector<24x256xf32> to vector<256xf32>
    %77 = vector.shape_cast %76 : vector<256xf32> to vector<1x256xf32>
    %cst_45 = arith.constant 2.400000e+01 : f32
    %78 = vector.broadcast %cst_45 : f32 to vector<1x256xf32>
    %79 = arith.divf %77, %78 : vector<1x256xf32>
    %cst_46 = arith.constant dense<0xFF800000> : vector<256xf32>
    %80 = vector.multi_reduction <maximumf>, %75, %cst_46 [0] : vector<24x256xf32> to vector<256xf32>
    %81 = vector.shape_cast %80 : vector<256xf32> to vector<1x256xf32>
    %82 = tpu.concatenate %79, %81 in 1 : vector<1x256xf32>, vector<1x256xf32> -> vector<1x512xf32>
    %83 = vector.shape_cast %82 : vector<1x512xf32> to vector<1x512xf32>
    %84 = vector.broadcast %83 : vector<1x512xf32> to vector<8x512xf32>
    %c0_47 = arith.constant 0 : index
    %c0_48 = arith.constant 0 : index
    %85 = vector.load %arg8[%c0_47, %c0_48] : memref<512x256xf32, #tpu.memory_space<vmem>>, vector<512x256xf32>
    %cst_49 = arith.constant dense<0.000000e+00> : vector<8x256xf32>
    %86 = tpu.matmul %84, %85, %cst_49 {dimension_numbers = #tpu.dot_dimension_numbers<[1], [0], [0], [1], [0, 0, 1, 1], [], []>} : vector<8x512xf32>, vector<512x256xf32>, vector<8x256xf32> -> vector<8x256xf32>
    %87 = vector.extract_strided_slice %86 {offsets = [0, 0], sizes = [1, 256], strides = [1, 1]} : vector<8x256xf32> to vector<1x256xf32>
    %88 = vector.broadcast %0 : f32 to vector<1x256xf32>
    %89 = arith.addf %87, %88 : vector<1x256xf32>
    %cst_50 = arith.constant 0.000000e+00 : f32
    %90 = vector.broadcast %cst_50 : f32 to vector<1x256xf32>
    %91 = arith.subf %90, %89 : vector<1x256xf32>
    %92 = math.exp %91 : vector<1x256xf32>
    %cst_51 = arith.constant 1.000000e+00 : f32
    %93 = vector.broadcast %cst_51 : f32 to vector<1x256xf32>
    %94 = arith.addf %93, %92 : vector<1x256xf32>
    %95 = tpu.reciprocal %94 {approx = true} : vector<1x256xf32> -> vector<1x256xf32>
    %cst_52 = arith.constant 1.000000e+00 : f32
    %96 = vector.broadcast %cst_52 : f32 to vector<1x256xf32>
    %97 = arith.addf %95, %96 : vector<1x256xf32>
    %98 = vector.broadcast %97 : vector<1x256xf32> to vector<24x256xf32>
    %99 = arith.mulf %75, %98 : vector<24x256xf32>
    %c0_53 = arith.constant 0 : index
    %c0_54 = arith.constant 0 : index
    %c0_55 = arith.constant 0 : index
    %100 = vector.load %arg17[%c0_53, %c0_54, %c0_55] : memref<1x24x256xf32, #tpu.memory_space<vmem>>, vector<1x24x256xf32>
    %101 = vector.shape_cast %100 : vector<1x24x256xf32> to vector<24x256xf32>
    %102 = vector.shape_cast %99 : vector<24x256xf32> to vector<1x24x256xf32>
    tpu.vector_store %arg17[%c0_53, %c0_54, %c0_55], %102 {strides = array<i32>} : memref<1x24x256xf32, #tpu.memory_space<vmem>>, vector<1x24x256xf32>,
    %c0_56 = arith.constant 0 : index
    %c0_57 = arith.constant 0 : index
    %103 = vector.load %arg12[%c0_56, %c0_57] : memref<80x24xf32, #tpu.memory_space<vmem>>, vector<80x24xf32>
    %cst_58 = arith.constant dense<0.000000e+00> : vector<80x256xf32>
    %104 = tpu.matmul %103, %99, %cst_58 {dimension_numbers = #tpu.dot_dimension_numbers<[1], [0], [0], [1], [0, 0, 1, 1], [], []>} : vector<80x24xf32>, vector<24x256xf32>, vector<80x256xf32> -> vector<80x256xf32>
    %cst_59 = arith.constant dense<0.000000e+00> : vector<80xf32>
    %105 = vector.multi_reduction <add>, %104, %cst_59 [1] : vector<80x256xf32> to vector<80xf32>
    %106 = vector.shape_cast %105 : vector<80xf32> to vector<80x1xf32>
    %cst_60 = arith.constant 3.906250e-03 : f32
    %107 = vector.broadcast %cst_60 : f32 to vector<80x1xf32>
    %108 = arith.mulf %106, %107 : vector<80x1xf32>
    %109 = arith.addf %73, %108 : vector<80x1xf32>
    %c0_61 = arith.constant 0 : index
    %c0_62 = arith.constant 0 : index
    %c0_63 = arith.constant 0 : index
    %110 = vector.load %arg5[%c0_61, %c0_62, %c0_63] : memref<1x32x256xf32, #tpu.memory_space<vmem>>, vector<1x32x256xf32>
    %111 = vector.shape_cast %110 : vector<1x32x256xf32> to vector<32x256xf32>
    %cst_64 = arith.constant dense<0.000000e+00> : vector<256xf32>
    %112 = vector.multi_reduction <add>, %111, %cst_64 [0] : vector<32x256xf32> to vector<256xf32>
    %113 = vector.shape_cast %112 : vector<256xf32> to vector<1x256xf32>
    %cst_65 = arith.constant 3.200000e+01 : f32
    %114 = vector.broadcast %cst_65 : f32 to vector<1x256xf32>
    %115 = arith.divf %113, %114 : vector<1x256xf32>
    %cst_66 = arith.constant dense<0xFF800000> : vector<256xf32>
    %116 = vector.multi_reduction <maximumf>, %111, %cst_66 [0] : vector<32x256xf32> to vector<256xf32>
    %117 = vector.shape_cast %116 : vector<256xf32> to vector<1x256xf32>
    %118 = tpu.concatenate %115, %117 in 1 : vector<1x256xf32>, vector<1x256xf32> -> vector<1x512xf32>
    %119 = vector.shape_cast %118 : vector<1x512xf32> to vector<1x512xf32>
    %120 = vector.broadcast %119 : vector<1x512xf32> to vector<8x512xf32>
    %c0_67 = arith.constant 0 : index
    %c0_68 = arith.constant 0 : index
    %121 = vector.load %arg9[%c0_67, %c0_68] : memref<512x256xf32, #tpu.memory_space<vmem>>, vector<512x256xf32>
    %cst_69 = arith.constant dense<0.000000e+00> : vector<8x256xf32>
    %122 = tpu.matmul %120, %121, %cst_69 {dimension_numbers = #tpu.dot_dimension_numbers<[1], [0], [0], [1], [0, 0, 1, 1], [], []>} : vector<8x512xf32>, vector<512x256xf32>, vector<8x256xf32> -> vector<8x256xf32>
    %123 = vector.extract_strided_slice %122 {offsets = [0, 0], sizes = [1, 256], strides = [1, 1]} : vector<8x256xf32> to vector<1x256xf32>
    %124 = vector.broadcast %0 : f32 to vector<1x256xf32>
    %125 = arith.addf %123, %124 : vector<1x256xf32>
    %cst_70 = arith.constant 0.000000e+00 : f32
    %126 = vector.broadcast %cst_70 : f32 to vector<1x256xf32>
    %127 = arith.subf %126, %125 : vector<1x256xf32>
    %128 = math.exp %127 : vector<1x256xf32>
    %cst_71 = arith.constant 1.000000e+00 : f32
    %129 = vector.broadcast %cst_71 : f32 to vector<1x256xf32>
    %130 = arith.addf %129, %128 : vector<1x256xf32>
    %131 = tpu.reciprocal %130 {approx = true} : vector<1x256xf32> -> vector<1x256xf32>
    %cst_72 = arith.constant 1.000000e+00 : f32
    %132 = vector.broadcast %cst_72 : f32 to vector<1x256xf32>
    %133 = arith.addf %131, %132 : vector<1x256xf32>
    %134 = vector.broadcast %133 : vector<1x256xf32> to vector<32x256xf32>
    %135 = arith.mulf %111, %134 : vector<32x256xf32>
    %c0_73 = arith.constant 0 : index
    %c0_74 = arith.constant 0 : index
    %c0_75 = arith.constant 0 : index
    %136 = vector.load %arg18[%c0_73, %c0_74, %c0_75] : memref<1x32x256xf32, #tpu.memory_space<vmem>>, vector<1x32x256xf32>
    %137 = vector.shape_cast %136 : vector<1x32x256xf32> to vector<32x256xf32>
    %138 = vector.shape_cast %135 : vector<32x256xf32> to vector<1x32x256xf32>
    tpu.vector_store %arg18[%c0_73, %c0_74, %c0_75], %138 {strides = array<i32>} : memref<1x32x256xf32, #tpu.memory_space<vmem>>, vector<1x32x256xf32>,
    %c0_76 = arith.constant 0 : index
    %c0_77 = arith.constant 0 : index
    %139 = vector.load %arg13[%c0_76, %c0_77] : memref<80x32xf32, #tpu.memory_space<vmem>>, vector<80x32xf32>
    %cst_78 = arith.constant dense<0.000000e+00> : vector<80x256xf32>
    %140 = tpu.matmul %139, %135, %cst_78 {dimension_numbers = #tpu.dot_dimension_numbers<[1], [0], [0], [1], [0, 0, 1, 1], [], []>} : vector<80x32xf32>, vector<32x256xf32>, vector<80x256xf32> -> vector<80x256xf32>
    %cst_79 = arith.constant dense<0.000000e+00> : vector<80xf32>
    %141 = vector.multi_reduction <add>, %140, %cst_79 [1] : vector<80x256xf32> to vector<80xf32>
    %142 = vector.shape_cast %141 : vector<80xf32> to vector<80x1xf32>
    %cst_80 = arith.constant 3.906250e-03 : f32
    %143 = vector.broadcast %cst_80 : f32 to vector<80x1xf32>
    %144 = arith.mulf %142, %143 : vector<80x1xf32>
    %145 = arith.addf %109, %144 : vector<80x1xf32>
    %cst_81 = arith.constant 0.000000e+00 : f32
    %146 = vector.broadcast %cst_81 : f32 to vector<80x1xf32>
    %147 = arith.subf %146, %145 : vector<80x1xf32>
    %148 = math.exp %147 : vector<80x1xf32>
    %cst_82 = arith.constant 1.000000e+00 : f32
    %149 = vector.broadcast %cst_82 : f32 to vector<80x1xf32>
    %150 = arith.addf %149, %148 : vector<80x1xf32>
    %151 = tpu.reciprocal %150 {approx = true} : vector<80x1xf32> -> vector<80x1xf32>
    %152 = vector.extract_strided_slice %151 {offsets = [0, 0], sizes = [8, 1], strides = [1, 1]} : vector<80x1xf32> to vector<8x1xf32>
    %cst_83 = arith.constant 1.000000e+00 : f32
    %153 = vector.broadcast %cst_83 : f32 to vector<8x1xf32>
    %154 = arith.addf %153, %152 : vector<8x1xf32>
    %c0_84 = arith.constant 0 : index
    %c0_85 = arith.constant 0 : index
    %c0_86 = arith.constant 0 : index
    %155 = vector.load %arg15[%c0_84, %c0_85, %c0_86] : memref<1x8x256xf32, #tpu.memory_space<vmem>>, vector<1x8x256xf32>
    %156 = vector.shape_cast %155 : vector<1x8x256xf32> to vector<8x256xf32>
    %157 = vector.broadcast %154 : vector<8x1xf32> to vector<8x256xf32>
    %158 = arith.mulf %157, %156 : vector<8x256xf32>
    %c0_87 = arith.constant 0 : index
    %c0_88 = arith.constant 0 : index
    %c0_89 = arith.constant 0 : index
    %159 = vector.load %arg2[%c0_87, %c0_88, %c0_89] : memref<1x8x256xf32, #tpu.memory_space<vmem>>, vector<1x8x256xf32>
    %160 = vector.shape_cast %159 : vector<1x8x256xf32> to vector<8x256xf32>
    %161 = arith.subf %158, %160 : vector<8x256xf32>
    %c0_90 = arith.constant 0 : index
    %c0_91 = arith.constant 0 : index
    %c0_92 = arith.constant 0 : index
    %162 = vector.load %arg15[%c0_90, %c0_91, %c0_92] : memref<1x8x256xf32, #tpu.memory_space<vmem>>, vector<1x8x256xf32>
    %163 = vector.shape_cast %162 : vector<1x8x256xf32> to vector<8x256xf32>
    %164 = vector.shape_cast %161 : vector<8x256xf32> to vector<1x8x256xf32>
    tpu.vector_store %arg15[%c0_90, %c0_91, %c0_92], %164 {strides = array<i32>} : memref<1x8x256xf32, #tpu.memory_space<vmem>>, vector<1x8x256xf32>,
    %165 = vector.extract_strided_slice %151 {offsets = [8, 0], sizes = [16, 1], strides = [1, 1]} : vector<80x1xf32> to vector<16x1xf32>
    %cst_93 = arith.constant 1.000000e+00 : f32
    %166 = vector.broadcast %cst_93 : f32 to vector<16x1xf32>
    %167 = arith.addf %166, %165 : vector<16x1xf32>
    %c0_94 = arith.constant 0 : index
    %c0_95 = arith.constant 0 : index
    %c0_96 = arith.constant 0 : index
    %168 = vector.load %arg16[%c0_94, %c0_95, %c0_96] : memref<1x16x256xf32, #tpu.memory_space<vmem>>, vector<1x16x256xf32>
    %169 = vector.shape_cast %168 : vector<1x16x256xf32> to vector<16x256xf32>
    %170 = vector.broadcast %167 : vector<16x1xf32> to vector<16x256xf32>
    %171 = arith.mulf %170, %169 : vector<16x256xf32>
    %c0_97 = arith.constant 0 : index
    %c0_98 = arith.constant 0 : index
    %c0_99 = arith.constant 0 : index
    %172 = vector.load %arg3[%c0_97, %c0_98, %c0_99] : memref<1x16x256xf32, #tpu.memory_space<vmem>>, vector<1x16x256xf32>
    %173 = vector.shape_cast %172 : vector<1x16x256xf32> to vector<16x256xf32>
    %174 = arith.subf %171, %173 : vector<16x256xf32>
    %c0_100 = arith.constant 0 : index
    %c0_101 = arith.constant 0 : index
    %c0_102 = arith.constant 0 : index
    %175 = vector.load %arg16[%c0_100, %c0_101, %c0_102] : memref<1x16x256xf32, #tpu.memory_space<vmem>>, vector<1x16x256xf32>
    %176 = vector.shape_cast %175 : vector<1x16x256xf32> to vector<16x256xf32>
    %177 = vector.shape_cast %174 : vector<16x256xf32> to vector<1x16x256xf32>
    tpu.vector_store %arg16[%c0_100, %c0_101, %c0_102], %177 {strides = array<i32>} : memref<1x16x256xf32, #tpu.memory_space<vmem>>, vector<1x16x256xf32>,
    %178 = vector.extract_strided_slice %151 {offsets = [24, 0], sizes = [24, 1], strides = [1, 1]} : vector<80x1xf32> to vector<24x1xf32>
    %cst_103 = arith.constant 1.000000e+00 : f32
    %179 = vector.broadcast %cst_103 : f32 to vector<24x1xf32>
    %180 = arith.addf %179, %178 : vector<24x1xf32>
    %c0_104 = arith.constant 0 : index
    %c0_105 = arith.constant 0 : index
    %c0_106 = arith.constant 0 : index
    %181 = vector.load %arg17[%c0_104, %c0_105, %c0_106] : memref<1x24x256xf32, #tpu.memory_space<vmem>>, vector<1x24x256xf32>
    %182 = vector.shape_cast %181 : vector<1x24x256xf32> to vector<24x256xf32>
    %183 = vector.broadcast %180 : vector<24x1xf32> to vector<24x256xf32>
    %184 = arith.mulf %183, %182 : vector<24x256xf32>
    %c0_107 = arith.constant 0 : index
    %c0_108 = arith.constant 0 : index
    %c0_109 = arith.constant 0 : index
    %185 = vector.load %arg4[%c0_107, %c0_108, %c0_109] : memref<1x24x256xf32, #tpu.memory_space<vmem>>, vector<1x24x256xf32>
    %186 = vector.shape_cast %185 : vector<1x24x256xf32> to vector<24x256xf32>
    %187 = arith.subf %184, %186 : vector<24x256xf32>
    %c0_110 = arith.constant 0 : index
    %c0_111 = arith.constant 0 : index
    %c0_112 = arith.constant 0 : index
    %188 = vector.load %arg17[%c0_110, %c0_111, %c0_112] : memref<1x24x256xf32, #tpu.memory_space<vmem>>, vector<1x24x256xf32>
    %189 = vector.shape_cast %188 : vector<1x24x256xf32> to vector<24x256xf32>
    %190 = vector.shape_cast %187 : vector<24x256xf32> to vector<1x24x256xf32>
    tpu.vector_store %arg17[%c0_110, %c0_111, %c0_112], %190 {strides = array<i32>} : memref<1x24x256xf32, #tpu.memory_space<vmem>>, vector<1x24x256xf32>,
    %191 = vector.extract_strided_slice %151 {offsets = [48, 0], sizes = [32, 1], strides = [1, 1]} : vector<80x1xf32> to vector<32x1xf32>
    %cst_113 = arith.constant 1.000000e+00 : f32
    %192 = vector.broadcast %cst_113 : f32 to vector<32x1xf32>
    %193 = arith.addf %192, %191 : vector<32x1xf32>
    %c0_114 = arith.constant 0 : index
    %c0_115 = arith.constant 0 : index
    %c0_116 = arith.constant 0 : index
    %194 = vector.load %arg18[%c0_114, %c0_115, %c0_116] : memref<1x32x256xf32, #tpu.memory_space<vmem>>, vector<1x32x256xf32>
    %195 = vector.shape_cast %194 : vector<1x32x256xf32> to vector<32x256xf32>
    %196 = vector.broadcast %193 : vector<32x1xf32> to vector<32x256xf32>
    %197 = arith.mulf %196, %195 : vector<32x256xf32>
    %c0_117 = arith.constant 0 : index
    %c0_118 = arith.constant 0 : index
    %c0_119 = arith.constant 0 : index
    %198 = vector.load %arg5[%c0_117, %c0_118, %c0_119] : memref<1x32x256xf32, #tpu.memory_space<vmem>>, vector<1x32x256xf32>
    %199 = vector.shape_cast %198 : vector<1x32x256xf32> to vector<32x256xf32>
    %200 = arith.subf %197, %199 : vector<32x256xf32>
    %c0_120 = arith.constant 0 : index
    %c0_121 = arith.constant 0 : index
    %c0_122 = arith.constant 0 : index
    %201 = vector.load %arg18[%c0_120, %c0_121, %c0_122] : memref<1x32x256xf32, #tpu.memory_space<vmem>>, vector<1x32x256xf32>
    %202 = vector.shape_cast %201 : vector<1x32x256xf32> to vector<32x256xf32>
    %203 = vector.shape_cast %200 : vector<32x256xf32> to vector<1x32x256xf32>
    tpu.vector_store %arg18[%c0_120, %c0_121, %c0_122], %203 {strides = array<i32>} : memref<1x32x256xf32, #tpu.memory_space<vmem>>, vector<1x32x256xf32>,
    return
  }
  func.func @transform_0(%arg0: i32) -> i32 {
    %c0_i32 = arith.constant 0 : i32
    %c0_i32_0 = arith.constant 0 : i32
    return %c0_i32 : i32
  }
  func.func @transform_1(%arg0: i32) -> (i32, i32, i32) {
    %c0_i32 = arith.constant 0 : i32
    %c0_i32_0 = arith.constant 0 : i32
    %c0_i32_1 = arith.constant 0 : i32
    return %arg0, %c0_i32, %c0_i32_0 : i32, i32, i32
  }
  func.func @transform_2(%arg0: i32) -> (i32, i32, i32) {
    %c0_i32 = arith.constant 0 : i32
    %c0_i32_0 = arith.constant 0 : i32
    %c0_i32_1 = arith.constant 0 : i32
    return %arg0, %c0_i32, %c0_i32_0 : i32, i32, i32
  }
  func.func @transform_3(%arg0: i32) -> (i32, i32, i32) {
    %c0_i32 = arith.constant 0 : i32
    %c0_i32_0 = arith.constant 0 : i32
    %c0_i32_1 = arith.constant 0 : i32
    return %arg0, %c0_i32, %c0_i32_0 : i32, i32, i32
  }
  func.func @transform_4(%arg0: i32) -> (i32, i32, i32) {
    %c0_i32 = arith.constant 0 : i32
    %c0_i32_0 = arith.constant 0 : i32
    %c0_i32_1 = arith.constant 0 : i32
    return %arg0, %c0_i32, %c0_i32_0 : i32, i32, i32
  }
  func.func @transform_5(%arg0: i32) -> (i32, i32) {
    %c0_i32 = arith.constant 0 : i32
    %c0_i32_0 = arith.constant 0 : i32
    %c0_i32_1 = arith.constant 0 : i32
    return %c0_i32, %c0_i32_0 : i32, i32
  }
  func.func @transform_6(%arg0: i32) -> (i32, i32) {
    %c0_i32 = arith.constant 0 : i32
    %c0_i32_0 = arith.constant 0 : i32
    %c0_i32_1 = arith.constant 0 : i32
    return %c0_i32, %c0_i32_0 : i32, i32
  }
  func.func @transform_7(%arg0: i32) -> (i32, i32) {
    %c0_i32 = arith.constant 0 : i32
    %c0_i32_0 = arith.constant 0 : i32
    %c0_i32_1 = arith.constant 0 : i32
    return %c0_i32, %c0_i32_0 : i32, i32
  }
  func.func @transform_8(%arg0: i32) -> (i32, i32) {
    %c0_i32 = arith.constant 0 : i32
    %c0_i32_0 = arith.constant 0 : i32
    %c0_i32_1 = arith.constant 0 : i32
    return %c0_i32, %c0_i32_0 : i32, i32
  }
  func.func @transform_9(%arg0: i32) -> (i32, i32) {
    %c0_i32 = arith.constant 0 : i32
    %c0_i32_0 = arith.constant 0 : i32
    %c0_i32_1 = arith.constant 0 : i32
    return %c0_i32, %c0_i32_0 : i32, i32
  }
  func.func @transform_10(%arg0: i32) -> (i32, i32) {
    %c0_i32 = arith.constant 0 : i32
    %c0_i32_0 = arith.constant 0 : i32
    %c0_i32_1 = arith.constant 0 : i32
    return %c0_i32, %c0_i32_0 : i32, i32
  }
  func.func @transform_11(%arg0: i32) -> (i32, i32) {
    %c0_i32 = arith.constant 0 : i32
    %c0_i32_0 = arith.constant 0 : i32
    %c0_i32_1 = arith.constant 0 : i32
    return %c0_i32, %c0_i32_0 : i32, i32
  }
  func.func @transform_12(%arg0: i32) -> (i32, i32) {
    %c0_i32 = arith.constant 0 : i32
    %c0_i32_0 = arith.constant 0 : i32
    %c0_i32_1 = arith.constant 0 : i32
    return %c0_i32, %c0_i32_0 : i32, i32
  }
  func.func @transform_13(%arg0: i32) -> (i32, i32) {
    %c0_i32 = arith.constant 0 : i32
    %c0_i32_0 = arith.constant 0 : i32
    %c0_i32_1 = arith.constant 0 : i32
    return %c0_i32, %c0_i32_0 : i32, i32
  }
  func.func @transform_14(%arg0: i32) -> (i32, i32, i32) {
    %c0_i32 = arith.constant 0 : i32
    %c0_i32_0 = arith.constant 0 : i32
    %c0_i32_1 = arith.constant 0 : i32
    return %arg0, %c0_i32, %c0_i32_0 : i32, i32, i32
  }
  func.func @transform_15(%arg0: i32) -> (i32, i32, i32) {
    %c0_i32 = arith.constant 0 : i32
    %c0_i32_0 = arith.constant 0 : i32
    %c0_i32_1 = arith.constant 0 : i32
    return %arg0, %c0_i32, %c0_i32_0 : i32, i32, i32
  }
  func.func @transform_16(%arg0: i32) -> (i32, i32, i32) {
    %c0_i32 = arith.constant 0 : i32
    %c0_i32_0 = arith.constant 0 : i32
    %c0_i32_1 = arith.constant 0 : i32
    return %arg0, %c0_i32, %c0_i32_0 : i32, i32, i32
  }
  func.func @transform_17(%arg0: i32) -> (i32, i32, i32) {
    %c0_i32 = arith.constant 0 : i32
    %c0_i32_0 = arith.constant 0 : i32
    %c0_i32_1 = arith.constant 0 : i32
    return %arg0, %c0_i32, %c0_i32_0 : i32, i32, i32
  }
}

</mosaic_0001>

<bundles_post_ra>
// kernel: sc_att_bridge.1
= control target key start
LH: loop header
LB: loop body
LE: loop exit
PB: predicated region body
PF: predicated region fallthrough
CT: control target
= control target key end

     0   :  { %s3623_s27 = smov 0   ;;  %s5767_s0 = inlined_call_operand.<no memory space> [shape: f32[1], index: 0, kind: input, shape index: {}]   ;;  %s5768_s1 = inlined_call_operand.vmem [shape: f32[2,8,256], index: 1, kind: input, shape index: {}]   ;;  %s5769_s2 = inlined_call_operand.vmem [shape: f32[2,16,256], index: 2, kind: input, shape index: {}]   ;;  %s5770_s3 = inlined_call_operand.vmem [shape: f32[2,24,256], index: 3, kind: input, shape index: {}]   ;;  %s5771_s4 = inlined_call_operand.vmem [shape: f32[2,32,256], index: 4, kind: input, shape index: {}]   ;;  %s5772_s5 = inlined_call_operand.vmem [shape: f32[512,256], index: 5, kind: input, shape index: {}, may-alias: {5,6,7,8}]   ;;  %s5773_s6 = inlined_call_operand.vmem [shape: f32[512,256], index: 6, kind: input, shape index: {}, may-alias: {5,6,7,8}]   ;;  %s5774_s7 = inlined_call_operand.vmem [shape: f32[512,256], index: 7, kind: input, shape index: {}, may-alias: {5,6,7,8}]   ;;  %s5775_s8 = inlined_call_operand.vmem [shape: f32[512,256], index: 8, kind: input, shape index: {}, may-alias: {5,6,7,8}]   ;;  %s5776_s9 = inlined_call_operand.vmem [shape: f32[80,8], index: 9, kind: input, shape index: {}]   ;;  %s5777_s10 = inlined_call_operand.vmem [shape: f32[80,16], index: 10, kind: input, shape index: {}]   ;;  %s5778_s11 = inlined_call_operand.vmem [shape: f32[80,24], index: 11, kind: input, shape index: {}]   ;;  %s5779_s12 = inlined_call_operand.vmem [shape: f32[80,32], index: 12, kind: input, shape index: {}]   ;;  %s5780_s13 = inlined_call_operand.vmem [shape: f32[80,1], index: 13, kind: input, shape index: {}]   ;;  %s5781_s14 = inlined_call_operand.vmem [shape: f32[2,8,256], index: 14, kind: output, shape index: {0}]   ;;  %s5782_s15 = inlined_call_operand.vmem [shape: f32[2,16,256], index: 15, kind: output, shape index: {1}]   ;;  %s5783_s16 = inlined_call_operand.vmem [shape: f32[2,24,256], index: 16, kind: output, shape index: {2}]   ;;  %s5784_s17 = inlined_call_operand.vmem [shape: f32[2,32,256], index: 17, kind: output, shape index: {3}]  }
   0x1   :  { %5788 = sst [smem:[#allocation3_spill]] %s5767_s0 }
   0x2   :  { %5789 = sst [smem:[#allocation4_spill]] %s5768_s1 }
   0x3   :  { %5790 = sst [smem:[#allocation5_spill]] %s5769_s2 }
   0x4   :  { %5791 = sst [smem:[#allocation6_spill]] %s5770_s3 }
   0x5   :  { %5792 = sst [smem:[#allocation7_spill]] %s5771_s4 }
   0x6   :  { %s5793_s26 = sld [smem:[#allocation3_spill]] }
   0xc   :  { %23 = sst [smem:[#allocation2]] %s5793_s26 }
   0xd LB: > { %s3347_s28 = sadd.s32 4294967295, %s3526_s27   ;;  %p3351_p0 = scmp.ge.s32.totalorder %s3526_s27, 1  ;;  %s3526_s27 = sphi %s3623_s27, %s29_s27  }
   0xe   : > { %p525_p1 = scmp.lt.s32.totalorder %s3526_s27, 3 }
  0x10   : > { %p526_p2 = pnand %p3351_p0, %p525_p1 }
  0x11   : > { %p3819_p3 = scmp.lt.s32.totalorder (!%p526_p2), %s3347_s28, 1  ;;  %s5795_s21 = sld [smem:[#allocation4_spill]] (!%p526_p2) }
  0x12   : > { %529 = sbr.rel (%p526_p2) target bundleno = 1795 (0x703), region = 76  ;;  %s5796_s2 = sld [smem:[#allocation5_spill]] (!%p526_p2) }
  0x13   : > { %s647_s19 = sld [smem:[#allocation2]] (!%p526_p2) }
  0x14   : > { %s5797_s3 = sld [smem:[#allocation6_spill]] (!%p526_p2) }
  0x15   : > { %s5799_s4 = sld [smem:[#allocation7_spill]] (!%p526_p2) }
  0x17   : > { %v734_v0 = vld [vmem:[%s5772_s5 + $0xf8] sm:$0xff]  ;;  %v733_v2 = vld [vmem:[%s5772_s5 + $0xf0] sm:$0xff]  ;;  %v732_v4 = vld [vmem:[%s5772_s5 + $0xe8] sm:$0xff]  ;;  %s5803_s28 = smov (!%p3819_p3, %s3347_s28), 1  ;;  %vm1010_vm0 = vcmask 64512   ;;  %vm1577_vm1 = vcmask 130048  }
  0x18   : > { %v798_v1 = vld [vmem:[%s5772_s5 + $0x2f8] sm:$0xff]  ;;  %831 = vmatprep.subr.mxu0 %v734_v0  ;;  %v797_v3 = vld [vmem:[%s5772_s5 + $0x2f0] sm:$0xff]  ;;  %v796_v5 = vld [vmem:[%s5772_s5 + $0x2e8] sm:$0xff]  ;;  %s3408_s30 = sshll.u32 %s5803_s28, 4  ;;  %s5785_s26 = sshll.u32 %s5803_s28, 5  ;;  %vm2154_vm2 = vcmask 195584  }
  0x19   : > { %902 = vmatprep.subr.mxu1 %v798_v1  ;;  %832 = vmatpush1.msra.mxu0 %v733_v2  ;;  %v731_v6 = vld [vmem:[%s5772_s5 + $0xe0] sm:$0xff]  ;;  %v730_v8 = vld [vmem:[%s5772_s5 + $0xd8] sm:$0xff]  ;;  %v729_v10 = vld [vmem:[%s5772_s5 + $0xd0] sm:$0xff]  ;;  %s3901_s1 = scalar_lea.vmem %s5795_s21, %s3408_s30  ;;  %s4195_s29 = scalar_lea.vmem %s5796_s2, %s5785_s26  ;;  %vm2741_vm3 = vcmask 261120  }
  0x1a   : > { %903 = vmatpush1.msra.mxu1 %v797_v3  ;;  %v795_v7 = vld [vmem:[%s5772_s5 + $0x2e0] sm:$0xff]  ;;  %833 = vmatprep.subr.mxu0 %v732_v4  ;;  %v794_v9 = vld [vmem:[%s5772_s5 + $0x2d8] sm:$0xff]  ;;  %v793_v11 = vld [vmem:[%s5772_s5 + $0x2d0] sm:$0xff]  ;;  %s4283_s22 = scalar_lea.vmem %s5781_s14, %s3408_s30  ;;  %s5798_s23 = sshll.u32 %s5803_s28, 5 }
  0x1b   : > { %904 = vmatprep.subr.mxu1 %v796_v5  ;;  %834 = vmatpush1.msra.mxu0 %v731_v6  ;;  %v728_v12 = vld [vmem:[%s5772_s5 + $0xc8] sm:$0xff]  ;;  %v727_v14 = vld [vmem:[%s5772_s5 + $0xc0] sm:$0xff]  ;;  %v726_v16 = vld [vmem:[%s5772_s5 + $0xb8] sm:$0xff]  ;;  %s4772_s26 = scalar_lea.vmem %s5782_s15, %s5798_s23  ;;  %s5787_s25 = sshll.u32 %s5803_s28, 6 }
  0x1c   : > { %905 = vmatpush1.msra.mxu1 %v795_v7  ;;  %v792_v13 = vld [vmem:[%s5772_s5 + $0x2c8] sm:$0xff]  ;;  %835 = vmatprep.subr.mxu0 %v730_v8  ;;  %v791_v15 = vld [vmem:[%s5772_s5 + $0x2c0] sm:$0xff]  ;;  %v790_v17 = vld [vmem:[%s5772_s5 + $0x2b8] sm:$0xff]  ;;  %s5800_s23 = smul.u32 48, %s5803_s28 }
  0x1d   : > { %906 = vmatprep.subr.mxu1 %v794_v9  ;;  %836 = vmatpush1.msra.mxu0 %v729_v10  ;;  %v725_v18 = vld [vmem:[%s5772_s5 + $0xb0] sm:$0xff]  ;;  %v724_v20 = vld [vmem:[%s5772_s5 + $0xa8] sm:$0xff]  ;;  %v723_v22 = vld [vmem:[%s5772_s5 + $0xa0] sm:$0xff] }
  0x1e   : > { %907 = vmatpush1.msra.mxu1 %v793_v11  ;;  %837 = vmatprep.subr.mxu0 %v728_v12  ;;  %v789_v19 = vld [vmem:[%s5772_s5 + $0x2b0] sm:$0xff]  ;;  %v788_v21 = vld [vmem:[%s5772_s5 + $0x2a8] sm:$0xff]  ;;  %v787_v23 = vld [vmem:[%s5772_s5 + $0x2a0] sm:$0xff] }
  0x1f   : > { %908 = vmatprep.subr.mxu1 %v792_v13  ;;  %838 = vmatpush1.msra.mxu0 %v727_v14  ;;  %v722_v24 = vld [vmem:[%s5772_s5 + $0x98] sm:$0xff]  ;;  %v721_v26 = vld [vmem:[%s5772_s5 + $0x90] sm:$0xff]  ;;  %v720_v28 = vld [vmem:[%s5772_s5 + $0x88] sm:$0xff] }
  0x20   : > { %909 = vmatpush1.msra.mxu1 %v791_v15  ;;  %839 = vmatprep.subr.mxu0 %v726_v16  ;;  %v786_v25 = vld [vmem:[%s5772_s5 + $0x298] sm:$0xff]  ;;  %v785_v27 = vld [vmem:[%s5772_s5 + $0x290] sm:$0xff]  ;;  %v784_v29 = vld [vmem:[%s5772_s5 + $0x288] sm:$0xff] }
  0x21   : > { %910 = vmatprep.subr.mxu1 %v790_v17  ;;  %840 = vmatpush1.msra.mxu0 %v725_v18  ;;  %v719_v30 = vld [vmem:[%s5772_s5 + $0x80] sm:$0xff]  ;;  %v718_v32 = vld [vmem:[%s5772_s5 + $0x78] sm:$0xff]  ;;  %v717_v34 = vld [vmem:[%s5772_s5 + $0x70] sm:$0xff] }
  0x22   : > { %911 = vmatpush1.msra.mxu1 %v789_v19  ;;  %841 = vmatprep.subr.mxu0 %v724_v20  ;;  %v783_v31 = vld [vmem:[%s5772_s5 + $0x280] sm:$0xff]  ;;  %v782_v33 = vld [vmem:[%s5772_s5 + $0x278] sm:$0xff]  ;;  %v781_v35 = vld [vmem:[%s5772_s5 + $0x270] sm:$0xff] }
  0x23   : > { %912 = vmatprep.subr.mxu1 %v788_v21  ;;  %842 = vmatpush1.msra.mxu0 %v723_v22  ;;  %v716_v36 = vld [vmem:[%s5772_s5 + $0x68] sm:$0xff]  ;;  %v715_v38 = vld [vmem:[%s5772_s5 + $0x60] sm:$0xff]  ;;  %v714_v40 = vld [vmem:[%s5772_s5 + $0x58] sm:$0xff] }
  0x24   : > { %913 = vmatpush1.msra.mxu1 %v787_v23  ;;  %843 = vmatprep.subr.mxu0 %v722_v24  ;;  %v780_v37 = vld [vmem:[%s5772_s5 + $0x268] sm:$0xff]  ;;  %v779_v39 = vld [vmem:[%s5772_s5 + $0x260] sm:$0xff]  ;;  %v778_v41 = vld [vmem:[%s5772_s5 + $0x258] sm:$0xff] }
  0x25   : > { %914 = vmatprep.subr.mxu1 %v786_v25  ;;  %844 = vmatpush1.msra.mxu0 %v721_v26  ;;  %v713_v42 = vld [vmem:[%s5772_s5 + $0x50] sm:$0xff]  ;;  %v712_v44 = vld [vmem:[%s5772_s5 + $0x48] sm:$0xff]  ;;  %v711_v46 = vld [vmem:[%s5772_s5 + $0x40] sm:$0xff] }
  0x26   : > { %915 = vmatpush1.msra.mxu1 %v785_v27  ;;  %845 = vmatprep.subr.mxu0 %v720_v28  ;;  %v777_v43 = vld [vmem:[%s5772_s5 + $0x250] sm:$0xff]  ;;  %v776_v45 = vld [vmem:[%s5772_s5 + $0x248] sm:$0xff]  ;;  %v775_v47 = vld [vmem:[%s5772_s5 + $0x240] sm:$0xff] }
  0x27   : > { %916 = vmatprep.subr.mxu1 %v784_v29  ;;  %846 = vmatpush1.msra.mxu0 %v719_v30  ;;  %v710_v48 = vld [vmem:[%s5772_s5 + $0x38] sm:$0xff]  ;;  %v709_v50 = vld [vmem:[%s5772_s5 + $0x30] sm:$0xff]  ;;  %v708_v52 = vld [vmem:[%s5772_s5 + $0x28] sm:$0xff] }
  0x28   : > { %917 = vmatpush1.msra.mxu1 %v783_v31  ;;  %847 = vmatprep.subr.mxu0 %v718_v32  ;;  %v774_v49 = vld [vmem:[%s5772_s5 + $0x238] sm:$0xff]  ;;  %v773_v51 = vld [vmem:[%s5772_s5 + $0x230] sm:$0xff]  ;;  %v772_v53 = vld [vmem:[%s5772_s5 + $0x228] sm:$0xff] }
  0x29   : > { %918 = vmatprep.subr.mxu1 %v782_v33  ;;  %848 = vmatpush1.msra.mxu0 %v717_v34  ;;  %v707_v54 = vld [vmem:[%s5772_s5 + $0x20] sm:$0xff]  ;;  %v706_v56 = vld [vmem:[%s5772_s5 + $0x18] sm:$0xff]  ;;  %v705_v58 = vld [vmem:[%s5772_s5 + $0x10] sm:$0xff] }
  0x2a   : > { %919 = vmatpush1.msra.mxu1 %v781_v35  ;;  %849 = vmatprep.subr.mxu0 %v716_v36  ;;  %v771_v55 = vld [vmem:[%s5772_s5 + $0x220] sm:$0xff]  ;;  %v770_v57 = vld [vmem:[%s5772_s5 + $0x218] sm:$0xff]  ;;  %v769_v59 = vld [vmem:[%s5772_s5 + $0x210] sm:$0xff] }
  0x2b   : > { %920 = vmatprep.subr.mxu1 %v780_v37  ;;  %850 = vmatpush1.msra.mxu0 %v715_v38  ;;  %v704_v60 = vld [vmem:[%s5772_s5 + $0x8] sm:$0xff]  ;;  %v703_v62 = vld [vmem:[%s5772_s5] sm:$0xff]  ;;  %v766_v0 = vld [vmem:[%s5772_s5 + $0x1f8] sm:$0xff] }
  0x2c   : > { %921 = vmatpush1.msra.mxu1 %v779_v39  ;;  %851 = vmatprep.subr.mxu0 %v714_v40  ;;  %v768_v61 = vld [vmem:[%s5772_s5 + $0x208] sm:$0xff]  ;;  %v767_v63 = vld [vmem:[%s5772_s5 + $0x200] sm:$0xff]  ;;  %v830_v1 = vld [vmem:[%s5772_s5 + $0x3f8] sm:$0xff] }
  0x2d   : > { %922 = vmatprep.subr.mxu1 %v778_v41  ;;  %852 = vmatpush1.msra.mxu0 %v713_v42  ;;  %v765_v2 = vld [vmem:[%s5772_s5 + $0x1f0] sm:$0xff]  ;;  %v764_v4 = vld [vmem:[%s5772_s5 + $0x1e8] sm:$0xff]  ;;  %v763_v6 = vld [vmem:[%s5772_s5 + $0x1e0] sm:$0xff] }
  0x2e   : > { %923 = vmatpush1.msra.mxu1 %v777_v43  ;;  %853 = vmatprep.subr.mxu0 %v712_v44  ;;  %v829_v3 = vld [vmem:[%s5772_s5 + $0x3f0] sm:$0xff]  ;;  %v828_v5 = vld [vmem:[%s5772_s5 + $0x3e8] sm:$0xff]  ;;  %v827_v7 = vld [vmem:[%s5772_s5 + $0x3e0] sm:$0xff] }
  0x2f   : > { %924 = vmatprep.subr.mxu1 %v776_v45  ;;  %854 = vmatpush1.msra.mxu0 %v711_v46  ;;  %v762_v8 = vld [vmem:[%s5772_s5 + $0x1d8] sm:$0xff]  ;;  %v761_v10 = vld [vmem:[%s5772_s5 + $0x1d0] sm:$0xff]  ;;  %v760_v12 = vld [vmem:[%s5772_s5 + $0x1c8] sm:$0xff] }
  0x30   : > { %925 = vmatpush1.msra.mxu1 %v775_v47  ;;  %855 = vmatprep.subr.mxu0 %v710_v48  ;;  %v826_v9 = vld [vmem:[%s5772_s5 + $0x3d8] sm:$0xff]  ;;  %v825_v11 = vld [vmem:[%s5772_s5 + $0x3d0] sm:$0xff]  ;;  %v824_v13 = vld [vmem:[%s5772_s5 + $0x3c8] sm:$0xff]  ;;  %v687_v48 = vlaneseq }
  0x31   : > { %926 = vmatprep.subr.mxu1 %v774_v49  ;;  %856 = vmatpush1.msra.mxu0 %v709_v50  ;;  %v759_v14 = vld [vmem:[%s5772_s5 + $0x1c0] sm:$0xff]  ;;  %v758_v16 = vld [vmem:[%s5772_s5 + $0x1b8] sm:$0xff]  ;;  %v757_v18 = vld [vmem:[%s5772_s5 + $0x1b0] sm:$0xff] }
  0x32   : > { %927 = vmatpush1.msra.mxu1 %v773_v51  ;;  %857 = vmatprep.subr.mxu0 %v708_v52  ;;  %v823_v15 = vld [vmem:[%s5772_s5 + $0x3c0] sm:$0xff]  ;;  %v822_v17 = vld [vmem:[%s5772_s5 + $0x3b8] sm:$0xff]  ;;  %v821_v19 = vld [vmem:[%s5772_s5 + $0x3b0] sm:$0xff] }
  0x33   : > { %928 = vmatprep.subr.mxu1 %v772_v53  ;;  %858 = vmatpush1.msra.mxu0 %v707_v54  ;;  %v756_v20 = vld [vmem:[%s5772_s5 + $0x1a8] sm:$0xff]  ;;  %v755_v22 = vld [vmem:[%s5772_s5 + $0x1a0] sm:$0xff]  ;;  %v754_v24 = vld [vmem:[%s5772_s5 + $0x198] sm:$0xff] }
  0x34   : > { %929 = vmatpush1.msra.mxu1 %v771_v55  ;;  %859 = vmatprep.subr.mxu0 %v706_v56  ;;  %v820_v21 = vld [vmem:[%s5772_s5 + $0x3a8] sm:$0xff]  ;;  %v819_v23 = vld [vmem:[%s5772_s5 + $0x3a0] sm:$0xff]  ;;  %v818_v25 = vld [vmem:[%s5772_s5 + $0x398] sm:$0xff] }
  0x35   : > { %930 = vmatprep.subr.mxu1 %v770_v57  ;;  %860 = vmatpush1.msra.mxu0 %v705_v58  ;;  %v3922_v26 = vld [vmem:[%s3901_s1 + $0x8] sm:$0xff]  ;;  %v753_v27 = vld [vmem:[%s5772_s5 + $0x190] sm:$0xff]  ;;  %v3932_v30 = vld [vmem:[%s3901_s1] sm:$0xff] }
  0x36   : > { %931 = vmatpush1.msra.mxu1 %v769_v59  ;;  %861 = vmatprep.subr.mxu0 %v704_v60  ;;  %v817_v28 = vld [vmem:[%s5772_s5 + $0x390] sm:$0xff]  ;;  %v666_v29 = vrot.slane %v3922_v26, 4  ;;  %v752_v31 = vld [vmem:[%s5772_s5 + $0x188] sm:$0xff]  ;;  %v660_v33 = vrot.slane %v3932_v30, 4  ;;  %v751_v34 = vld [vmem:[%s5772_s5 + $0x180] sm:$0xff] }
  0x37   : > { %932 = vmatprep.subr.mxu1 %v768_v61  ;;  %862 = vmatpush1.msra.mxu0 %v703_v62  ;;  %v816_v32 = vld [vmem:[%s5772_s5 + $0x388] sm:$0xff]  ;;  %v815_v35 = vld [vmem:[%s5772_s5 + $0x380] sm:$0xff]  ;;  %v750_v38 = vld [vmem:[%s5772_s5 + $0x178] sm:$0xff] }
  0x38   : > { %933 = vmatpush1.msra.mxu1 %v767_v63  ;;  %863 = vmatprep.subr.mxu0 %v766_v0  ;;  %v667_v36 = vadd.f32 %v666_v29, %v3922_v26  ;;  %v682_v37 = vmax.f32 %v3922_v26, %v666_v29  ;;  %v814_v39 = vld [vmem:[%s5772_s5 + $0x378] sm:$0xff]  ;;  %v661_v40 = vadd.f32 %v660_v33, %v3932_v30  ;;  %v749_v42 = vld [vmem:[%s5772_s5 + $0x170] sm:$0xff]  ;;  %v748_v46 = vld [vmem:[%s5772_s5 + $0x168] sm:$0xff]  ;;  %v688_v0 = vshrl.u32 %v687_v48, 7 }
  0x39   : > { %934 = vmatprep.subr.mxu1 %v830_v1  ;;  %864 = vmatpush2.msra.mxu0 %v765_v2  ;;  %v676_v41 = vmax.f32 %v3932_v30, %v660_v33  ;;  %v813_v43 = vld [vmem:[%s5772_s5 + $0x370] sm:$0xff]  ;;  %v812_v47 = vld [vmem:[%s5772_s5 + $0x368] sm:$0xff]  ;;  %v747_v51 = vld [vmem:[%s5772_s5 + $0x160] sm:$0xff] }
  0x3a   : > { %935 = vmatpush2.msra.mxu1 %v829_v3  ;;  %865 = vmatprep.subr.mxu0 %v764_v4  ;;  %v668_v44 = vrot.slane %v667_v36, 2  ;;  %v683_v45 = vrot.slane %v682_v37, 2  ;;  %v662_v49 = vrot.slane %v661_v40, 2  ;;  %v811_v52 = vld [vmem:[%s5772_s5 + $0x360] sm:$0xff]  ;;  %v746_v55 = vld [vmem:[%s5772_s5 + $0x158] sm:$0xff]  ;;  %v745_v59 = vld [vmem:[%s5772_s5 + $0x150] sm:$0xff] }
  0x3b   : > { %936 = vmatprep.subr.mxu1 %v828_v5  ;;  %866 = vmatpush2.msra.mxu0 %v763_v6  ;;  %v677_v50 = vrot.slane %v676_v41, 2  ;;  %v810_v56 = vld [vmem:[%s5772_s5 + $0x358] sm:$0xff]  ;;  %v809_v60 = vld [vmem:[%s5772_s5 + $0x350] sm:$0xff]  ;;  %v744_v62 = vld [vmem:[%s5772_s5 + $0x148] sm:$0xff] }
  0x3c   : > { %937 = vmatpush2.msra.mxu1 %v827_v7  ;;  %867 = vmatprep.subr.mxu0 %v762_v8  ;;  %v669_v53 = vadd.f32 %v668_v44, %v667_v36  ;;  %v684_v54 = vmax.f32 %v682_v37, %v683_v45  ;;  %v663_v57 = vadd.f32 %v662_v49, %v661_v40  ;;  %v808_v63 = vld [vmem:[%s5772_s5 + $0x348] sm:$0xff]  ;;  %v743_v2 = vld [vmem:[%s5772_s5 + $0x140] sm:$0xff]  ;;  %v742_v6 = vld [vmem:[%s5772_s5 + $0x138] sm:$0xff]  ;;  %v3528_v37 = vmov 0.0  }
  0x3d   : > { %938 = vmatprep.subr.mxu1 %v826_v9  ;;  %868 = vmatpush2.msra.mxu0 %v761_v10  ;;  %v678_v58 = vmax.f32 %v676_v41, %v677_v50  ;;  %v807_v3 = vld [vmem:[%s5772_s5 + $0x340] sm:$0xff]  ;;  %v806_v7 = vld [vmem:[%s5772_s5 + $0x338] sm:$0xff]  ;;  %v741_v10 = vld [vmem:[%s5772_s5 + $0x130] sm:$0xff] }
  0x3e   : > { %939 = vmatpush2.msra.mxu1 %v825_v11  ;;  %869 = vmatprep.subr.mxu0 %v760_v12  ;;  %v670_v61 = vrot.slane %v669_v53, 1  ;;  %v664_v1 = vrot.slane %v663_v57, 1  ;;  %v685_v5 = vrot.slane %v684_v54, 1  ;;  %v805_v11 = vld [vmem:[%s5772_s5 + $0x330] sm:$0xff]  ;;  %v740_v12 = vld [vmem:[%s5772_s5 + $0x128] sm:$0xff]  ;;  %v735_v29 = vld [vmem:[%s5772_s5 + $0x100] sm:$0xff] }
  0x3f   : > { %940 = vmatprep.subr.mxu1 %v824_v13  ;;  %870 = vmatpush2.msra.mxu0 %v759_v14  ;;  %v679_v9 = vrot.slane %v678_v58, 1  ;;  %v804_v13 = vld [vmem:[%s5772_s5 + $0x328] sm:$0xff]  ;;  %v1297_v36 = vld [vmem:[%s5773_s6 + $0xf0] sm:$0xff]  ;;  %v1294_v40 = vld [vmem:[%s5773_s6 + $0xd8] sm:$0xff] }
  0x40   : > { %941 = vmatpush2.msra.mxu1 %v823_v15  ;;  %871 = vmatprep.subr.mxu0 %v758_v16  ;;  %v671_v4 = vadd.f32 %v670_v61, %v669_v53  ;;  %v665_v8 = vadd.f32 %v664_v1, %v663_v57  ;;  %v4017_v15 = vsub.s32 0, %v688_v0  ;;  %v739_v16 = vld [vmem:[%s5772_s5 + $0x120] sm:$0xff]  ;;  %v1293_v41 = vld [vmem:[%s5773_s6 + $0xd0] sm:$0xff]  ;;  %v1290_v44 = vld [vmem:[%s5773_s6 + $0xb8] sm:$0xff] }
  0x41   : > { %942 = vmatprep.subr.mxu1 %v822_v17  ;;  %872 = vmatpush2.msra.mxu0 %v757_v18  ;;  %v803_v17 = vld [vmem:[%s5772_s5 + $0x320] sm:$0xff]  ;;  %v686_v18 = vmax.f32 %v684_v54, %v685_v5  ;;  %v1289_v45 = vld [vmem:[%s5773_s6 + $0xb0] sm:$0xff]  ;;  %v1286_v48 = vld [vmem:[%s5773_s6 + $0x98] sm:$0xff] }
  0x42   : > { %943 = vmatpush2.msra.mxu1 %v821_v19  ;;  %873 = vmatprep.subr.mxu0 %v756_v20  ;;  %v674_v14 = vmul.f32 0.125, %v671_v4  ;;  %v738_v19 = vld [vmem:[%s5772_s5 + $0x118] sm:$0xff]  ;;  %v1285_v49 = vld [vmem:[%s5773_s6 + $0x90] sm:$0xff]  ;;  %v1284_v50 = vld [vmem:[%s5773_s6 + $0x88] sm:$0xff] }
  0x43   : > { %944 = vmatprep.subr.mxu1 %v820_v21  ;;  %874 = vmatpush2.msra.mxu0 %v755_v22  ;;  %v802_v20 = vld [vmem:[%s5772_s5 + $0x318] sm:$0xff]  ;;  %v673_v21 = vmul.f32 0.125, %v665_v8  ;;  %v680_v22 = vmax.f32 %v678_v58, %v679_v9  ;;  %v1281_v53 = vld [vmem:[%s5773_s6 + $0x70] sm:$0xff]  ;;  %v1280_v54 = vld [vmem:[%s5773_s6 + $0x68] sm:$0xff] }
  0x44   : > { %945 = vmatpush2.msra.mxu1 %v819_v23  ;;  %875 = vmatprep.subr.mxu0 %v754_v24  ;;  %v737_v23 = vld [vmem:[%s5772_s5 + $0x110] sm:$0xff]  ;;  %v1276_v58 = vld [vmem:[%s5773_s6 + $0x48] sm:$0xff]  ;;  %v1270_v0 = vld [vmem:[%s5773_s6 + $0x18] sm:$0xff] }
  0x45   : > { %946 = vmatprep.subr.mxu1 %v818_v25  ;;  %876 = vmatpush2.msra.mxu0 %v753_v27  ;;  %v801_v24 = vld [vmem:[%s5772_s5 + $0x310] sm:$0xff]  ;;  %v736_v25 = vld [vmem:[%s5772_s5 + $0x108] sm:$0xff]  ;;  %v690_v33 = vrot.slane %v673_v21, %v4017_v15  ;;  %v1330_v4 = vld [vmem:[%s5773_s6 + $0x1f8] sm:$0xff] }
  0x46   : > { %947 = vmatpush2.msra.mxu1 %v817_v28  ;;  %877 = vmatprep.subr.mxu0 %v752_v31  ;;  %v800_v27 = vld [vmem:[%s5772_s5 + $0x308] sm:$0xff]  ;;  %v694_v28 = vrot.slane %v674_v14, %v4017_v15  ;;  %v702_v31 = vrot.slane %v686_v18, %v4017_v15  ;;  %v1277_v57 = vld [vmem:[%s5773_s6 + $0x50] sm:$0xff]  ;;  %v1326_v8 = vld [vmem:[%s5773_s6 + $0x1d8] sm:$0xff] }
  0x47   : > { %948 = vmatprep.subr.mxu1 %v816_v32  ;;  %878 = vmatpush2.msra.mxu0 %v751_v34  ;;  %v799_v32 = vld [vmem:[%s5772_s5 + $0x300] sm:$0xff]  ;;  %v698_v34 = vrot.slane %v680_v22, %v4017_v15  ;;  %v1273_v61 = vld [vmem:[%s5773_s6 + $0x30] sm:$0xff]  ;;  %v1320_v14 = vld [vmem:[%s5773_s6 + $0x1a8] sm:$0xff] }
  0x48   : > { %949 = vmatpush2.msra.mxu1 %v815_v35  ;;  %879 = vmatprep.subr.mxu0 %v750_v38  ;;  %v1298_v35 = vld [vmem:[%s5773_s6 + $0xf8] sm:$0xff]  ;;  %v1296_v38 = vld [vmem:[%s5773_s6 + $0xe8] sm:$0xff]  ;;  %v1269_v1 = vld [vmem:[%s5773_s6 + $0x10] sm:$0xff] }
  0x49   : > { %950 = vmatprep.subr.mxu1 %v814_v39  ;;  %880 = vmatpush2.msra.mxu0 %v749_v42  ;;  %v1295_v39 = vld [vmem:[%s5773_s6 + $0xe0] sm:$0xff]  ;;  %v1292_v42 = vld [vmem:[%s5773_s6 + $0xc8] sm:$0xff]  ;;  %v1329_v5 = vld [vmem:[%s5773_s6 + $0x1f0] sm:$0xff] }
  0x4a   : > { %951 = vmatpush2.msra.mxu1 %v813_v43  ;;  %881 = vmatprep.subr.mxu0 %v748_v46  ;;  %v1291_v43 = vld [vmem:[%s5773_s6 + $0xc0] sm:$0xff]  ;;  %v1288_v46 = vld [vmem:[%s5773_s6 + $0xa8] sm:$0xff]  ;;  %v1325_v9 = vld [vmem:[%s5773_s6 + $0x1d0] sm:$0xff] }
  0x4b   : > { %952 = vmatprep.subr.mxu1 %v812_v47  ;;  %882 = vmatpush2.msra.mxu0 %v747_v51  ;;  %v1287_v47 = vld [vmem:[%s5773_s6 + $0xa0] sm:$0xff]  ;;  %v1317_v18 = vld [vmem:[%s5773_s6 + $0x190] sm:$0xff]  ;;  %v4207_v21 = vld [vmem:[%s4195_s29 + $0x18] sm:$0xff] }
  0x4c   : > { %953 = vmatpush2.msra.mxu1 %v811_v52  ;;  %883 = vmatprep.subr.mxu0 %v746_v55  ;;  %v1283_v51 = vld [vmem:[%s5773_s6 + $0x80] sm:$0xff]  ;;  %v1282_v52 = vld [vmem:[%s5773_s6 + $0x78] sm:$0xff] }
  0x4d   : > { %954 = vmatprep.subr.mxu1 %v810_v56  ;;  %884 = vmatpush2.msra.mxu0 %v745_v59  ;;  %v1279_v55 = vld [vmem:[%s5773_s6 + $0x60] sm:$0xff]  ;;  %v1278_v56 = vld [vmem:[%s5773_s6 + $0x58] sm:$0xff] }
  0x4e   : > { %955 = vmatpush2.msra.mxu1 %v809_v60  ;;  %885 = vmatprep.subr.mxu0 %v744_v62  ;;  %v1275_v59 = vld [vmem:[%s5773_s6 + $0x40] sm:$0xff]  ;;  %v1274_v60 = vld [vmem:[%s5773_s6 + $0x38] sm:$0xff]  ;;  %v1272_v62 = vld [vmem:[%s5773_s6 + $0x28] sm:$0xff] }
  0x4f   : > { %956 = vmatprep.subr.mxu1 %v808_v63  ;;  %886 = vmatpush2.msra.mxu0 %v743_v2  ;;  %v1271_v63 = vld [vmem:[%s5773_s6 + $0x20] sm:$0xff]  ;;  %v1268_v2 = vld [vmem:[%s5773_s6 + $0x8] sm:$0xff] }
  0x50   : > { %957 = vmatpush2.msra.mxu1 %v807_v3  ;;  %887 = vmatprep.subr.mxu0 %v742_v6  ;;  %v1267_v3 = vld [vmem:[%s5773_s6] sm:$0xff]  ;;  %v1328_v6 = vld [vmem:[%s5773_s6 + $0x1e8] sm:$0xff] }
  0x51   : > { %958 = vmatprep.subr.mxu1 %v806_v7  ;;  %888 = vmatpush2.msra.mxu0 %v741_v10  ;;  %v1327_v7 = vld [vmem:[%s5773_s6 + $0x1e0] sm:$0xff]  ;;  %v1324_v10 = vld [vmem:[%s5773_s6 + $0x1c8] sm:$0xff] }
  0x52   : > { %959 = vmatpush2.msra.mxu1 %v805_v11  ;;  %889 = vmatprep.subr.mxu0 %v740_v12  ;;  %v1323_v11 = vld [vmem:[%s5773_s6 + $0x1c0] sm:$0xff]  ;;  %v1322_v12 = vld [vmem:[%s5773_s6 + $0x1b8] sm:$0xff] }
  0x53   : > { %960 = vmatprep.subr.mxu1 %v804_v13  ;;  %890 = vmatpush2.msra.mxu0 %v739_v16  ;;  %v1321_v13 = vld [vmem:[%s5773_s6 + $0x1b0] sm:$0xff]  ;;  %v1319_v16 = vld [vmem:[%s5773_s6 + $0x1a0] sm:$0xff] }
  0x54   : > { %961 = vmatpush2.msra.mxu1 %v803_v17  ;;  %891 = vmatprep.subr.mxu0 %v738_v19  ;;  %v1318_v17 = vld [vmem:[%s5773_s6 + $0x198] sm:$0xff]  ;;  %v4201_v19 = vld [vmem:[%s4195_s29 + $0x8] sm:$0xff]  ;;  %v1315_v22 = vld [vmem:[%s5773_s6 + $0x180] sm:$0xff] }
  0x55   : > { %962 = vmatprep.subr.mxu1 %v802_v20  ;;  %892 = vmatpush2.msra.mxu0 %v737_v23  ;;  %v1316_v20 = vld [vmem:[%s5773_s6 + $0x188] sm:$0xff]  ;;  %v1227_v23 = vadd.f32 %v4207_v21, %v4201_v19 }
  0x56   : > { %963 = vmatpush2.msra.mxu1 %v801_v24  ;;  %893 = vmatprep.subr.mxu0 %v736_v25  ;;  %v4215_v24 = vld [vmem:[%s4195_s29] sm:$0xff]  ;;  %v1314_v25 = vld [vmem:[%s5773_s6 + $0x178] sm:$0xff] }
  0x57   : > { %964 = vmatprep.subr.mxu1 %v800_v27  ;;  %894 = vmatpush2.msra.mxu0 %v735_v29  ;;  %v1313_v27 = vld [vmem:[%s5773_s6 + $0x170] sm:$0xff] }
  0x58   : > { %895 = vmatprep.mubr.f32.mxu0 %v694_v28  ;;  %965 = vmatpush2.msra.mxu1 %v799_v32  ;;  %v1228_v28 = vrot.slane %v1227_v23, 4  ;;  %v4224_v29 = vld [vmem:[%s4195_s29 + $0x10] sm:$0xff] }
  0x59   : > { %966 = vmatprep.mubr.f32.mxu1 %v702_v31  ;;  %896 = vmatmul.mubr.f32.vlgmr.msra.gmra.mxu0 %v690_v33  ;;  %v1312_v31 = vld [vmem:[%s5773_s6 + $0x168] sm:$0xff]  ;;  %v1220_v32 = vadd.f32 %v4224_v29, %v4215_v24  ;;  %v1311_v33 = vld [vmem:[%s5773_s6 + $0x160] sm:$0xff] }
  0x5a   : > { %967 = vmatmul.mubr.f32.vlgmr.msra.gmra.mxu1 %v698_v34  ;;  %1395 = vmatprep.subr.mxu1 %v1298_v35  ;;  %v1229_v34 = vadd.f32 %v1228_v28, %v1227_v23  ;;  %v1310_v35 = vld [vmem:[%s5773_s6 + $0x158] sm:$0xff] }
  0x5b   : > { %1105 = vmatprep.mubr.f32.mxu0 %v3528_v37  ;;  %1396 = vmatpush1.msra.mxu1 %v1297_v36  ;;  %v1221_v36 = vrot.slane %v1220_v32, 4  ;;  %v1362_v28 = vld [vmem:[%s5773_s6 + $0x2f8] sm:$0xff] }
  0x5c   : > { %1397 = vmatprep.subr.mxu1 %v1296_v38  ;;  %v1309_v38 = vld [vmem:[%s5773_s6 + $0x150] sm:$0xff] }
  0x5d   : > { %1398 = vmatpush1.msra.mxu1 %v1295_v39  ;;  %v1230_v39 = vrot.slane %v1229_v34, 2 }
  0x5e   : > { %1399 = vmatprep.subr.mxu1 %v1294_v40  ;;  %v1308_v40 = vld [vmem:[%s5773_s6 + $0x148] sm:$0xff] }
  0x5f   : > { %1400 = vmatpush1.msra.mxu1 %v1293_v41  ;;  %v1222_v41 = vadd.f32 %v1221_v36, %v1220_v32  ;;  %v1361_v32 = vld [vmem:[%s5773_s6 + $0x2f0] sm:$0xff]  ;;  %v1356_v36 = vld [vmem:[%s5773_s6 + $0x2c8] sm:$0xff] }
  0x60   : > { %1401 = vmatprep.subr.mxu1 %v1292_v42  ;;  %v1307_v42 = vld [vmem:[%s5773_s6 + $0x140] sm:$0xff] }
  0x61   : > { %1402 = vmatpush1.msra.mxu1 %v1291_v43  ;;  %v1231_v43 = vadd.f32 %v1230_v39, %v1229_v34  ;;  %v1001_v34 = vld [vmem:[%s5776_s9 + $0x8] sm:$0xff]  ;;  %v1354_v39 = vld [vmem:[%s5773_s6 + $0x2b8] sm:$0xff] }
  0x62   : > { %1403 = vmatprep.subr.mxu1 %v1290_v44  ;;  %v1306_v44 = vld [vmem:[%s5773_s6 + $0x138] sm:$0xff] }
  0x63   : > { %1404 = vmatpush1.msra.mxu1 %v1289_v45  ;;  %v1223_v45 = vrot.slane %v1222_v41, 2 }
  0x64   : > { %1405 = vmatprep.subr.mxu1 %v1288_v46  ;;  %v1305_v46 = vld [vmem:[%s5773_s6 + $0x130] sm:$0xff] }
  0x65   : > { %1406 = vmatpush1.msra.mxu1 %v1287_v47  ;;  %v1232_v47 = vrot.slane %v1231_v43, 1 }
  0x66   : > { %1407 = vmatprep.subr.mxu1 %v1286_v48  ;;  %v1304_v48 = vld [vmem:[%s5773_s6 + $0x128] sm:$0xff] }
  0x67   : > { %1408 = vmatpush1.msra.mxu1 %v1285_v49  ;;  %v1224_v49 = vadd.f32 %v1223_v45, %v1222_v41  ;;  %v1244_v41 = vmax.f32 %v4201_v19, %v4207_v21  ;;  %v1350_v45 = vld [vmem:[%s5773_s6 + $0x298] sm:$0xff] }
  0x68   : > { %1409 = vmatprep.subr.mxu1 %v1284_v50  ;;  %v1303_v50 = vld [vmem:[%s5773_s6 + $0x120] sm:$0xff] }
  0x69   : > { %1410 = vmatpush1.msra.mxu1 %v1283_v51  ;;  %v1233_v51 = vadd.f32 %v1232_v47, %v1231_v43  ;;  %v1352_v43 = vld [vmem:[%s5773_s6 + $0x2a8] sm:$0xff]  ;;  %v1245_v47 = vrot.slane %v1244_v41, 4 }
  0x6a   : > { %1411 = vmatprep.subr.mxu1 %v1282_v52  ;;  %v1302_v52 = vld [vmem:[%s5773_s6 + $0x118] sm:$0xff] }
  0x6b   : > { %1412 = vmatpush1.msra.mxu1 %v1281_v53  ;;  %v1225_v53 = vrot.slane %v1224_v49, 1 }
  0x6c   : > { %1413 = vmatprep.subr.mxu1 %v1280_v54  ;;  %v1301_v54 = vld [vmem:[%s5773_s6 + $0x110] sm:$0xff] }
  0x6d   : > { %1414 = vmatpush1.msra.mxu1 %v1279_v55  ;;  %v1236_v55 = vmul.f32 0.0625, %v1233_v51  ;;  %v1346_v51 = vld [vmem:[%s5773_s6 + $0x278] sm:$0xff] }
  0x6e   : > { %1415 = vmatprep.subr.mxu1 %v1278_v56  ;;  %v1300_v56 = vld [vmem:[%s5773_s6 + $0x108] sm:$0xff] }
  0x6f   : > { %1416 = vmatpush1.msra.mxu1 %v1277_v57  ;;  %v1226_v57 = vadd.f32 %v1225_v53, %v1224_v49  ;;  %v1348_v49 = vld [vmem:[%s5773_s6 + $0x288] sm:$0xff]  ;;  %v1246_v53 = vmax.f32 %v1244_v41, %v1245_v47  ;;  %v1374_v47 = vld [vmem:[%s5773_s6 + $0x358] sm:$0xff] }
  0x70   : > { %1417 = vmatprep.subr.mxu1 %v1276_v58  ;;  %v1299_v58 = vld [vmem:[%s5773_s6 + $0x100] sm:$0xff] }
  0x71   : > { %1418 = vmatpush1.msra.mxu1 %v1275_v59  ;;  %v1258_v59 = vrot.slane %v1236_v55, %v4017_v15  ;;  %v1344_v55 = vld [vmem:[%s5773_s6 + $0x268] sm:$0xff] }
  0x72   : > { %1419 = vmatprep.subr.mxu1 %v1274_v60  ;;  %v1235_v60 = vmul.f32 0.0625, %v1226_v57  ;;  %v1342_v57 = vld [vmem:[%s5773_s6 + $0x258] sm:$0xff] }
  0x73   : > { %1420 = vmatpush1.msra.mxu1 %v1273_v61  ;;  %1459 = vmatprep.mubr.f32.mxu1 %v1258_v59  ;;  %v1247_v59 = vrot.slane %v1246_v53, 2 }
  0x74   : > { %1421 = vmatprep.subr.mxu1 %v1272_v62  ;;  %v1254_v61 = vrot.slane %v1235_v60, %v4017_v15  ;;  %v1341_v60 = vld [vmem:[%s5773_s6 + $0x250] sm:$0xff] }
  0x75   : > { %1422 = vmatpush1.msra.mxu1 %v1271_v63 }
  0x76   : > { %1423 = vmatprep.subr.mxu1 %v1270_v0  ;;  %v4273_v0 = vstv %s647_s19  ;;  %s5786_s19 = smul.u32 48, %s5803_s28 }
  0x77   : > { %1424 = vmatpush1.msra.mxu1 %v1269_v1 }
  0x78   : > { %1425 = vmatprep.subr.mxu1 %v1268_v2  ;;  %s4663_s20 = scalar_lea.vmem %s5797_s3, %s5786_s19  ;;  %s5152_s19 = scalar_lea.vmem %s5799_s4, %s5787_s25 }
  0x79   : > { %1426 = vmatpush1.msra.mxu1 %v1267_v3  ;;  %s5275_s3 = scalar_lea.vmem %s5783_s16, %s5800_s23 }
  0x7a   : > { %1427 = vmatprep.subr.mxu1 %v1330_v4 }
  0x7b   : > { %1428 = vmatpush2.msra.mxu1 %v1329_v5 }
  0x7c   : > { %1429 = vmatprep.subr.mxu1 %v1328_v6 }
  0x7d   : > { %1430 = vmatpush2.msra.mxu1 %v1327_v7 }
  0x7e   : > { %1431 = vmatprep.subr.mxu1 %v1326_v8 }
  0x7f   : > { %1432 = vmatpush2.msra.mxu1 %v1325_v9 }
  0x80   : > { %1433 = vmatprep.subr.mxu1 %v1324_v10 }
  0x81   : > { %1434 = vmatpush2.msra.mxu1 %v1323_v11 }
  0x82   : > { %1435 = vmatprep.subr.mxu1 %v1322_v12 }
  0x83   : > { %1436 = vmatpush2.msra.mxu1 %v1321_v13 }
  0x84   : > { %1437 = vmatprep.subr.mxu1 %v1320_v14 }
  0x85   : > { %1438 = vmatpush2.msra.mxu1 %v1319_v16 }
  0x86   : > { %1439 = vmatprep.subr.mxu1 %v1318_v17 }
  0x87   : > { %1440 = vmatpush2.msra.mxu1 %v1317_v18 }
  0x88   : > { %1441 = vmatprep.subr.mxu1 %v1316_v20 }
  0x89   : > { %1442 = vmatpush2.msra.mxu1 %v1315_v22 }
  0x8a   : > { %1443 = vmatprep.subr.mxu1 %v1314_v25 }
  0x8b   : > { %1444 = vmatpush2.msra.mxu1 %v1313_v27 }
  0x8c   : > { %1445 = vmatprep.subr.mxu1 %v1312_v31  ;;  %v1000_v31 = vld [vmem:[%s5776_s9] sm:$0xff] }
  0x8d   : > { %1446 = vmatpush2.msra.mxu1 %v1311_v33  ;;  %v1358_v33 = vld [vmem:[%s5773_s6 + $0x2d8] sm:$0xff] }
  0x8e   : > { %1447 = vmatprep.subr.mxu1 %v1310_v35  ;;  %v1357_v35 = vld [vmem:[%s5773_s6 + $0x2d0] sm:$0xff] }
  0x8f   : > { %1448 = vmatpush2.msra.mxu1 %v1309_v38  ;;  %v1355_v38 = vld [vmem:[%s5773_s6 + $0x2c0] sm:$0xff] }
  0x90   : > { %1449 = vmatprep.subr.mxu1 %v1308_v40  ;;  %v1002_v40 = vld [vmem:[%s5776_s9 + $0x10] sm:$0xff] }
  0x91   : > { %1450 = vmatpush2.msra.mxu1 %v1307_v42  ;;  %v1353_v42 = vld [vmem:[%s5773_s6 + $0x2b0] sm:$0xff] }
  0x92   : > { %1451 = vmatprep.subr.mxu1 %v1306_v44  ;;  %v1351_v44 = vld [vmem:[%s5773_s6 + $0x2a0] sm:$0xff] }
  0x93   : > { %1452 = vmatpush2.msra.mxu1 %v1305_v46  ;;  %v1003_v46 = vld [vmem:[%s5776_s9 + $0x18] sm:$0xff] }
  0x94   : > { %1453 = vmatprep.subr.mxu1 %v1304_v48  ;;  %v1349_v48 = vld [vmem:[%s5773_s6 + $0x290] sm:$0xff] }
  0x95   : > { %1454 = vmatpush2.msra.mxu1 %v1303_v50  ;;  %v1347_v50 = vld [vmem:[%s5773_s6 + $0x280] sm:$0xff] }
  0x96   : > { %1455 = vmatprep.subr.mxu1 %v1302_v52  ;;  %v1004_v52 = vld [vmem:[%s5776_s9 + $0x20] sm:$0xff] }
  0x97   : > { %1456 = vmatpush2.msra.mxu1 %v1301_v54  ;;  %v1345_v54 = vld [vmem:[%s5773_s6 + $0x270] sm:$0xff] }
  0x98   : > { %1457 = vmatprep.subr.mxu1 %v1300_v56  ;;  %v1343_v56 = vld [vmem:[%s5773_s6 + $0x260] sm:$0xff] }
  0x99   : > { %1458 = vmatpush2.msra.mxu1 %v1299_v58  ;;  %v1005_v58 = vld [vmem:[%s5776_s9 + $0x28] sm:$0xff] }
  0x9a   : > { %1460 = vmatmul.mubr.f32.vlgmr.msra.gmra.mxu1 %v1254_v61  ;;  %v1340_v61 = vld [vmem:[%s5773_s6 + $0x248] sm:$0xff] }
  0x9b   : > { %1672 = vmatprep.mubr.f32.mxu1 %v3528_v37 }
 0x119   : > { %v897_v62 = vpop.f32.mrf.mxu0 }
 0x11a   : > { %v968_v63 = vpop.f32.mrf.mxu1 }
 0x11b   : > { %v969_v1 = vadd.f32 %v968_v63, %v897_v62  ;;  %v899_v2 = vpop.f32.mrf.mxu0  ;;  %v1339_v62 = vld [vmem:[%s5773_s6 + $0x240] sm:$0xff]  ;;  %v1338_v63 = vld [vmem:[%s5773_s6 + $0x238] sm:$0xff] }
 0x11c   : > { %v970_v3 = vpop.f32.mrf.mxu1 }
 0x11d   : > { %v974_v4 = vadd.f32 %v4273_v0, %v969_v1  ;;  %v971_v5 = vadd.f32 %v970_v3, %v899_v2  ;;  %v1006_v1 = vld [vmem:[%s5776_s9 + $0x30] sm:$0xff]  ;;  %v1248_v2 = vmax.f32 %v1246_v53, %v1247_v59  ;;  %v1364_v59 = vld [vmem:[%s5773_s6 + $0x308] sm:$0xff] }
 0x11e   : > { %v1337_v3 = vld [vmem:[%s5773_s6 + $0x230] sm:$0xff] }
 0x11f   : > { %v976_v6 = vsub.f32 0.0, %v974_v4  ;;  %v975_v7 = vadd.f32 %v4273_v0, %v971_v5  ;;  %v1336_v4 = vld [vmem:[%s5773_s6 + $0x228] sm:$0xff]  ;;  %v1335_v5 = vld [vmem:[%s5773_s6 + $0x220] sm:$0xff]  ;;  %v1369_v53 = vld [vmem:[%s5773_s6 + $0x330] sm:$0xff] }
 0x121   : > { %v978_v8 = vmul.f32 1.442695, %v976_v6  ;;  %v977_v9 = vsub.f32 0.0, %v975_v7  ;;  %v1334_v6 = vld [vmem:[%s5773_s6 + $0x218] sm:$0xff] }
 0x122   : > { %v1007_v7 = vld [vmem:[%s5776_s9 + $0x38] sm:$0xff] }
 0x123   : > { %3435 = vpow2.f32 %v978_v8  ;;  %v980_v10 = vmul.f32 1.442695, %v977_v9  ;;  %v1249_v8 = vrot.slane %v1248_v2, 1  ;;  %v1333_v9 = vld [vmem:[%s5773_s6 + $0x210] sm:$0xff] }
 0x125   : > { %3437 = vpow2.f32 %v980_v10  ;;  %v1332_v10 = vld [vmem:[%s5773_s6 + $0x208] sm:$0xff] }
 0x130   : > { %v3436_v11 = vpop.eup %3435 }
 0x131   : > { %v982_v12 = vadd.f32 1.0, %v3436_v11  ;;  %v1331_v11 = vld [vmem:[%s5773_s6 + $0x200] sm:$0xff] }
 0x132   : > { %v3438_v13 = vpop.eup %3437 }
 0x133   : > { %3439 = vrcp.f32 %v982_v12  ;;  %v983_v14 = vadd.f32 1.0, %v3438_v13  ;;  %v1394_v12 = vld [vmem:[%s5773_s6 + $0x3f8] sm:$0xff]  ;;  %v1008_v13 = vld [vmem:[%s5776_s9 + $0x40] sm:$0xff] }
 0x135   : > { %3441 = vrcp.f32 %v983_v14  ;;  %v1250_v14 = vmax.f32 %v1248_v2, %v1249_v8  ;;  %v1868_v2 = vld [vmem:[%s5774_s7 + $0xe0] sm:$0xff]  ;;  %v1862_v8 = vld [vmem:[%s5774_s7 + $0xb0] sm:$0xff] }
 0x140   : > { %v3440_v16 = vpop.eup %3439 }
 0x141   : > { %v986_v17 = vadd.f32 1.0, %v3440_v16  ;;  %v1393_v16 = vld [vmem:[%s5773_s6 + $0x3f0] sm:$0xff] }
 0x142   : > { %v3442_v18 = vpop.eup %3441 }
 0x143   : > { %v987_v20 = vadd.f32 1.0, %v3442_v18  ;;  %v991_v22 = vrot.slane %v986_v17, %v4017_v15  ;;  %v1392_v17 = vld [vmem:[%s5773_s6 + $0x3e8] sm:$0xff]  ;;  %v1391_v18 = vld [vmem:[%s5773_s6 + $0x3e0] sm:$0xff] }
 0x145   : > { %v995_v23 = vrot.slane %v987_v20, %v4017_v15  ;;  %v996_v25 = vmul.f32 %v991_v22, %v3932_v30  ;;  %v1359_v30 = vld [vmem:[%s5773_s6 + $0x2e0] sm:$0xff]  ;;  %v1237_v20 = vmax.f32 %v4215_v24, %v4224_v29  ;;  %v1390_v22 = vld [vmem:[%s5773_s6 + $0x3d8] sm:$0xff] }
 0x147   : > { %v997_v27 = vmul.f32 %v995_v23, %v3922_v26  ;;  %998 = vst [vmem:[%s4283_s22] sm:$0xff] %v996_v25  ;;  %v1360_v26 = vld [vmem:[%s5773_s6 + $0x2e8] sm:$0xff] }
 0x148   : > { %v1009_v23 = vld [vmem:[%s5776_s9 + $0x48] sm:$0xff] }
 0x149   : > { %999 = vst [vmem:[%s4283_s22 + $0x8] sm:$0xff] %v997_v27  ;;  %1071 = vmatprep.subr.mxu0 %v997_v27  ;;  %v1389_v27 = vld [vmem:[%s5773_s6 + $0x3d0] sm:$0xff] }
 0x14a   : > { %1072 = vmatpush1.msra.mxu0 %v996_v25  ;;  %v1266_v25 = vrot.slane %v1250_v14, %v4017_v15  ;;  %v1856_v14 = vld [vmem:[%s5774_s7 + $0x80] sm:$0xff] }
 0x14b   : > { %1466 = vmatprep.subr.mxu0 %v1362_v28  ;;  %3366 = vmatmul.mubr.msk.f32.vlgmr.msra.gmra.mxu0 %vm1010_vm0, %v1000_v31  ;;  %v1388_v28 = vld [vmem:[%s5773_s6 + $0x3c8] sm:$0xff]  ;;  %v1387_v31 = vld [vmem:[%s5773_s6 + $0x3c0] sm:$0xff] }
 0x14c   : > { %1467 = vmatpush1.msra.mxu0 %v1361_v32  ;;  %1111 = vmatprep.mubr.f32.mxu0 %v3528_v37  ;;  %v1238_v32 = vrot.slane %v1237_v20, 4 }
 0x14d   : > { %1468 = vmatprep.subr.mxu0 %v1360_v26  ;;  %v1386_v26 = vld [vmem:[%s5773_s6 + $0x3b8] sm:$0xff] }
 0x14e   : > { %1469 = vmatpush1.msra.mxu0 %v1359_v30  ;;  %v1385_v30 = vld [vmem:[%s5773_s6 + $0x3b0] sm:$0xff] }
 0x14f   : > { %1470 = vmatprep.subr.mxu0 %v1358_v33  ;;  %3367 = vmatmul.mubr.msk.f32.gmra.mxu0 %vm1010_vm0, %v1001_v34  ;;  %v1384_v33 = vld [vmem:[%s5773_s6 + $0x3a8] sm:$0xff]  ;;  %v1383_v34 = vld [vmem:[%s5773_s6 + $0x3a0] sm:$0xff] }
 0x150   : > { %1471 = vmatpush1.msra.mxu0 %v1357_v35  ;;  %1117 = vmatprep.mubr.f32.mxu0 %v3528_v37  ;;  %v1239_v35 = vmax.f32 %v1237_v20, %v1238_v32 }
 0x151   : > { %1472 = vmatprep.subr.mxu0 %v1356_v36  ;;  %v1382_v36 = vld [vmem:[%s5773_s6 + $0x398] sm:$0xff] }
 0x152   : > { %1473 = vmatpush1.msra.mxu0 %v1355_v38  ;;  %v1381_v38 = vld [vmem:[%s5773_s6 + $0x390] sm:$0xff]  ;;  %v1240_v41 = vrot.slane %v1239_v35, 2 }
 0x153   : > { %1474 = vmatprep.subr.mxu0 %v1354_v39  ;;  %3368 = vmatmul.mubr.msk.f32.gmra.mxu0 %vm1010_vm0, %v1002_v40  ;;  %v1380_v39 = vld [vmem:[%s5773_s6 + $0x388] sm:$0xff]  ;;  %v1379_v40 = vld [vmem:[%s5773_s6 + $0x380] sm:$0xff] }
 0x154   : > { %1475 = vmatpush1.msra.mxu0 %v1353_v42  ;;  %1123 = vmatprep.mubr.f32.mxu0 %v3528_v37  ;;  %v1378_v42 = vld [vmem:[%s5773_s6 + $0x378] sm:$0xff] }
 0x155   : > { %1476 = vmatprep.subr.mxu0 %v1352_v43  ;;  %v1377_v43 = vld [vmem:[%s5773_s6 + $0x370] sm:$0xff] }
 0x156   : > { %1477 = vmatpush1.msra.mxu0 %v1351_v44  ;;  %v1376_v44 = vld [vmem:[%s5773_s6 + $0x368] sm:$0xff] }
 0x157   : > { %1478 = vmatprep.subr.mxu0 %v1350_v45  ;;  %3369 = vmatmul.mubr.msk.f32.gmra.mxu0 %vm1010_vm0, %v1003_v46  ;;  %v1375_v45 = vld [vmem:[%s5773_s6 + $0x360] sm:$0xff]  ;;  %v1241_v46 = vmax.f32 %v1239_v35, %v1240_v41  ;;  %v1847_v35 = vld [vmem:[%s5774_s7 + $0x38] sm:$0xff] }
 0x158   : > { %1479 = vmatpush1.msra.mxu0 %v1349_v48  ;;  %1129 = vmatprep.mubr.f32.mxu0 %v3528_v37  ;;  %v1373_v48 = vld [vmem:[%s5773_s6 + $0x350] sm:$0xff]  ;;  %v1844_v41 = vld [vmem:[%s5774_s7 + $0x20] sm:$0xff] }
 0x159   : > { %1480 = vmatprep.subr.mxu0 %v1348_v49  ;;  %v1372_v49 = vld [vmem:[%s5773_s6 + $0x348] sm:$0xff] }
 0x15a   : > { %1481 = vmatpush1.msra.mxu0 %v1347_v50  ;;  %v1371_v50 = vld [vmem:[%s5773_s6 + $0x340] sm:$0xff] }
 0x15b   : > { %1482 = vmatprep.subr.mxu0 %v1346_v51  ;;  %3370 = vmatmul.mubr.msk.f32.gmra.mxu0 %vm1010_vm0, %v1004_v52  ;;  %v1242_v51 = vrot.slane %v1241_v46, 1  ;;  %v1370_v52 = vld [vmem:[%s5773_s6 + $0x338] sm:$0xff] }
 0x15c   : > { %1483 = vmatpush1.msra.mxu0 %v1345_v54  ;;  %1135 = vmatprep.mubr.f32.mxu0 %v3528_v37  ;;  %v1368_v54 = vld [vmem:[%s5773_s6 + $0x328] sm:$0xff] }
 0x15d   : > { %1484 = vmatprep.subr.mxu0 %v1344_v55  ;;  %v1367_v55 = vld [vmem:[%s5773_s6 + $0x320] sm:$0xff] }
 0x15e   : > { %1485 = vmatpush1.msra.mxu0 %v1343_v56  ;;  %v1243_v56 = vmax.f32 %v1241_v46, %v1242_v51  ;;  %v1902_v51 = vld [vmem:[%s5774_s7 + $0x1f0] sm:$0xff] }
 0x15f   : > { %1486 = vmatprep.subr.mxu0 %v1342_v57  ;;  %3371 = vmatmul.mubr.msk.f32.gmra.mxu0 %vm1010_vm0, %v1005_v58  ;;  %v1366_v57 = vld [vmem:[%s5773_s6 + $0x318] sm:$0xff]  ;;  %v1365_v58 = vld [vmem:[%s5773_s6 + $0x310] sm:$0xff] }
 0x160   : > { %1487 = vmatpush1.msra.mxu0 %v1341_v60  ;;  %1141 = vmatprep.mubr.f32.mxu0 %v3528_v37  ;;  %v1363_v60 = vld [vmem:[%s5773_s6 + $0x300] sm:$0xff] }
 0x161   : > { %1488 = vmatprep.subr.mxu0 %v1340_v61  ;;  %v1262_v61 = vrot.slane %v1243_v56, %v4017_v15 }
 0x162   : > { %1489 = vmatpush1.msra.mxu0 %v1339_v62  ;;  %v1871_v62 = vld [vmem:[%s5774_s7 + $0xf8] sm:$0xff] }
 0x163   : > { %1490 = vmatprep.subr.mxu0 %v1338_v63  ;;  %3372 = vmatmul.mubr.msk.f32.gmra.mxu0 %vm1010_vm0, %v1006_v1  ;;  %v1870_v63 = vld [vmem:[%s5774_s7 + $0xf0] sm:$0xff]  ;;  %v1869_v1 = vld [vmem:[%s5774_s7 + $0xe8] sm:$0xff] }
 0x164   : > { %1491 = vmatpush1.msra.mxu0 %v1337_v3  ;;  %1147 = vmatprep.mubr.f32.mxu0 %v3528_v37  ;;  %v1867_v3 = vld [vmem:[%s5774_s7 + $0xd8] sm:$0xff] }
 0x165   : > { %1492 = vmatprep.subr.mxu0 %v1336_v4  ;;  %v1866_v4 = vld [vmem:[%s5774_s7 + $0xd0] sm:$0xff] }
 0x166   : > { %1493 = vmatpush1.msra.mxu0 %v1335_v5  ;;  %v1865_v5 = vld [vmem:[%s5774_s7 + $0xc8] sm:$0xff] }
 0x167   : > { %1494 = vmatprep.subr.mxu0 %v1334_v6  ;;  %3373 = vmatmul.mubr.msk.f32.gmra.mxu0 %vm1010_vm0, %v1007_v7  ;;  %v1864_v6 = vld [vmem:[%s5774_s7 + $0xc0] sm:$0xff]  ;;  %v1863_v7 = vld [vmem:[%s5774_s7 + $0xb8] sm:$0xff] }
 0x168   : > { %1495 = vmatpush1.msra.mxu0 %v1333_v9  ;;  %1153 = vmatprep.mubr.f32.mxu0 %v3528_v37  ;;  %v1861_v9 = vld [vmem:[%s5774_s7 + $0xa8] sm:$0xff] }
 0x169   : > { %1496 = vmatprep.subr.mxu0 %v1332_v10  ;;  %v1860_v10 = vld [vmem:[%s5774_s7 + $0xa0] sm:$0xff] }
 0x16a   : > { %1497 = vmatpush1.msra.mxu0 %v1331_v11  ;;  %v1859_v11 = vld [vmem:[%s5774_s7 + $0x98] sm:$0xff] }
 0x16b   : > { %1498 = vmatprep.subr.mxu0 %v1394_v12  ;;  %3374 = vmatmul.mubr.msk.f32.gmra.mxu0 %vm1010_vm0, %v1008_v13  ;;  %v1858_v12 = vld [vmem:[%s5774_s7 + $0x90] sm:$0xff]  ;;  %v1857_v13 = vld [vmem:[%s5774_s7 + $0x88] sm:$0xff] }
 0x16c   : > { %1499 = vmatpush2.msra.mxu0 %v1393_v16  ;;  %1159 = vmatprep.mubr.f32.mxu0 %v3528_v37 }
 0x16d   : > { %1500 = vmatprep.subr.mxu0 %v1392_v17  ;;  %v1855_v17 = vld [vmem:[%s5774_s7 + $0x78] sm:$0xff] }
 0x16e   : > { %1501 = vmatpush2.msra.mxu0 %v1391_v18  ;;  %v1854_v18 = vld [vmem:[%s5774_s7 + $0x70] sm:$0xff] }
 0x16f   : > { %1502 = vmatprep.subr.mxu0 %v1390_v22  ;;  %3375 = vmatmul.mubr.msk.f32.gmra.mxu0 %vm1010_vm0, %v1009_v23  ;;  %v1853_v22 = vld [vmem:[%s5774_s7 + $0x68] sm:$0xff] }
 0x170   : > { %1503 = vmatpush2.msra.mxu0 %v1389_v27  ;;  %1530 = vmatprep.mubr.f32.mxu0 %v1266_v25  ;;  %v1852_v25 = vld [vmem:[%s5774_s7 + $0x60] sm:$0xff] }
 0x171   : > { %1504 = vmatprep.subr.mxu0 %v1388_v28  ;;  %v1851_v28 = vld [vmem:[%s5774_s7 + $0x58] sm:$0xff] }
 0x172   : > { %1505 = vmatpush2.msra.mxu0 %v1387_v31  ;;  %v1850_v31 = vld [vmem:[%s5774_s7 + $0x50] sm:$0xff] }
 0x173   : > { %1506 = vmatprep.subr.mxu0 %v1386_v26  ;;  %v1849_v26 = vld [vmem:[%s5774_s7 + $0x48] sm:$0xff] }
 0x174   : > { %1507 = vmatpush2.msra.mxu0 %v1385_v30 }
 0x175   : > { %1508 = vmatprep.subr.mxu0 %v1384_v33  ;;  %v1848_v33 = vld [vmem:[%s5774_s7 + $0x40] sm:$0xff] }
 0x176   : > { %1509 = vmatpush2.msra.mxu0 %v1383_v34 }
 0x177   : > { %1510 = vmatprep.subr.mxu0 %v1382_v36  ;;  %v1846_v36 = vld [vmem:[%s5774_s7 + $0x30] sm:$0xff] }
 0x178   : > { %1511 = vmatpush2.msra.mxu0 %v1381_v38 }
 0x179   : > { %1512 = vmatprep.subr.mxu0 %v1380_v39  ;;  %v1845_v39 = vld [vmem:[%s5774_s7 + $0x28] sm:$0xff] }
 0x17a   : > { %1513 = vmatpush2.msra.mxu0 %v1379_v40 }
 0x17b   : > { %1514 = vmatprep.subr.mxu0 %v1378_v42 }
 0x17c   : > { %1515 = vmatpush2.msra.mxu0 %v1377_v43  ;;  %v1843_v43 = vld [vmem:[%s5774_s7 + $0x18] sm:$0xff] }
 0x17d   : > { %1516 = vmatprep.subr.mxu0 %v1376_v44  ;;  %v1842_v44 = vld [vmem:[%s5774_s7 + $0x10] sm:$0xff] }
 0x17e   : > { %1517 = vmatpush2.msra.mxu0 %v1375_v45 }
 0x17f   : > { %1518 = vmatprep.subr.mxu0 %v1374_v47  ;;  %v1841_v47 = vld [vmem:[%s5774_s7 + $0x8] sm:$0xff] }
 0x180   : > { %1519 = vmatpush2.msra.mxu0 %v1373_v48  ;;  %v1840_v48 = vld [vmem:[%s5774_s7] sm:$0xff] }
 0x181   : > { %1520 = vmatprep.subr.mxu0 %v1372_v49 }
 0x182   : > { %1521 = vmatpush2.msra.mxu0 %v1371_v50  ;;  %v1903_v50 = vld [vmem:[%s5774_s7 + $0x1f8] sm:$0xff] }
 0x183   : > { %1522 = vmatprep.subr.mxu0 %v1370_v52 }
 0x184   : > { %1523 = vmatpush2.msra.mxu0 %v1369_v53  ;;  %v1901_v53 = vld [vmem:[%s5774_s7 + $0x1e8] sm:$0xff] }
 0x185   : > { %1524 = vmatprep.subr.mxu0 %v1368_v54 }
 0x186   : > { %1525 = vmatpush2.msra.mxu0 %v1367_v55  ;;  %v1900_v55 = vld [vmem:[%s5774_s7 + $0x1e0] sm:$0xff] }
 0x187   : > { %1526 = vmatprep.subr.mxu0 %v1366_v57  ;;  %v1899_v57 = vld [vmem:[%s5774_s7 + $0x1d8] sm:$0xff] }
 0x188   : > { %1527 = vmatpush2.msra.mxu0 %v1365_v58  ;;  %v1898_v58 = vld [vmem:[%s5774_s7 + $0x1d0] sm:$0xff] }
 0x189   : > { %1528 = vmatprep.subr.mxu0 %v1364_v59 }
 0x18a   : > { %1529 = vmatpush2.msra.mxu0 %v1363_v60  ;;  %v1897_v60 = vld [vmem:[%s5774_s7 + $0x1c8] sm:$0xff] }
 0x18b   : > { %1531 = vmatmul.mubr.f32.vlgmr.msra.gmra.mxu0 %v1262_v61  ;;  %1968 = vmatprep.subr.mxu0 %v1871_v62  ;;  %v1896_v62 = vld [vmem:[%s5774_s7 + $0x1c0] sm:$0xff] }
 0x18c   : > { %1969 = vmatpush1.msra.mxu0 %v1870_v63 }
 0x18d   : > { %1970 = vmatprep.subr.mxu0 %v1869_v1  ;;  %v1895_v1 = vld [vmem:[%s5774_s7 + $0x1b8] sm:$0xff] }
 0x18e   : > { %1971 = vmatpush1.msra.mxu0 %v1868_v2  ;;  %v1894_v2 = vld [vmem:[%s5774_s7 + $0x1b0] sm:$0xff] }
 0x18f   : > { %1972 = vmatprep.subr.mxu0 %v1867_v3 }
 0x190   : > { %1973 = vmatpush1.msra.mxu0 %v1866_v4  ;;  %v1893_v4 = vld [vmem:[%s5774_s7 + $0x1a8] sm:$0xff] }
 0x191   : > { %1974 = vmatprep.subr.mxu0 %v1865_v5 }
 0x192   : > { %1975 = vmatpush1.msra.mxu0 %v1864_v6  ;;  %v1892_v6 = vld [vmem:[%s5774_s7 + $0x1a0] sm:$0xff] }
 0x193   : > { %1976 = vmatprep.subr.mxu0 %v1863_v7  ;;  %v4678_v7 = vld [vmem:[%s4663_s20 + $0x8] sm:$0xff] }
 0x194   : > { %1977 = vmatpush1.msra.mxu0 %v1862_v8 }
 0x195   : > { %1978 = vmatprep.subr.mxu0 %v1861_v9  ;;  %v1891_v9 = vld [vmem:[%s5774_s7 + $0x198] sm:$0xff] }
 0x196   : > { %1979 = vmatpush1.msra.mxu0 %v1860_v10  ;;  %v4684_v10 = vld [vmem:[%s4663_s20 + $0x18] sm:$0xff] }
 0x197   : > { %1980 = vmatprep.subr.mxu0 %v1859_v11  ;;  %v1890_v11 = vld [vmem:[%s5774_s7 + $0x190] sm:$0xff] }
 0x198   : > { %1981 = vmatpush1.msra.mxu0 %v1858_v12  ;;  %v4690_v12 = vld [vmem:[%s4663_s20 + $0x28] sm:$0xff] }
 0x199   : > { %1982 = vmatprep.subr.mxu0 %v1857_v13  ;;  %v1797_v13 = vadd.f32 %v4684_v10, %v4678_v7 }
 0x19a   : > { %1983 = vmatpush1.msra.mxu0 %v1856_v14 }
 0x19b   : > { %1984 = vmatprep.subr.mxu0 %v1855_v17  ;;  %v4698_v17 = vld [vmem:[%s4663_s20] sm:$0xff] }
 0x19c   : > { %1985 = vmatpush1.msra.mxu0 %v1854_v18 }
 0x19d   : > { %1986 = vmatprep.subr.mxu0 %v1853_v22  ;;  %v1798_v22 = vadd.f32 %v1797_v13, %v4690_v12 }
 0x19e   : > { %1987 = vmatpush1.msra.mxu0 %v1852_v25 }
 0x19f   : > { %1988 = vmatprep.subr.mxu0 %v1851_v28  ;;  %v4711_v28 = vld [vmem:[%s4663_s20 + $0x20] sm:$0xff] }
 0x1a0   : > { %1989 = vmatpush1.msra.mxu0 %v1850_v31 }
 0x1a1   : > { %1990 = vmatprep.subr.mxu0 %v1849_v26  ;;  %v1799_v26 = vrot.slane %v1798_v22, 4 }
 0x1a2   : > { %1991 = vmatpush1.msra.mxu0 %v1848_v33  ;;  %v1885_v33 = vld [vmem:[%s5774_s7 + $0x168] sm:$0xff] }
 0x1a3   : > { %1992 = vmatprep.subr.mxu0 %v1847_v35 }
 0x1a4   : > { %1993 = vmatpush1.msra.mxu0 %v1846_v36  ;;  %v1884_v36 = vld [vmem:[%s5774_s7 + $0x160] sm:$0xff] }
 0x1a5   : > { %1994 = vmatprep.subr.mxu0 %v1845_v39 }
 0x1a6   : > { %1995 = vmatpush1.msra.mxu0 %v1844_v41 }
 0x1a7   : > { %1996 = vmatprep.subr.mxu0 %v1843_v43 }
 0x1a8   : > { %1997 = vmatpush1.msra.mxu0 %v1842_v44 }
 0x1a9   : > { %1998 = vmatprep.subr.mxu0 %v1841_v47 }
 0x1aa   : > { %1999 = vmatpush1.msra.mxu0 %v1840_v48  ;;  %v1880_v48 = vld [vmem:[%s5774_s7 + $0x140] sm:$0xff] }
 0x1ab   : > { %2000 = vmatprep.subr.mxu0 %v1903_v50  ;;  %v1879_v50 = vld [vmem:[%s5774_s7 + $0x138] sm:$0xff] }
 0x1ac   : > { %2001 = vmatpush2.msra.mxu0 %v1902_v51 }
 0x1ad   : > { %2002 = vmatprep.subr.mxu0 %v1901_v53 }
 0x1ae   : > { %2003 = vmatpush2.msra.mxu0 %v1900_v55 }
 0x1af   : > { %2004 = vmatprep.subr.mxu0 %v1899_v57 }
 0x1b0   : > { %2005 = vmatpush2.msra.mxu0 %v1898_v58  ;;  %v1875_v58 = vld [vmem:[%s5774_s7 + $0x118] sm:$0xff] }
 0x1b1   : > { %2006 = vmatprep.subr.mxu0 %v1897_v60  ;;  %v1874_v60 = vld [vmem:[%s5774_s7 + $0x110] sm:$0xff] }
 0x1b2   : > { %2007 = vmatpush2.msra.mxu0 %v1896_v62  ;;  %v1873_v62 = vld [vmem:[%s5774_s7 + $0x108] sm:$0xff] }
 0x1b3   : > { %2008 = vmatprep.subr.mxu0 %v1895_v1  ;;  %v1872_v1 = vld [vmem:[%s5774_s7 + $0x100] sm:$0xff] }
 0x1b4   : > { %2009 = vmatpush2.msra.mxu0 %v1894_v2 }
 0x1b5   : > { %2010 = vmatprep.subr.mxu0 %v1893_v4 }
 0x1b6   : > { %2011 = vmatpush2.msra.mxu0 %v1892_v6 }
 0x1b7   : > { %2012 = vmatprep.subr.mxu0 %v1891_v9 }
 0x1b8   : > { %2013 = vmatpush2.msra.mxu0 %v1890_v11 }
 0x20b   : > { %v1107_v16 = vpop.f32.mrf.mxu0 }
 0x20d   : > { %v1109_v20 = vpop.f32.mrf.mxu0 }
 0x20e   : > { %v1166_v23 = vadd.f32 %v1109_v20, %v1107_v16  ;;  %v1889_v16 = vld [vmem:[%s5774_s7 + $0x188] sm:$0xff]  ;;  %v1888_v20 = vld [vmem:[%s5774_s7 + $0x180] sm:$0xff] }
 0x20f   : > { %v1113_v27 = vpop.f32.mrf.mxu0  ;;  %2014 = vmatprep.subr.mxu0 %v1889_v16 }
 0x210   : > { %1167 = vadd.xlane.f32.xlu0 %v1166_v23  ;;  %v4705_v23 = vld [vmem:[%s4663_s20 + $0x10] sm:$0xff]  ;;  %2015 = vmatpush2.msra.mxu0 %v1888_v20 }
 0x211   : > { %v1115_v32 = vpop.f32.mrf.mxu0  ;;  %v1789_v31 = vadd.f32 %v4705_v23, %v4698_v17 }
 0x212   : > { %v1169_v30 = vadd.f32 %v1115_v32, %v1113_v27  ;;  %v1887_v27 = vld [vmem:[%s5774_s7 + $0x178] sm:$0xff]  ;;  %v1886_v32 = vld [vmem:[%s5774_s7 + $0x170] sm:$0xff] }
 0x213   : > { %v1119_v34 = vpop.f32.mrf.mxu0  ;;  %2016 = vmatprep.subr.mxu0 %v1887_v27 }
 0x214   : > { %1170 = vadd.xlane.f32.xlu0 %v1169_v30  ;;  %2017 = vmatpush2.msra.mxu0 %v1886_v32 }
 0x215   : > { %v1121_v38 = vpop.f32.mrf.mxu0  ;;  %2018 = vmatprep.subr.mxu0 %v1885_v33 }
 0x216   : > { %v1172_v40 = vadd.f32 %v1121_v38, %v1119_v34  ;;  %v1790_v34 = vadd.f32 %v1789_v31, %v4711_v28  ;;  %v1800_v38 = vadd.f32 %v1799_v26, %v1798_v22  ;;  %2019 = vmatpush2.msra.mxu0 %v1884_v36 }
 0x217   : > { %v1125_v42 = vpop.f32.mrf.mxu0 }
 0x218   : > { %1173 = vadd.xlane.f32.xlu1 %v1172_v40  ;;  %v1883_v40 = vld [vmem:[%s5774_s7 + $0x158] sm:$0xff]  ;;  %v1791_v41 = vrot.slane %v1790_v34, 4  ;;  %v1801_v43 = vrot.slane %v1800_v38, 2 }
 0x219   : > { %v1127_v45 = vpop.f32.mrf.mxu0  ;;  %2020 = vmatprep.subr.mxu0 %v1883_v40 }
 0x21a   : > { %v1175_v46 = vadd.f32 %v1127_v45, %v1125_v42  ;;  %v1882_v42 = vld [vmem:[%s5774_s7 + $0x150] sm:$0xff]  ;;  %v1881_v45 = vld [vmem:[%s5774_s7 + $0x148] sm:$0xff] }
 0x21b   : > { %v1131_v49 = vpop.f32.mrf.mxu0  ;;  %2021 = vmatpush2.msra.mxu0 %v1882_v42 }
 0x21c   : > { %1176 = vadd.xlane.f32.xlu1 %v1175_v46  ;;  %v1792_v46 = vadd.f32 %v1791_v41, %v1790_v34  ;;  %2022 = vmatprep.subr.mxu0 %v1881_v45  ;;  %v1931_v45 = vld [vmem:[%s5774_s7 + $0x2d8] sm:$0xff] }
 0x21d   : > { %v1133_v52 = vpop.f32.mrf.mxu0  ;;  %2023 = vmatpush2.msra.mxu0 %v1880_v48  ;;  %v1929_v48 = vld [vmem:[%s5774_s7 + $0x2c8] sm:$0xff] }
 0x21e   : > { %v1178_v54 = vadd.f32 %v1133_v52, %v1131_v49  ;;  %v1802_v49 = vadd.f32 %v1801_v43, %v1800_v38  ;;  %v1793_v51 = vrot.slane %v1792_v46, 2  ;;  %v1878_v52 = vld [vmem:[%s5774_s7 + $0x130] sm:$0xff]  ;;  %2024 = vmatprep.subr.mxu0 %v1879_v50  ;;  %v1567_v43 = vld [vmem:[%s5777_s10] sm:$0xff] }
 0x21f   : > { %v1137_v56 = vpop.f32.mrf.mxu0  ;;  %2025 = vmatpush2.msra.mxu0 %v1878_v52  ;;  %v1925_v52 = vld [vmem:[%s5774_s7 + $0x2a8] sm:$0xff] }
 0x220   : > { %1179 = vadd.xlane.f32.xlu0 %v1178_v54  ;;  %v1803_v53 = vrot.slane %v1802_v49, 1  ;;  %v1877_v54 = vld [vmem:[%s5774_s7 + $0x128] sm:$0xff]  ;;  %v1794_v55 = vadd.f32 %v1793_v51, %v1792_v46  ;;  %v1816_v46 = vmax.f32 %v4678_v7, %v4690_v12  ;;  %v1569_v7 = vld [vmem:[%s5777_s10 + $0x10] sm:$0xff]  ;;  %v1927_v12 = vld [vmem:[%s5774_s7 + $0x2b8] sm:$0xff] }
 0x221   : > { %v1139_v59 = vpop.f32.mrf.mxu0  ;;  %2026 = vmatprep.subr.mxu0 %v1877_v54  ;;  %v1926_v51 = vld [vmem:[%s5774_s7 + $0x2b0] sm:$0xff]  ;;  %v1923_v54 = vld [vmem:[%s5774_s7 + $0x298] sm:$0xff] }
 0x222   : > { %v1181_v61 = vadd.f32 %v1139_v59, %v1137_v56  ;;  %v1876_v56 = vld [vmem:[%s5774_s7 + $0x120] sm:$0xff]  ;;  %v1804_v57 = vadd.f32 %v1803_v53, %v1802_v49  ;;  %v1795_v59 = vrot.slane %v1794_v55, 1  ;;  %v1817_v50 = vmax.f32 %v1816_v46, %v4684_v10  ;;  %v1570_v10 = vld [vmem:[%s5777_s10 + $0x18] sm:$0xff] }
 0x223   : > { %v1143_v63 = vpop.f32.mrf.mxu0  ;;  %2027 = vmatpush2.msra.mxu0 %v1876_v56  ;;  %v1928_v49 = vld [vmem:[%s5774_s7 + $0x2c0] sm:$0xff]  ;;  %v1922_v56 = vld [vmem:[%s5774_s7 + $0x290] sm:$0xff]  ;;  %v1955_v46 = vld [vmem:[%s5774_s7 + $0x398] sm:$0xff] }
 0x224   : > { %1182 = vadd.xlane.f32.xlu1 %v1181_v61  ;;  %v1807_v61 = vmul.f32 0.041666668, %v1804_v57  ;;  %2028 = vmatprep.subr.mxu0 %v1875_v58  ;;  %v1924_v53 = vld [vmem:[%s5774_s7 + $0x2a0] sm:$0xff]  ;;  %v1921_v57 = vld [vmem:[%s5774_s7 + $0x288] sm:$0xff] }
 0x225   : > { %v1145_v3 = vpop.f32.mrf.mxu0  ;;  %2029 = vmatpush2.msra.mxu0 %v1874_v60  ;;  %v1920_v58 = vld [vmem:[%s5774_s7 + $0x280] sm:$0xff]  ;;  %v1919_v60 = vld [vmem:[%s5774_s7 + $0x278] sm:$0xff] }
 0x226   : > { %v1184_v5 = vadd.f32 %v1145_v3, %v1143_v63  ;;  %v1796_v63 = vadd.f32 %v1795_v59, %v1794_v55  ;;  %v1831_v2 = vrot.slane %v1807_v61, %v4017_v15  ;;  %2030 = vmatprep.subr.mxu0 %v1873_v62  ;;  %v1818_v55 = vrot.slane %v1817_v50, 4  ;;  %v1571_v59 = vld [vmem:[%s5777_s10 + $0x20] sm:$0xff]  ;;  %v1918_v62 = vld [vmem:[%s5774_s7 + $0x270] sm:$0xff] }
 0x227   : > { %v1149_v8 = vpop.f32.mrf.mxu0  ;;  %2031 = vmatpush2.msra.mxu0 %v1872_v1  ;;  %v1916_v1 = vld [vmem:[%s5774_s7 + $0x260] sm:$0xff] }
 0x228   : > { %1185 = vadd.xlane.f32.xlu0 %v1184_v5  ;;  %v1806_v3 = vmul.f32 0.041666668, %v1796_v63  ;;  %2032 = vmatprep.mubr.f32.mxu0 %v1831_v2  ;;  %v1461_v5 = vpop.f32.mrf.mxu1  ;;  %v1819_v61 = vmax.f32 %v1817_v50, %v1818_v55  ;;  %v1917_v63 = vld [vmem:[%s5774_s7 + $0x268] sm:$0xff]  ;;  %v1950_v50 = vld [vmem:[%s5774_s7 + $0x370] sm:$0xff] }
 0x229   : > { %v1151_v14 = vpop.f32.mrf.mxu0  ;;  %v1572_v2 = vld [vmem:[%s5777_s10 + $0x28] sm:$0xff] }
 0x22a   : > { %v1187_v18 = vadd.f32 %v1151_v14, %v1149_v8  ;;  %v1827_v4 = vrot.slane %v1806_v3, %v4017_v15  ;;  %v1463_v9 = vpop.f32.mrf.mxu1  ;;  %v1915_v3 = vld [vmem:[%s5774_s7 + $0x258] sm:$0xff]  ;;  %v1945_v55 = vld [vmem:[%s5774_s7 + $0x348] sm:$0xff] }
 0x22b   : > { %v1155_v25 = vpop.f32.mrf.mxu0 }
 0x22c   : > { %1188 = vadd.xlane.f32.xlu1 %v1187_v18  ;;  %2033 = vmatmul.mubr.f32.vlgmr.msra.gmra.mxu0 %v1827_v4  ;;  %v1820_v4 = vrot.slane %v1819_v61, 2 }
 0x22d   : > { %v1157_v30 = vpop.f32.mrf.mxu0  ;;  %2249 = vmatprep.mubr.f32.mxu0 %v3528_v37 }
 0x22e   : > { %v1190_v35 = vadd.f32 %v1157_v30, %v1155_v25 }
 0x22f   : > { %v1161_v39 = vpop.f32.mrf.mxu0 }
 0x230   : > { %1191 = vadd.xlane.f32.xlu0 %v1190_v35 }
 0x231   : > { %v1163_v44 = vpop.f32.mrf.mxu0 }
 0x232   : > { %v1193_v47 = vadd.f32 %v1163_v44, %v1161_v39  ;;  %v1568_v44 = vld [vmem:[%s5777_s10 + $0x8] sm:$0xff] }
 0x234   : > { %1194 = vadd.xlane.f32.xlu1 %v1193_v47  ;;  %v1930_v47 = vld [vmem:[%s5774_s7 + $0x2d0] sm:$0xff] }
 0x24b   : > { %v1532_v6 = vpop.f32.mrf.mxu0 }
 0x24c   : > { %v1533_v8 = vadd.f32 %v1532_v6, %v1461_v5  ;;  %v1914_v5 = vld [vmem:[%s5774_s7 + $0x250] sm:$0xff]  ;;  %v1913_v6 = vld [vmem:[%s5774_s7 + $0x248] sm:$0xff] }
 0x24d   : > { %v1534_v11 = vpop.f32.mrf.mxu0 }
 0x24e   : > { %v1537_v13 = vadd.f32 %v1533_v8, %v4273_v0  ;;  %v1535_v14 = vadd.f32 %v1534_v11, %v1463_v9  ;;  %v1912_v8 = vld [vmem:[%s5774_s7 + $0x240] sm:$0xff]  ;;  %v1573_v9 = vld [vmem:[%s5777_s10 + $0x30] sm:$0xff]  ;;  %v1911_v11 = vld [vmem:[%s5774_s7 + $0x238] sm:$0xff] }
 0x250   : > { %v1539_v16 = vsub.f32 0.0, %v1537_v13  ;;  %v1538_v18 = vadd.f32 %v1535_v14, %v4273_v0  ;;  %v1821_v13 = vmax.f32 %v1819_v61, %v1820_v4  ;;  %v1910_v14 = vld [vmem:[%s5774_s7 + $0x230] sm:$0xff]  ;;  %v1940_v61 = vld [vmem:[%s5774_s7 + $0x320] sm:$0xff] }
 0x252   : > { %v1541_v20 = vmul.f32 1.442695, %v1539_v16  ;;  %v1540_v22 = vsub.f32 0.0, %v1538_v18  ;;  %v1909_v16 = vld [vmem:[%s5774_s7 + $0x228] sm:$0xff]  ;;  %v1908_v18 = vld [vmem:[%s5774_s7 + $0x220] sm:$0xff] }
 0x254   : > { %3443 = vpow2.f32 %v1541_v20  ;;  %v1543_v25 = vmul.f32 1.442695, %v1540_v22  ;;  %v1574_v20 = vld [vmem:[%s5777_s10 + $0x38] sm:$0xff] }
 0x255   : > { %v1907_v22 = vld [vmem:[%s5774_s7 + $0x218] sm:$0xff] }
 0x256   : > { %3445 = vpow2.f32 %v1543_v25  ;;  %v1822_v25 = vrot.slane %v1821_v13, 1 }
 0x261   : > { %v3444_v27 = vpop.eup %3443 }
 0x262   : > { %v1545_v31 = vadd.f32 1.0, %v3444_v27  ;;  %v1906_v27 = vld [vmem:[%s5774_s7 + $0x210] sm:$0xff] }
 0x263   : > { %v3446_v32 = vpop.eup %3445 }
 0x264   : > { %3447 = vrcp.f32 %v1545_v31  ;;  %v1546_v26 = vadd.f32 1.0, %v3446_v32  ;;  %v1905_v31 = vld [vmem:[%s5774_s7 + $0x208] sm:$0xff]  ;;  %v1904_v32 = vld [vmem:[%s5774_s7 + $0x200] sm:$0xff] }
 0x266   : > { %3449 = vrcp.f32 %v1546_v26  ;;  %v1808_v26 = vmax.f32 %v4698_v17, %v4711_v28  ;;  %v1965_v17 = vld [vmem:[%s5774_s7 + $0x3e8] sm:$0xff] }
 0x271   : > { %v3448_v30 = vpop.eup %3447 }
 0x272   : > { %v1549_v33 = vadd.f32 1.0, %v3448_v30  ;;  %v1575_v30 = vld [vmem:[%s5777_s10 + $0x40] sm:$0xff] }
 0x273   : > { %v3450_v34 = vpop.eup %3449 }
 0x274   : > { %v1550_v35 = vadd.f32 1.0, %v3450_v34  ;;  %v1554_v36 = vrot.slane %v1549_v33, %v4017_v15  ;;  %v1967_v33 = vld [vmem:[%s5774_s7 + $0x3f8] sm:$0xff]  ;;  %v1823_v34 = vmax.f32 %v1821_v13, %v1822_v25  ;;  %v2449_v13 = vld [vmem:[%s5775_s8 + $0xd0] sm:$0xff]  ;;  %v2443_v25 = vld [vmem:[%s5775_s8 + $0xa0] sm:$0xff] }
 0x276   : > { %v1558_v38 = vrot.slane %v1550_v35, %v4017_v15  ;;  %v1561_v39 = vmul.f32 %v1554_v36, %v4224_v29  ;;  %v1559_v40 = vmul.f32 %v1554_v36, %v4215_v24  ;;  %v1935_v29 = vld [vmem:[%s5774_s7 + $0x2f8] sm:$0xff]  ;;  %v1932_v24 = vld [vmem:[%s5774_s7 + $0x2e0] sm:$0xff]  ;;  %v1966_v35 = vld [vmem:[%s5774_s7 + $0x3f0] sm:$0xff] }
 0x277   : > { %v1964_v36 = vld [vmem:[%s5774_s7 + $0x3e0] sm:$0xff] }
 0x278   : > { %v1562_v41 = vmul.f32 %v1558_v38, %v4207_v21  ;;  %1565 = vst [vmem:[%s4772_s26 + $0x10] sm:$0xff] %v1561_v39  ;;  %v1560_v42 = vmul.f32 %v1558_v38, %v4201_v19  ;;  %1563 = vst [vmem:[%s4772_s26] sm:$0xff] %v1559_v40  ;;  %v1934_v21 = vld [vmem:[%s5774_s7 + $0x2f0] sm:$0xff]  ;;  %v1933_v19 = vld [vmem:[%s5774_s7 + $0x2e8] sm:$0xff]  ;;  %v1809_v38 = vmax.f32 %v1808_v26, %v4705_v23 }
 0x279   : > { %v1961_v23 = vld [vmem:[%s5774_s7 + $0x3c8] sm:$0xff] }
 0x27a   : > { %1566 = vst [vmem:[%s4772_s26 + $0x18] sm:$0xff] %v1562_v41  ;;  %1636 = vmatprep.subr.mxu1 %v1562_v41  ;;  %1564 = vst [vmem:[%s4772_s26 + $0x8] sm:$0xff] %v1560_v42  ;;  %v1839_v41 = vrot.slane %v1823_v34, %v4017_v15  ;;  %v2440_v26 = vld [vmem:[%s5775_s8 + $0x88] sm:$0xff]  ;;  %v2438_v34 = vld [vmem:[%s5775_s8 + $0x78] sm:$0xff] }
 0x27b   : > { %1637 = vmatpush1.msra.mxu1 %v1561_v39  ;;  %v1576_v39 = vld [vmem:[%s5777_s10 + $0x48] sm:$0xff] }
 0x27c   : > { %1638 = vmatprep.subr.mxu1 %v1560_v42  ;;  %v1962_v42 = vld [vmem:[%s5774_s7 + $0x3d0] sm:$0xff] }
 0x27d   : > { %1639 = vmatpush1.msra.mxu1 %v1559_v40  ;;  %v1963_v40 = vld [vmem:[%s5774_s7 + $0x3d8] sm:$0xff] }
 0x27e   : > { %3376 = vmatmul.mubr.msk.f32.vlgmr.msra.gmra.mxu1 %vm1577_vm1, %v1567_v43  ;;  %2039 = vmatprep.subr.mxu1 %v1935_v29  ;;  %v1960_v43 = vld [vmem:[%s5774_s7 + $0x3c0] sm:$0xff]  ;;  %v1810_v29 = vrot.slane %v1809_v38, 4 }
 0x27f   : > { %2040 = vmatpush1.msra.mxu1 %v1934_v21  ;;  %1678 = vmatprep.mubr.f32.mxu1 %v3528_v37  ;;  %v1959_v21 = vld [vmem:[%s5774_s7 + $0x3b8] sm:$0xff] }
 0x280   : > { %2041 = vmatprep.subr.mxu1 %v1933_v19  ;;  %v1958_v19 = vld [vmem:[%s5774_s7 + $0x3b0] sm:$0xff] }
 0x281   : > { %2042 = vmatpush1.msra.mxu1 %v1932_v24  ;;  %v1957_v24 = vld [vmem:[%s5774_s7 + $0x3a8] sm:$0xff] }
 0x282   : > { %3377 = vmatmul.mubr.msk.f32.gmra.mxu1 %vm1577_vm1, %v1568_v44  ;;  %2043 = vmatprep.subr.mxu1 %v1931_v45  ;;  %v1956_v44 = vld [vmem:[%s5774_s7 + $0x3a0] sm:$0xff]  ;;  %v1811_v45 = vmax.f32 %v1809_v38, %v1810_v29  ;;  %v2436_v38 = vld [vmem:[%s5775_s8 + $0x68] sm:$0xff] }
 0x283   : > { %2044 = vmatpush1.msra.mxu1 %v1930_v47  ;;  %1684 = vmatprep.mubr.f32.mxu1 %v3528_v37  ;;  %v1954_v47 = vld [vmem:[%s5774_s7 + $0x390] sm:$0xff]  ;;  %v2432_v29 = vld [vmem:[%s5775_s8 + $0x48] sm:$0xff] }
 0x284   : > { %2045 = vmatprep.subr.mxu1 %v1929_v48  ;;  %v1953_v48 = vld [vmem:[%s5774_s7 + $0x388] sm:$0xff] }
 0x285   : > { %2046 = vmatpush1.msra.mxu1 %v1928_v49  ;;  %v1952_v49 = vld [vmem:[%s5774_s7 + $0x380] sm:$0xff] }
 0x286   : > { %3378 = vmatmul.mubr.msk.f32.gmra.mxu1 %vm1577_vm1, %v1569_v7  ;;  %2047 = vmatprep.subr.mxu1 %v1927_v12  ;;  %v1812_v7 = vrot.slane %v1811_v45, 2  ;;  %v1951_v12 = vld [vmem:[%s5774_s7 + $0x378] sm:$0xff] }
 0x287   : > { %2048 = vmatpush1.msra.mxu1 %v1926_v51  ;;  %1690 = vmatprep.mubr.f32.mxu1 %v3528_v37  ;;  %v1949_v51 = vld [vmem:[%s5774_s7 + $0x368] sm:$0xff] }
 0x288   : > { %2049 = vmatprep.subr.mxu1 %v1925_v52  ;;  %v1948_v52 = vld [vmem:[%s5774_s7 + $0x360] sm:$0xff] }
 0x289   : > { %2050 = vmatpush1.msra.mxu1 %v1924_v53  ;;  %v1813_v53 = vmax.f32 %v1811_v45, %v1812_v7  ;;  %v2429_v45 = vld [vmem:[%s5775_s8 + $0x30] sm:$0xff]  ;;  %v2426_v7 = vld [vmem:[%s5775_s8 + $0x18] sm:$0xff] }
 0x28a   : > { %3379 = vmatmul.mubr.msk.f32.gmra.mxu1 %vm1577_vm1, %v1570_v10  ;;  %2051 = vmatprep.subr.mxu1 %v1923_v54  ;;  %v1947_v10 = vld [vmem:[%s5774_s7 + $0x358] sm:$0xff]  ;;  %v1946_v54 = vld [vmem:[%s5774_s7 + $0x350] sm:$0xff] }
 0x28b   : > { %2052 = vmatpush1.msra.mxu1 %v1922_v56  ;;  %1696 = vmatprep.mubr.f32.mxu1 %v3528_v37  ;;  %v1944_v56 = vld [vmem:[%s5774_s7 + $0x340] sm:$0xff] }
 0x28c   : > { %2053 = vmatprep.subr.mxu1 %v1921_v57  ;;  %v1814_v57 = vrot.slane %v1813_v53, 1 }
 0x28d   : > { %2054 = vmatpush1.msra.mxu1 %v1920_v58  ;;  %v1943_v58 = vld [vmem:[%s5774_s7 + $0x338] sm:$0xff] }
 0x28e   : > { %3380 = vmatmul.mubr.msk.f32.gmra.mxu1 %vm1577_vm1, %v1571_v59  ;;  %2055 = vmatprep.subr.mxu1 %v1919_v60  ;;  %v1942_v59 = vld [vmem:[%s5774_s7 + $0x330] sm:$0xff]  ;;  %v1941_v60 = vld [vmem:[%s5774_s7 + $0x328] sm:$0xff] }
 0x28f   : > { %2056 = vmatpush1.msra.mxu1 %v1918_v62  ;;  %1702 = vmatprep.mubr.f32.mxu1 %v3528_v37  ;;  %v1815_v62 = vmax.f32 %v1813_v53, %v1814_v57  ;;  %v2423_v53 = vld [vmem:[%s5775_s8] sm:$0xff] }
 0x290   : > { %2057 = vmatprep.subr.mxu1 %v1917_v63  ;;  %v1939_v63 = vld [vmem:[%s5774_s7 + $0x318] sm:$0xff] }
 0x291   : > { %2058 = vmatpush1.msra.mxu1 %v1916_v1  ;;  %v1938_v1 = vld [vmem:[%s5774_s7 + $0x310] sm:$0xff]  ;;  %v1835_v4 = vrot.slane %v1815_v62, %v4017_v15 }
 0x292   : > { %3381 = vmatmul.mubr.msk.f32.gmra.mxu1 %vm1577_vm1, %v1572_v2  ;;  %2059 = vmatprep.subr.mxu1 %v1915_v3  ;;  %v1937_v2 = vld [vmem:[%s5774_s7 + $0x308] sm:$0xff]  ;;  %v1936_v3 = vld [vmem:[%s5774_s7 + $0x300] sm:$0xff] }
 0x293   : > { %2060 = vmatpush1.msra.mxu1 %v1914_v5  ;;  %1708 = vmatprep.mubr.f32.mxu1 %v3528_v37  ;;  %v2454_v5 = vld [vmem:[%s5775_s8 + $0xf8] sm:$0xff] }
 0x294   : > { %2061 = vmatprep.subr.mxu1 %v1913_v6  ;;  %v2453_v6 = vld [vmem:[%s5775_s8 + $0xf0] sm:$0xff] }
 0x295   : > { %2062 = vmatpush1.msra.mxu1 %v1912_v8  ;;  %v2452_v8 = vld [vmem:[%s5775_s8 + $0xe8] sm:$0xff] }
 0x296   : > { %3382 = vmatmul.mubr.msk.f32.gmra.mxu1 %vm1577_vm1, %v1573_v9  ;;  %2063 = vmatprep.subr.mxu1 %v1911_v11  ;;  %v2451_v9 = vld [vmem:[%s5775_s8 + $0xe0] sm:$0xff]  ;;  %v2450_v11 = vld [vmem:[%s5775_s8 + $0xd8] sm:$0xff] }
 0x297   : > { %2064 = vmatpush1.msra.mxu1 %v1910_v14  ;;  %1714 = vmatprep.mubr.f32.mxu1 %v3528_v37  ;;  %v2448_v14 = vld [vmem:[%s5775_s8 + $0xc8] sm:$0xff] }
 0x298   : > { %2065 = vmatprep.subr.mxu1 %v1909_v16  ;;  %v2447_v16 = vld [vmem:[%s5775_s8 + $0xc0] sm:$0xff] }
 0x299   : > { %2066 = vmatpush1.msra.mxu1 %v1908_v18  ;;  %v2446_v18 = vld [vmem:[%s5775_s8 + $0xb8] sm:$0xff] }
 0x29a   : > { %3383 = vmatmul.mubr.msk.f32.gmra.mxu1 %vm1577_vm1, %v1574_v20  ;;  %2067 = vmatprep.subr.mxu1 %v1907_v22  ;;  %v2445_v20 = vld [vmem:[%s5775_s8 + $0xb0] sm:$0xff]  ;;  %v2444_v22 = vld [vmem:[%s5775_s8 + $0xa8] sm:$0xff] }
 0x29b   : > { %2068 = vmatpush1.msra.mxu1 %v1906_v27  ;;  %1720 = vmatprep.mubr.f32.mxu1 %v3528_v37  ;;  %v2442_v27 = vld [vmem:[%s5775_s8 + $0x98] sm:$0xff] }
 0x29c   : > { %2069 = vmatprep.subr.mxu1 %v1905_v31  ;;  %v2441_v31 = vld [vmem:[%s5775_s8 + $0x90] sm:$0xff] }
 0x29d   : > { %2070 = vmatpush1.msra.mxu1 %v1904_v32 }
 0x29e   : > { %3384 = vmatmul.mubr.msk.f32.gmra.mxu1 %vm1577_vm1, %v1575_v30  ;;  %2071 = vmatprep.subr.mxu1 %v1967_v33  ;;  %v2439_v30 = vld [vmem:[%s5775_s8 + $0x80] sm:$0xff] }
 0x29f   : > { %2072 = vmatpush2.msra.mxu1 %v1966_v35  ;;  %1726 = vmatprep.mubr.f32.mxu1 %v3528_v37 }
 0x2a0   : > { %2073 = vmatprep.subr.mxu1 %v1965_v17  ;;  %v2437_v17 = vld [vmem:[%s5775_s8 + $0x70] sm:$0xff] }
 0x2a1   : > { %2074 = vmatpush2.msra.mxu1 %v1964_v36 }
 0x2a2   : > { %3385 = vmatmul.mubr.msk.f32.gmra.mxu1 %vm1577_vm1, %v1576_v39  ;;  %2075 = vmatprep.subr.mxu1 %v1963_v40  ;;  %v2435_v39 = vld [vmem:[%s5775_s8 + $0x60] sm:$0xff] }
 0x2a3   : > { %2076 = vmatpush2.msra.mxu1 %v1962_v42  ;;  %2103 = vmatprep.mubr.f32.mxu1 %v1839_v41  ;;  %v2434_v41 = vld [vmem:[%s5775_s8 + $0x58] sm:$0xff] }
 0x2a4   : > { %2077 = vmatprep.subr.mxu1 %v1961_v23  ;;  %v2433_v23 = vld [vmem:[%s5775_s8 + $0x50] sm:$0xff] }
 0x2a5   : > { %2078 = vmatpush2.msra.mxu1 %v1960_v43 }
 0x2a6   : > { %2079 = vmatprep.subr.mxu1 %v1959_v21  ;;  %v2431_v21 = vld [vmem:[%s5775_s8 + $0x40] sm:$0xff] }
 0x2a7   : > { %2080 = vmatpush2.msra.mxu1 %v1958_v19 }
 0x2a8   : > { %2081 = vmatprep.subr.mxu1 %v1957_v24  ;;  %v2430_v24 = vld [vmem:[%s5775_s8 + $0x38] sm:$0xff] }
 0x2a9   : > { %2082 = vmatpush2.msra.mxu1 %v1956_v44 }
 0x2aa   : > { %2083 = vmatprep.subr.mxu1 %v1955_v46 }
 0x2ab   : > { %2084 = vmatpush2.msra.mxu1 %v1954_v47  ;;  %v2428_v47 = vld [vmem:[%s5775_s8 + $0x28] sm:$0xff] }
 0x2ac   : > { %2085 = vmatprep.subr.mxu1 %v1953_v48  ;;  %v2427_v48 = vld [vmem:[%s5775_s8 + $0x20] sm:$0xff] }
 0x2ad   : > { %2086 = vmatpush2.msra.mxu1 %v1952_v49 }
 0x2ae   : > { %2087 = vmatprep.subr.mxu1 %v1951_v12 }
 0x2af   : > { %2088 = vmatpush2.msra.mxu1 %v1950_v50  ;;  %v2425_v50 = vld [vmem:[%s5775_s8 + $0x10] sm:$0xff] }
 0x2b0   : > { %2089 = vmatprep.subr.mxu1 %v1949_v51 }
 0x2b1   : > { %2090 = vmatpush2.msra.mxu1 %v1948_v52  ;;  %v2424_v52 = vld [vmem:[%s5775_s8 + $0x8] sm:$0xff] }
 0x2b2   : > { %2091 = vmatprep.subr.mxu1 %v1947_v10 }
 0x2b3   : > { %2092 = vmatpush2.msra.mxu1 %v1946_v54  ;;  %v2486_v54 = vld [vmem:[%s5775_s8 + $0x1f8] sm:$0xff] }
 0x2b4   : > { %2093 = vmatprep.subr.mxu1 %v1945_v55 }
 0x2b5   : > { %2094 = vmatpush2.msra.mxu1 %v1944_v56  ;;  %v2485_v56 = vld [vmem:[%s5775_s8 + $0x1f0] sm:$0xff] }
 0x2b6   : > { %2095 = vmatprep.subr.mxu1 %v1943_v58  ;;  %v2484_v58 = vld [vmem:[%s5775_s8 + $0x1e8] sm:$0xff] }
 0x2b7   : > { %2096 = vmatpush2.msra.mxu1 %v1942_v59  ;;  %v2483_v59 = vld [vmem:[%s5775_s8 + $0x1e0] sm:$0xff] }
 0x2b8   : > { %2097 = vmatprep.subr.mxu1 %v1941_v60 }
 0x2b9   : > { %2098 = vmatpush2.msra.mxu1 %v1940_v61  ;;  %v2482_v61 = vld [vmem:[%s5775_s8 + $0x1d8] sm:$0xff] }
 0x2ba   : > { %2099 = vmatprep.subr.mxu1 %v1939_v63  ;;  %v2481_v63 = vld [vmem:[%s5775_s8 + $0x1d0] sm:$0xff] }
 0x2bb   : > { %2100 = vmatpush2.msra.mxu1 %v1938_v1 }
 0x2bc   : > { %2101 = vmatprep.subr.mxu1 %v1937_v2  ;;  %v2480_v2 = vld [vmem:[%s5775_s8 + $0x1c8] sm:$0xff] }
 0x2bd   : > { %2102 = vmatpush2.msra.mxu1 %v1936_v3  ;;  %v2479_v3 = vld [vmem:[%s5775_s8 + $0x1c0] sm:$0xff] }
 0x2be   : > { %2104 = vmatmul.mubr.f32.vlgmr.msra.gmra.mxu1 %v1835_v4  ;;  %2551 = vmatprep.subr.mxu1 %v2454_v5  ;;  %v2478_v5 = vld [vmem:[%s5775_s8 + $0x1b8] sm:$0xff] }
 0x2bf   : > { %2552 = vmatpush1.msra.mxu1 %v2453_v6 }
 0x2c0   : > { %2553 = vmatprep.subr.mxu1 %v2452_v8  ;;  %v2477_v8 = vld [vmem:[%s5775_s8 + $0x1b0] sm:$0xff] }
 0x2c1   : > { %2554 = vmatpush1.msra.mxu1 %v2451_v9  ;;  %v5167_v9 = vld [vmem:[%s5152_s19 + $0x8] sm:$0xff] }
 0x2c2   : > { %2555 = vmatprep.subr.mxu1 %v2450_v11 }
 0x2c3   : > { %2556 = vmatpush1.msra.mxu1 %v2449_v13  ;;  %v2476_v13 = vld [vmem:[%s5775_s8 + $0x1a8] sm:$0xff] }
 0x2c4   : > { %2557 = vmatprep.subr.mxu1 %v2448_v14  ;;  %v5173_v14 = vld [vmem:[%s5152_s19 + $0x18] sm:$0xff] }
 0x2c5   : > { %2558 = vmatpush1.msra.mxu1 %v2447_v16  ;;  %v2475_v16 = vld [vmem:[%s5775_s8 + $0x1a0] sm:$0xff] }
 0x2c6   : > { %2559 = vmatprep.subr.mxu1 %v2446_v18  ;;  %v5179_v18 = vld [vmem:[%s5152_s19 + $0x28] sm:$0xff] }
 0x2c7   : > { %2560 = vmatpush1.msra.mxu1 %v2445_v20  ;;  %v2377_v20 = vadd.f32 %v5173_v14, %v5167_v9 }
 0x2c8   : > { %2561 = vmatprep.subr.mxu1 %v2444_v22 }
 0x2c9   : > { %2562 = vmatpush1.msra.mxu1 %v2443_v25  ;;  %v2474_v25 = vld [vmem:[%s5775_s8 + $0x198] sm:$0xff] }
 0x2ca   : > { %2563 = vmatprep.subr.mxu1 %v2442_v27  ;;  %v5187_v27 = vld [vmem:[%s5152_s19] sm:$0xff] }
 0x2cb   : > { %2564 = vmatpush1.msra.mxu1 %v2441_v31 }
 0x2cc   : > { %2565 = vmatprep.subr.mxu1 %v2440_v26  ;;  %v5193_v26 = vld [vmem:[%s5152_s19 + $0x38] sm:$0xff] }
 0x2cd   : > { %2566 = vmatpush1.msra.mxu1 %v2439_v30  ;;  %v2378_v30 = vadd.f32 %v2377_v20, %v5179_v18 }
 0x2ce   : > { %2567 = vmatprep.subr.mxu1 %v2438_v34  ;;  %v2472_v34 = vld [vmem:[%s5775_s8 + $0x188] sm:$0xff] }
 0x2cf   : > { %2568 = vmatpush1.msra.mxu1 %v2437_v17  ;;  %v2471_v17 = vld [vmem:[%s5775_s8 + $0x180] sm:$0xff] }
 0x2d0   : > { %2569 = vmatprep.subr.mxu1 %v2436_v38  ;;  %v5207_v38 = vld [vmem:[%s5152_s19 + $0x20] sm:$0xff] }
 0x2d1   : > { %2570 = vmatpush1.msra.mxu1 %v2435_v39 }
 0x2d2   : > { %2571 = vmatprep.subr.mxu1 %v2434_v41  ;;  %v2470_v41 = vld [vmem:[%s5775_s8 + $0x178] sm:$0xff] }
 0x2d3   : > { %2572 = vmatpush1.msra.mxu1 %v2433_v23 }
 0x2d4   : > { %2573 = vmatprep.subr.mxu1 %v2432_v29 }
 0x2d5   : > { %2574 = vmatpush1.msra.mxu1 %v2431_v21 }
 0x2d6   : > { %2575 = vmatprep.subr.mxu1 %v2430_v24  ;;  %v2468_v24 = vld [vmem:[%s5775_s8 + $0x168] sm:$0xff] }
 0x2d7   : > { %2576 = vmatpush1.msra.mxu1 %v2429_v45 }
 0x2d8   : > { %2577 = vmatprep.subr.mxu1 %v2428_v47 }
 0x2d9   : > { %2578 = vmatpush1.msra.mxu1 %v2427_v48  ;;  %v2466_v48 = vld [vmem:[%s5775_s8 + $0x158] sm:$0xff] }
 0x2da   : > { %2579 = vmatprep.subr.mxu1 %v2426_v7  ;;  %v2465_v7 = vld [vmem:[%s5775_s8 + $0x150] sm:$0xff] }
 0x2db   : > { %2580 = vmatpush1.msra.mxu1 %v2425_v50 }
 0x2dc   : > { %2581 = vmatprep.subr.mxu1 %v2424_v52  ;;  %v2463_v52 = vld [vmem:[%s5775_s8 + $0x140] sm:$0xff] }
 0x2dd   : > { %2582 = vmatpush1.msra.mxu1 %v2423_v53 }
 0x2de   : > { %2583 = vmatprep.subr.mxu1 %v2486_v54  ;;  %v2462_v54 = vld [vmem:[%s5775_s8 + $0x138] sm:$0xff] }
 0x2df   : > { %2584 = vmatpush2.msra.mxu1 %v2485_v56 }
 0x2e0   : > { %2585 = vmatprep.subr.mxu1 %v2484_v58  ;;  %v2460_v58 = vld [vmem:[%s5775_s8 + $0x128] sm:$0xff] }
 0x2e1   : > { %2586 = vmatpush2.msra.mxu1 %v2483_v59  ;;  %v2459_v59 = vld [vmem:[%s5775_s8 + $0x120] sm:$0xff] }
 0x2e2   : > { %2587 = vmatprep.subr.mxu1 %v2482_v61 }
 0x2e3   : > { %2588 = vmatpush2.msra.mxu1 %v2481_v63  ;;  %v2457_v63 = vld [vmem:[%s5775_s8 + $0x110] sm:$0xff] }
 0x2e4   : > { %2589 = vmatprep.subr.mxu1 %v2480_v2 }
 0x2e5   : > { %2590 = vmatpush2.msra.mxu1 %v2479_v3  ;;  %v2456_v3 = vld [vmem:[%s5775_s8 + $0x108] sm:$0xff] }
 0x2e6   : > { %2591 = vmatprep.subr.mxu1 %v2478_v5 }
 0x2e7   : > { %2592 = vmatpush2.msra.mxu1 %v2477_v8 }
 0x2e8   : > { %2593 = vmatprep.subr.mxu1 %v2476_v13 }
 0x2e9   : > { %2594 = vmatpush2.msra.mxu1 %v2475_v16 }
 0x2ea   : > { %2595 = vmatprep.subr.mxu1 %v2474_v25 }
 0x2ec   : > { %v2034_v13 = vpop.f32.mrf.mxu0 }
 0x33e   : > { %v1674_v32 = vpop.f32.mrf.mxu1 }
 0x340   : > { %v1676_v33 = vpop.f32.mrf.mxu1 }
 0x341   : > { %v1733_v35 = vadd.f32 %v1676_v33, %v1674_v32  ;;  %v2473_v32 = vld [vmem:[%s5775_s8 + $0x190] sm:$0xff] }
 0x342   : > { %v1680_v36 = vpop.f32.mrf.mxu1  ;;  %2596 = vmatpush2.msra.mxu1 %v2473_v32 }
 0x343   : > { %1734 = vadd.xlane.f32.xlu0 %v1733_v35  ;;  %v5200_v35 = vld [vmem:[%s5152_s19 + $0x10] sm:$0xff]  ;;  %2597 = vmatprep.subr.mxu1 %v2472_v34 }
 0x344   : > { %v1682_v40 = vpop.f32.mrf.mxu1  ;;  %v2368_v39 = vadd.f32 %v5200_v35, %v5187_v27  ;;  %2598 = vmatpush2.msra.mxu1 %v2471_v17 }
 0x345   : > { %v1736_v42 = vadd.f32 %v1682_v40, %v1680_v36  ;;  %v2379_v36 = vadd.f32 %v2378_v30, %v5193_v26  ;;  %2599 = vmatprep.subr.mxu1 %v2470_v41 }
 0x346   : > { %v1686_v43 = vpop.f32.mrf.mxu1  ;;  %v2369_v21 = vadd.f32 %v2368_v39, %v5207_v38 }
 0x347   : > { %1737 = vadd.xlane.f32.xlu1 %v1736_v42  ;;  %v5215_v42 = vld [vmem:[%s5152_s19 + $0x30] sm:$0xff]  ;;  %v2380_v29 = vrot.slane %v2379_v36, 4 }
 0x348   : > { %v1688_v19 = vpop.f32.mrf.mxu1 }
 0x349   : > { %v1739_v44 = vadd.f32 %v1688_v19, %v1686_v43  ;;  %v2469_v43 = vld [vmem:[%s5775_s8 + $0x170] sm:$0xff]  ;;  %v2381_v45 = vadd.f32 %v2380_v29, %v2379_v36 }
 0x34a   : > { %v1692_v46 = vpop.f32.mrf.mxu1  ;;  %2600 = vmatpush2.msra.mxu1 %v2469_v43 }
 0x34b   : > { %1740 = vadd.xlane.f32.xlu0 %v1739_v44  ;;  %2601 = vmatprep.subr.mxu1 %v2468_v24  ;;  %v2467_v44 = vld [vmem:[%s5775_s8 + $0x160] sm:$0xff] }
 0x34c   : > { %v1694_v49 = vpop.f32.mrf.mxu1  ;;  %2602 = vmatpush2.msra.mxu1 %v2467_v44 }
 0x34d   : > { %v1742_v12 = vadd.f32 %v1694_v49, %v1692_v46  ;;  %v2370_v46 = vadd.f32 %v2369_v21, %v5215_v42  ;;  %2603 = vmatprep.subr.mxu1 %v2466_v48  ;;  %v3508_v48 = vld [vmem:[%s4663_s20] sm:$0xff] }
 0x34e   : > { %v1698_v51 = vpop.f32.mrf.mxu1  ;;  %2604 = vmatpush2.msra.mxu1 %v2465_v7  ;;  %v3509_v7 = vld [vmem:[%s4663_s20 + $0x28] sm:$0xff] }
 0x34f   : > { %1743 = vadd.xlane.f32.xlu1 %v1742_v12  ;;  %v2382_v12 = vrot.slane %v2381_v45, 2  ;;  %v2371_v50 = vrot.slane %v2370_v46, 4 }
 0x350   : > { %v1700_v10 = vpop.f32.mrf.mxu1 }
 0x351   : > { %v1745_v55 = vadd.f32 %v1700_v10, %v1698_v51  ;;  %v2464_v51 = vld [vmem:[%s5775_s8 + $0x148] sm:$0xff]  ;;  %v2383_v53 = vadd.f32 %v2382_v12, %v2381_v45  ;;  %v2372_v10 = vadd.f32 %v2371_v50, %v2370_v46  ;;  %v3507_v46 = vld [vmem:[%s4663_s20 + $0x10] sm:$0xff]  ;;  %v3510_v50 = vld [vmem:[%s4663_s20 + $0x18] sm:$0xff] }
 0x352   : > { %v1704_v57 = vpop.f32.mrf.mxu1  ;;  %2605 = vmatprep.subr.mxu1 %v2464_v51 }
 0x353   : > { %1746 = vadd.xlane.f32.xlu0 %v1745_v55  ;;  %2606 = vmatpush2.msra.mxu1 %v2463_v52  ;;  %v2461_v55 = vld [vmem:[%s5775_s8 + $0x130] sm:$0xff]  ;;  %v2384_v56 = vrot.slane %v2383_v53, 1  ;;  %v3511_v52 = vld [vmem:[%s4663_s20 + $0x8] sm:$0xff] }
 0x354   : > { %v1706_v60 = vpop.f32.mrf.mxu1  ;;  %2607 = vmatprep.subr.mxu1 %v2462_v54  ;;  %v2517_v54 = vld [vmem:[%s5775_s8 + $0x2f0] sm:$0xff] }
 0x355   : > { %v1748_v62 = vadd.f32 %v1706_v60, %v1704_v57  ;;  %v2373_v57 = vrot.slane %v2372_v10, 2  ;;  %2608 = vmatpush2.msra.mxu1 %v2461_v55  ;;  %v2385_v60 = vadd.f32 %v2384_v56, %v2383_v53  ;;  %v2516_v55 = vld [vmem:[%s5775_s8 + $0x2e8] sm:$0xff]  ;;  %v2515_v56 = vld [vmem:[%s5775_s8 + $0x2e0] sm:$0xff] }
 0x356   : > { %v1710_v1 = vpop.f32.mrf.mxu1  ;;  %2609 = vmatprep.subr.mxu1 %v2460_v58  ;;  %v2514_v58 = vld [vmem:[%s5775_s8 + $0x2d8] sm:$0xff] }
 0x357   : > { %1749 = vadd.xlane.f32.xlu1 %v1748_v62  ;;  %v2374_v61 = vadd.f32 %v2373_v57, %v2372_v10  ;;  %2610 = vmatpush2.msra.mxu1 %v2459_v59  ;;  %v2458_v62 = vld [vmem:[%s5775_s8 + $0x118] sm:$0xff]  ;;  %v2145_v57 = vld [vmem:[%s5778_s11 + $0x8] sm:$0xff]  ;;  %v2398_v59 = vmax.f32 %v5167_v9, %v5179_v18 }
 0x358   : > { %v1712_v4 = vpop.f32.mrf.mxu1  ;;  %2611 = vmatprep.subr.mxu1 %v2458_v62  ;;  %v2518_v10 = vld [vmem:[%s5775_s8 + $0x2f8] sm:$0xff]  ;;  %v2512_v62 = vld [vmem:[%s5775_s8 + $0x2c8] sm:$0xff] }
 0x359   : > { %v1751_v6 = vadd.f32 %v1712_v4, %v1710_v1  ;;  %v2388_v1 = vmul.f32 0.03125, %v2385_v60  ;;  %v2375_v2 = vrot.slane %v2374_v61, 1  ;;  %2612 = vmatpush2.msra.mxu1 %v2457_v63  ;;  %v2455_v4 = vld [vmem:[%s5775_s8 + $0x100] sm:$0xff]  ;;  %v2399_v60 = vmax.f32 %v5173_v14, %v5193_v26 }
 0x35a   : > { %v1716_v11 = vpop.f32.mrf.mxu1  ;;  %2613 = vmatprep.subr.mxu1 %v2456_v3  ;;  %v2511_v63 = vld [vmem:[%s5775_s8 + $0x2c0] sm:$0xff] }
 0x35b   : > { %1752 = vadd.xlane.f32.xlu0 %v1751_v6  ;;  %v2414_v5 = vrot.slane %v2388_v1, %v4017_v15  ;;  %v2376_v6 = vadd.f32 %v2375_v2, %v2374_v61  ;;  %2614 = vmatpush2.msra.mxu1 %v2455_v4  ;;  %v2513_v61 = vld [vmem:[%s5775_s8 + $0x2d0] sm:$0xff]  ;;  %v2510_v2 = vld [vmem:[%s5775_s8 + $0x2b8] sm:$0xff]  ;;  %v2400_v3 = vmax.f32 %v2398_v59, %v2399_v60  ;;  %v2544_v60 = vld [vmem:[%s5775_s8 + $0x3c8] sm:$0xff] }
 0x35c   : > { %v1718_v22 = vpop.f32.mrf.mxu1  ;;  %v2146_v1 = vld [vmem:[%s5778_s11 + $0x10] sm:$0xff] }
 0x35d   : > { %v1754_v31 = vadd.f32 %v1718_v22, %v1716_v11  ;;  %2615 = vmatprep.mubr.f32.mxu1 %v2414_v5  ;;  %v2387_v8 = vmul.f32 0.03125, %v2376_v6  ;;  %v2036_v22 = vpop.f32.mrf.mxu0  ;;  %v2509_v4 = vld [vmem:[%s5775_s8 + $0x2b0] sm:$0xff]  ;;  %v2508_v5 = vld [vmem:[%s5775_s8 + $0x2a8] sm:$0xff]  ;;  %v2507_v6 = vld [vmem:[%s5775_s8 + $0x2a0] sm:$0xff] }
 0x35e   : > { %v1722_v33 = vpop.f32.mrf.mxu1  ;;  %v2545_v59 = vld [vmem:[%s5775_s8 + $0x3d0] sm:$0xff] }
 0x35f   : > { %1755 = vadd.xlane.f32.xlu1 %v1754_v31  ;;  %v2410_v11 = vrot.slane %v2387_v8, %v4017_v15  ;;  %v2147_v8 = vld [vmem:[%s5778_s11 + $0x18] sm:$0xff] }
 0x360   : > { %v1724_v40 = vpop.f32.mrf.mxu1 }
 0x361   : > { %v1757_v23 = vadd.f32 %v1724_v40, %v1722_v33  ;;  %2616 = vmatmul.mubr.f32.vlgmr.msra.gmra.mxu1 %v2410_v11  ;;  %v2506_v11 = vld [vmem:[%s5775_s8 + $0x298] sm:$0xff] }
 0x362   : > { %v1728_v19 = vpop.f32.mrf.mxu1  ;;  %2860 = vmatprep.mubr.f32.mxu1 %v3528_v37 }
 0x363   : > { %1758 = vadd.xlane.f32.xlu0 %v1757_v23 }
 0x364   : > { %v1730_v47 = vpop.f32.mrf.mxu1 }
 0x365   : > { %v1760_v49 = vadd.f32 %v1730_v47, %v1728_v19 }
 0x367   : > { %1761 = vadd.xlane.f32.xlu1 %v1760_v49 }
 0x37e   : > { %v2105_v16 = vpop.f32.mrf.mxu1 }
 0x37f   : > { %v2106_v20 = vadd.f32 %v2105_v16, %v2034_v13  ;;  %v2401_v13 = vrot.slane %v2400_v3, 4  ;;  %v2505_v16 = vld [vmem:[%s5775_s8 + $0x290] sm:$0xff] }
 0x380   : > { %v2107_v25 = vpop.f32.mrf.mxu1 }
 0x381   : > { %v2110_v31 = vadd.f32 %v2106_v20, %v4273_v0  ;;  %v2108_v32 = vadd.f32 %v2107_v25, %v2036_v22  ;;  %v2504_v20 = vld [vmem:[%s5775_s8 + $0x288] sm:$0xff]  ;;  %v2503_v22 = vld [vmem:[%s5775_s8 + $0x280] sm:$0xff] }
 0x382   : > { %v2148_v25 = vld [vmem:[%s5778_s11 + $0x20] sm:$0xff] }
 0x383   : > { %v2112_v30 = vsub.f32 0.0, %v2110_v31  ;;  %v2111_v33 = vadd.f32 %v2108_v32, %v4273_v0  ;;  %v2502_v31 = vld [vmem:[%s5775_s8 + $0x278] sm:$0xff]  ;;  %v2402_v32 = vmax.f32 %v2400_v3, %v2401_v13  ;;  %v2539_v3 = vld [vmem:[%s5775_s8 + $0x3a0] sm:$0xff] }
 0x385   : > { %v2114_v34 = vmul.f32 1.442695, %v2112_v30  ;;  %v2113_v17 = vsub.f32 0.0, %v2111_v33  ;;  %v2501_v30 = vld [vmem:[%s5775_s8 + $0x270] sm:$0xff]  ;;  %v2500_v33 = vld [vmem:[%s5775_s8 + $0x268] sm:$0xff] }
 0x387   : > { %3451 = vpow2.f32 %v2114_v34  ;;  %v2116_v36 = vmul.f32 1.442695, %v2113_v17  ;;  %v2499_v34 = vld [vmem:[%s5775_s8 + $0x260] sm:$0xff]  ;;  %v2149_v17 = vld [vmem:[%s5778_s11 + $0x28] sm:$0xff] }
 0x389   : > { %3453 = vpow2.f32 %v2116_v36  ;;  %v2498_v36 = vld [vmem:[%s5775_s8 + $0x258] sm:$0xff] }
 0x394   : > { %v3452_v39 = vpop.eup %3451 }
 0x395   : > { %v2118_v40 = vadd.f32 1.0, %v3452_v39  ;;  %v2403_v39 = vrot.slane %v2402_v32, 2 }
 0x396   : > { %v3454_v41 = vpop.eup %3453 }
 0x397   : > { %3455 = vrcp.f32 %v2118_v40  ;;  %v2119_v23 = vadd.f32 1.0, %v3454_v41  ;;  %v2497_v40 = vld [vmem:[%s5775_s8 + $0x250] sm:$0xff]  ;;  %v2496_v41 = vld [vmem:[%s5775_s8 + $0x248] sm:$0xff] }
 0x399   : > { %3457 = vrcp.f32 %v2119_v23  ;;  %v2495_v23 = vld [vmem:[%s5775_s8 + $0x240] sm:$0xff] }
 0x3a4   : > { %v3456_v43 = vpop.eup %3455 }
 0x3a5   : > { %v2122_v29 = vadd.f32 1.0, %v3456_v43  ;;  %v2150_v43 = vld [vmem:[%s5778_s11 + $0x30] sm:$0xff] }
 0x3a6   : > { %v3458_v21 = vpop.eup %3457 }
 0x3a7   : > { %v2123_v19 = vadd.f32 1.0, %v3458_v21  ;;  %v2127_v24 = vrot.slane %v2122_v29, %v4017_v15  ;;  %v2494_v29 = vld [vmem:[%s5775_s8 + $0x238] sm:$0xff]  ;;  %v2404_v21 = vmax.f32 %v2402_v32, %v2403_v39  ;;  %v2525_v39 = vld [vmem:[%s5775_s8 + $0x330] sm:$0xff] }
 0x3a8   : > { %v2530_v32 = vld [vmem:[%s5775_s8 + $0x358] sm:$0xff] }
 0x3a9   : > { %v2131_v44 = vrot.slane %v2123_v19, %v4017_v15  ;;  %v2136_v45 = vmul.f32 %v2127_v24, %v4711_v28  ;;  %v2134_v47 = vmul.f32 %v3507_v46, %v2127_v24  ;;  %v2132_v49 = vmul.f32 %v3508_v48, %v2127_v24  ;;  %v2144_v28 = vld [vmem:[%s5778_s11] sm:$0xff]  ;;  %v2493_v19 = vld [vmem:[%s5775_s8 + $0x230] sm:$0xff]  ;;  %v2492_v24 = vld [vmem:[%s5775_s8 + $0x228] sm:$0xff] }
 0x3aa   : > { %v2490_v46 = vld [vmem:[%s5775_s8 + $0x218] sm:$0xff]  ;;  %v2489_v48 = vld [vmem:[%s5775_s8 + $0x210] sm:$0xff] }
 0x3ab   : > { %v2137_v12 = vmul.f32 %v3509_v7, %v2131_v44  ;;  %2142 = vst [vmem:[%s5275_s3 + $0x20] sm:$0xff] %v2136_v45  ;;  %v2135_v51 = vmul.f32 %v3510_v50, %v2131_v44  ;;  %2140 = vst [vmem:[%s5275_s3 + $0x10] sm:$0xff] %v2134_v47  ;;  %v2133_v53 = vmul.f32 %v3511_v52, %v2131_v44  ;;  %v2491_v44 = vld [vmem:[%s5775_s8 + $0x220] sm:$0xff]  ;;  %v2550_v52 = vld [vmem:[%s5775_s8 + $0x3f8] sm:$0xff] }
 0x3ac   : > { %2138 = vst [vmem:[%s5275_s3] sm:$0xff] %v2132_v49  ;;  %v2487_v7 = vld [vmem:[%s5775_s8 + $0x200] sm:$0xff]  ;;  %v2389_v50 = vmax.f32 %v5187_v27, %v5207_v38 }
 0x3ad   : > { %2143 = vst [vmem:[%s5275_s3 + $0x28] sm:$0xff] %v2137_v12  ;;  %2211 = vmatprep.subr.mxu0 %v2137_v12  ;;  %2141 = vst [vmem:[%s5275_s3 + $0x18] sm:$0xff] %v2135_v51  ;;  %v2390_v12 = vmax.f32 %v5200_v35, %v5215_v42 }
 0x3ae   : > { %2139 = vst [vmem:[%s5275_s3 + $0x8] sm:$0xff] %v2133_v53  ;;  %2212 = vmatpush1.msra.mxu0 %v2136_v45  ;;  %v2151_v45 = vld [vmem:[%s5778_s11 + $0x38] sm:$0xff] }
 0x3af   : > { %2213 = vmatprep.subr.mxu0 %v2135_v51  ;;  %v2152_v51 = vld [vmem:[%s5778_s11 + $0x40] sm:$0xff] }
 0x3b0   : > { %2214 = vmatpush1.msra.mxu0 %v2134_v47  ;;  %v2405_v47 = vrot.slane %v2404_v21, 1 }
 0x3b1   : > { %2215 = vmatprep.subr.mxu0 %v2133_v53 }
 0x3b2   : > { %2216 = vmatpush1.msra.mxu0 %v2132_v49  ;;  %v2488_v49 = vld [vmem:[%s5775_s8 + $0x208] sm:$0xff]  ;;  %v2406_v53 = vmax.f32 %v2404_v21, %v2405_v47 }
 0x3b3   : > { %3386 = vmatmul.mubr.msk.f32.vlgmr.msra.gmra.mxu0 %vm2154_vm2, %v2144_v28  ;;  %2622 = vmatprep.subr.mxu0 %v2518_v10  ;;  %v2549_v28 = vld [vmem:[%s5775_s8 + $0x3f0] sm:$0xff]  ;;  %v2548_v10 = vld [vmem:[%s5775_s8 + $0x3e8] sm:$0xff] }
 0x3b4   : > { %2623 = vmatpush1.msra.mxu0 %v2517_v54  ;;  %2255 = vmatprep.mubr.f32.mxu0 %v3528_v37  ;;  %v2547_v54 = vld [vmem:[%s5775_s8 + $0x3e0] sm:$0xff]  ;;  %v2520_v21 = vld [vmem:[%s5775_s8 + $0x308] sm:$0xff] }
 0x3b5   : > { %2624 = vmatprep.subr.mxu0 %v2516_v55  ;;  %v2391_v55 = vmax.f32 %v2389_v50, %v2390_v12 }
 0x3b6   : > { %2625 = vmatpush1.msra.mxu0 %v2515_v56  ;;  %v2153_v56 = vld [vmem:[%s5778_s11 + $0x48] sm:$0xff] }
 0x3b7   : > { %3387 = vmatmul.mubr.msk.f32.gmra.mxu0 %vm2154_vm2, %v2145_v57  ;;  %2626 = vmatprep.subr.mxu0 %v2514_v58  ;;  %v2546_v57 = vld [vmem:[%s5775_s8 + $0x3d8] sm:$0xff]  ;;  %v2422_v58 = vrot.slane %v2406_v53, %v4017_v15 }
 0x3b8   : > { %2627 = vmatpush1.msra.mxu0 %v2513_v61  ;;  %2261 = vmatprep.mubr.f32.mxu0 %v3528_v37  ;;  %v2543_v61 = vld [vmem:[%s5775_s8 + $0x3c0] sm:$0xff] }
 0x3b9   : > { %2628 = vmatprep.subr.mxu0 %v2512_v62  ;;  %v2392_v62 = vrot.slane %v2391_v55, 4 }
 0x3ba   : > { %2629 = vmatpush1.msra.mxu0 %v2511_v63  ;;  %v2542_v63 = vld [vmem:[%s5775_s8 + $0x3b8] sm:$0xff] }
 0x3bb   : > { %3388 = vmatmul.mubr.msk.f32.gmra.mxu0 %vm2154_vm2, %v2146_v1  ;;  %2630 = vmatprep.subr.mxu0 %v2510_v2  ;;  %v2541_v1 = vld [vmem:[%s5775_s8 + $0x3b0] sm:$0xff]  ;;  %v2540_v2 = vld [vmem:[%s5775_s8 + $0x3a8] sm:$0xff] }
 0x3bc   : > { %2631 = vmatpush1.msra.mxu0 %v2509_v4  ;;  %2267 = vmatprep.mubr.f32.mxu0 %v3528_v37  ;;  %v2393_v4 = vmax.f32 %v2391_v55, %v2392_v62 }
 0x3bd   : > { %2632 = vmatprep.subr.mxu0 %v2508_v5  ;;  %v2538_v5 = vld [vmem:[%s5775_s8 + $0x398] sm:$0xff] }
 0x3be   : > { %2633 = vmatpush1.msra.mxu0 %v2507_v6  ;;  %v2537_v6 = vld [vmem:[%s5775_s8 + $0x390] sm:$0xff]  ;;  %v2394_v13 = vrot.slane %v2393_v4, 2 }
 0x3bf   : > { %3389 = vmatmul.mubr.msk.f32.gmra.mxu0 %vm2154_vm2, %v2147_v8  ;;  %2634 = vmatprep.subr.mxu0 %v2506_v11  ;;  %v2536_v8 = vld [vmem:[%s5775_s8 + $0x388] sm:$0xff]  ;;  %v2535_v11 = vld [vmem:[%s5775_s8 + $0x380] sm:$0xff] }
 0x3c0   : > { %2635 = vmatpush1.msra.mxu0 %v2505_v16  ;;  %2273 = vmatprep.mubr.f32.mxu0 %v3528_v37  ;;  %v2534_v16 = vld [vmem:[%s5775_s8 + $0x378] sm:$0xff] }
 0x3c1   : > { %2636 = vmatprep.subr.mxu0 %v2504_v20  ;;  %v2533_v20 = vld [vmem:[%s5775_s8 + $0x370] sm:$0xff] }
 0x3c2   : > { %2637 = vmatpush1.msra.mxu0 %v2503_v22  ;;  %v2532_v22 = vld [vmem:[%s5775_s8 + $0x368] sm:$0xff] }
 0x3c3   : > { %3390 = vmatmul.mubr.msk.f32.gmra.mxu0 %vm2154_vm2, %v2148_v25  ;;  %2638 = vmatprep.subr.mxu0 %v2502_v31  ;;  %v2531_v25 = vld [vmem:[%s5775_s8 + $0x360] sm:$0xff]  ;;  %v2395_v31 = vmax.f32 %v2393_v4, %v2394_v13 }
 0x3c4   : > { %2639 = vmatpush1.msra.mxu0 %v2501_v30  ;;  %2279 = vmatprep.mubr.f32.mxu0 %v3528_v37  ;;  %v2529_v30 = vld [vmem:[%s5775_s8 + $0x350] sm:$0xff] }
 0x3c5   : > { %2640 = vmatprep.subr.mxu0 %v2500_v33  ;;  %v2528_v33 = vld [vmem:[%s5775_s8 + $0x348] sm:$0xff] }
 0x3c6   : > { %2641 = vmatpush1.msra.mxu0 %v2499_v34  ;;  %v2527_v34 = vld [vmem:[%s5775_s8 + $0x340] sm:$0xff] }
 0x3c7   : > { %3391 = vmatmul.mubr.msk.f32.gmra.mxu0 %vm2154_vm2, %v2149_v17  ;;  %2642 = vmatprep.subr.mxu0 %v2498_v36  ;;  %v2396_v17 = vrot.slane %v2395_v31, 1  ;;  %v2526_v36 = vld [vmem:[%s5775_s8 + $0x338] sm:$0xff] }
 0x3c8   : > { %2643 = vmatpush1.msra.mxu0 %v2497_v40  ;;  %2285 = vmatprep.mubr.f32.mxu0 %v3528_v37  ;;  %v2524_v40 = vld [vmem:[%s5775_s8 + $0x328] sm:$0xff] }
 0x3c9   : > { %2644 = vmatprep.subr.mxu0 %v2496_v41  ;;  %v2523_v41 = vld [vmem:[%s5775_s8 + $0x320] sm:$0xff] }
 0x3ca   : > { %2645 = vmatpush1.msra.mxu0 %v2495_v23  ;;  %v2397_v23 = vmax.f32 %v2395_v31, %v2396_v17 }
 0x3cb   : > { %3392 = vmatmul.mubr.msk.f32.gmra.mxu0 %vm2154_vm2, %v2150_v43  ;;  %2646 = vmatprep.subr.mxu0 %v2494_v29  ;;  %v2522_v43 = vld [vmem:[%s5775_s8 + $0x318] sm:$0xff]  ;;  %v2521_v29 = vld [vmem:[%s5775_s8 + $0x310] sm:$0xff] }
 0x3cc   : > { %2647 = vmatpush1.msra.mxu0 %v2493_v19  ;;  %2291 = vmatprep.mubr.f32.mxu0 %v3528_v37  ;;  %v2519_v19 = vld [vmem:[%s5775_s8 + $0x300] sm:$0xff] }
 0x3cd   : > { %2648 = vmatprep.subr.mxu0 %v2492_v24  ;;  %v2418_v24 = vrot.slane %v2397_v23, %v4017_v15 }
 0x3ce   : > { %2649 = vmatpush1.msra.mxu0 %v2491_v44 }
 0x3cf   : > { %3393 = vmatmul.mubr.msk.f32.gmra.mxu0 %vm2154_vm2, %v2151_v45  ;;  %2650 = vmatprep.subr.mxu0 %v2490_v46 }
 0x3d0   : > { %2651 = vmatpush1.msra.mxu0 %v2489_v48  ;;  %2297 = vmatprep.mubr.f32.mxu0 %v3528_v37 }
 0x3d1   : > { %2652 = vmatprep.subr.mxu0 %v2488_v49 }
 0x3d2   : > { %2653 = vmatpush1.msra.mxu0 %v2487_v7 }
 0x3d3   : > { %3394 = vmatmul.mubr.msk.f32.gmra.mxu0 %vm2154_vm2, %v2152_v51  ;;  %2654 = vmatprep.subr.mxu0 %v2550_v52 }
 0x3d4   : > { %2655 = vmatpush2.msra.mxu0 %v2549_v28  ;;  %2303 = vmatprep.mubr.f32.mxu0 %v3528_v37 }
 0x3d5   : > { %2656 = vmatprep.subr.mxu0 %v2548_v10 }
 0x3d6   : > { %2657 = vmatpush2.msra.mxu0 %v2547_v54 }
 0x3d7   : > { %3395 = vmatmul.mubr.msk.f32.gmra.mxu0 %vm2154_vm2, %v2153_v56  ;;  %2658 = vmatprep.subr.mxu0 %v2546_v57 }
 0x3d8   : > { %2659 = vmatpush2.msra.mxu0 %v2545_v59  ;;  %2686 = vmatprep.mubr.f32.mxu0 %v2422_v58 }
 0x3d9   : > { %2660 = vmatprep.subr.mxu0 %v2544_v60 }
 0x3da   : > { %2661 = vmatpush2.msra.mxu0 %v2543_v61 }
 0x3db   : > { %2662 = vmatprep.subr.mxu0 %v2542_v63 }
 0x3dc   : > { %2663 = vmatpush2.msra.mxu0 %v2541_v1 }
 0x3dd   : > { %2664 = vmatprep.subr.mxu0 %v2540_v2 }
 0x3de   : > { %2665 = vmatpush2.msra.mxu0 %v2539_v3 }
 0x3df   : > { %2666 = vmatprep.subr.mxu0 %v2538_v5 }
 0x3e0   : > { %2667 = vmatpush2.msra.mxu0 %v2537_v6 }
 0x3e1   : > { %2668 = vmatprep.subr.mxu0 %v2536_v8 }
 0x3e2   : > { %2669 = vmatpush2.msra.mxu0 %v2535_v11 }
 0x3e3   : > { %2670 = vmatprep.subr.mxu0 %v2534_v16 }
 0x3e4   : > { %2671 = vmatpush2.msra.mxu0 %v2533_v20 }
 0x3e5   : > { %2672 = vmatprep.subr.mxu0 %v2532_v22 }
 0x3e6   : > { %2673 = vmatpush2.msra.mxu0 %v2531_v25 }
 0x3e7   : > { %2674 = vmatprep.subr.mxu0 %v2530_v32 }
 0x3e8   : > { %2675 = vmatpush2.msra.mxu0 %v2529_v30 }
 0x3e9   : > { %2676 = vmatprep.subr.mxu0 %v2528_v33 }
 0x3ea   : > { %2677 = vmatpush2.msra.mxu0 %v2527_v34 }
 0x3eb   : > { %2678 = vmatprep.subr.mxu0 %v2526_v36 }
 0x3ec   : > { %2679 = vmatpush2.msra.mxu0 %v2525_v39 }
 0x3ed   : > { %2680 = vmatprep.subr.mxu0 %v2524_v40 }
 0x3ee   : > { %2681 = vmatpush2.msra.mxu0 %v2523_v41 }
 0x3ef   : > { %2682 = vmatprep.subr.mxu0 %v2522_v43 }
 0x3f0   : > { %2683 = vmatpush2.msra.mxu0 %v2521_v29 }
 0x3f1   : > { %2684 = vmatprep.subr.mxu0 %v2520_v21 }
 0x3f2   : > { %2685 = vmatpush2.msra.mxu0 %v2519_v19 }
 0x3f3   : > { %2687 = vmatmul.mubr.f32.vlgmr.msra.gmra.mxu0 %v2418_v24 }
 0x3f4   : > { %2836 = vmatprep.mubr.f32.mxu0 %v3528_v37 }
 0x421   : > { %v2617_v8 = vpop.f32.mrf.mxu1 }
 0x423   : > { %v2619_v16 = vpop.f32.mrf.mxu1 }
 0x473   : > { %v2251_v44 = vpop.f32.mrf.mxu0 }
 0x475   : > { %v2253_v45 = vpop.f32.mrf.mxu0 }
 0x476   : > { %v2310_v46 = vadd.f32 %v2253_v45, %v2251_v44 }
 0x477   : > { %v2257_v47 = vpop.f32.mrf.mxu0 }
 0x478   : > { %2311 = vadd.xlane.f32.xlu0 %v2310_v46  ;;  %v2737_v46 = vld [vmem:[%s5779_s12 + $0x30] sm:$0xff] }
 0x479   : > { %v2259_v48 = vpop.f32.mrf.mxu0 }
 0x47a   : > { %v2313_v49 = vadd.f32 %v2259_v48, %v2257_v47  ;;  %v2734_v47 = vld [vmem:[%s5779_s12 + $0x18] sm:$0xff] }
 0x47b   : > { %v2263_v7 = vpop.f32.mrf.mxu0  ;;  %v2738_v48 = vld [vmem:[%s5779_s12 + $0x38] sm:$0xff] }
 0x47c   : > { %2314 = vadd.xlane.f32.xlu1 %v2313_v49  ;;  %v2739_v49 = vld [vmem:[%s5779_s12 + $0x40] sm:$0xff] }
 0x47d   : > { %v2265_v12 = vpop.f32.mrf.mxu0 }
 0x47e   : > { %v2316_v50 = vadd.f32 %v2265_v12, %v2263_v7  ;;  %v2740_v7 = vld [vmem:[%s5779_s12 + $0x48] sm:$0xff] }
 0x47f   : > { %v2269_v51 = vpop.f32.mrf.mxu0 }
 0x480   : > { %2317 = vadd.xlane.f32.xlu0 %v2316_v50 }
 0x481   : > { %v2271_v52 = vpop.f32.mrf.mxu0 }
 0x482   : > { %v2319_v53 = vadd.f32 %v2271_v52, %v2269_v51 }
 0x483   : > { %v2275_v28 = vpop.f32.mrf.mxu0 }
 0x484   : > { %2320 = vadd.xlane.f32.xlu1 %v2319_v53 }
 0x485   : > { %v2277_v10 = vpop.f32.mrf.mxu0 }
 0x486   : > { %v2322_v54 = vadd.f32 %v2277_v10, %v2275_v28 }
 0x487   : > { %v2281_v55 = vpop.f32.mrf.mxu0 }
 0x488   : > { %2323 = vadd.xlane.f32.xlu0 %v2322_v54 }
 0x489   : > { %v2283_v56 = vpop.f32.mrf.mxu0 }
 0x48a   : > { %v2325_v57 = vadd.f32 %v2283_v56, %v2281_v55 }
 0x48b   : > { %v2287_v58 = vpop.f32.mrf.mxu0 }
 0x48c   : > { %2326 = vadd.xlane.f32.xlu1 %v2325_v57 }
 0x48d   : > { %v2289_v59 = vpop.f32.mrf.mxu0 }
 0x48e   : > { %v2328_v60 = vadd.f32 %v2289_v59, %v2287_v58 }
 0x48f   : > { %v2293_v61 = vpop.f32.mrf.mxu0 }
 0x490   : > { %2329 = vadd.xlane.f32.xlu0 %v2328_v60 }
 0x491   : > { %v2295_v62 = vpop.f32.mrf.mxu0 }
 0x492   : > { %v2331_v63 = vadd.f32 %v2295_v62, %v2293_v61 }
 0x493   : > { %v2299_v1 = vpop.f32.mrf.mxu0 }
 0x494   : > { %2332 = vadd.xlane.f32.xlu1 %v2331_v63 }
 0x495   : > { %v2301_v2 = vpop.f32.mrf.mxu0 }
 0x496   : > { %v2334_v3 = vadd.f32 %v2301_v2, %v2299_v1 }
 0x497   : > { %v2305_v4 = vpop.f32.mrf.mxu0 }
 0x498   : > { %2335 = vadd.xlane.f32.xlu0 %v2334_v3 }
 0x499   : > { %v2307_v5 = vpop.f32.mrf.mxu0 }
 0x49a   : > { %v2337_v6 = vadd.f32 %v2307_v5, %v2305_v4 }
 0x49c   : > { %2338 = vadd.xlane.f32.xlu1 %v2337_v6 }
 0x4b3   : > { %v2688_v11 = vpop.f32.mrf.mxu0 }
 0x4b4   : > { %v2689_v13 = vadd.f32 %v2688_v11, %v2617_v8 }
 0x4b5   : > { %v2690_v20 = vpop.f32.mrf.mxu0 }
 0x4b6   : > { %v2693_v22 = vadd.f32 %v2689_v13, %v4273_v0  ;;  %v2691_v25 = vadd.f32 %v2690_v20, %v2619_v16 }
 0x4b8   : > { %v2695_v31 = vsub.f32 0.0, %v2693_v22  ;;  %v2694_v32 = vadd.f32 %v2691_v25, %v4273_v0  ;;  %v3529_v25 = vmov 0  }
 0x4b9   : > { %3433 = vset.pattern.permute.xlu0 %v3529_v25  ;;  %3434 = vset.pattern.permute.xlu1 %v3529_v25  ;;  %v655_v25 = vld [vmem:[%s5780_s13 + $0x38] sm:$0xff] }
 0x4ba   : > { %v2697_v30 = vmul.f32 1.442695, %v2695_v31  ;;  %v2696_v33 = vsub.f32 0.0, %v2694_v32  ;;  %v1168_v31 = vpop.xlane.xlu0 %1167  ;;  %v1174_v32 = vpop.xlane.xlu1 %1173 }
 0x4bc   : > { %3459 = vpow2.f32 %v2697_v30  ;;  %v2699_v34 = vmul.f32 1.442695, %v2696_v33 }
 0x4be   : > { %3461 = vpow2.f32 %v2699_v34  ;;  %v1171_v30 = vpop.xlane.xlu0 %1170  ;;  %v1177_v33 = vpop.xlane.xlu1 %1176 }
 0x4c2   : > { %v1180_v34 = vpop.xlane.xlu0 %1179 }
 0x4c9   : > { %v3460_v17 = vpop.eup %3459 }
 0x4ca   : > { %v2701_v36 = vadd.f32 1.0, %v3460_v17  ;;  %v1183_v17 = vpop.xlane.xlu1 %1182 }
 0x4cb   : > { %v3462_v39 = vpop.eup %3461 }
 0x4cc   : > { %3463 = vrcp.f32 %v2701_v36  ;;  %v2702_v40 = vadd.f32 1.0, %v3462_v39  ;;  %v1186_v36 = vpop.xlane.xlu0 %1185 }
 0x4ce   : > { %3465 = vrcp.f32 %v2702_v40  ;;  %v1189_v39 = vpop.xlane.xlu1 %1188 }
 0x4d0   : > { %v5634_v40 = vpop.xlane.xlu0 %1191 }
 0x4d9   : > { %v3464_v41 = vpop.eup %3463 }
 0x4da   : > { %v2705_v23 = vadd.f32 1.0, %v3464_v41  ;;  %v5636_v41 = vpop.xlane.xlu1 %1194 }
 0x4db   : > { %v3466_v43 = vpop.eup %3465 }
 0x4dc   : > { %v2706_v29 = vadd.f32 1.0, %v3466_v43  ;;  %v2710_v21 = vrot.slane %v2705_v23, %v4017_v15  ;;  %v1735_v23 = vpop.xlane.xlu0 %1734 }
 0x4de   : > { %v2714_v19 = vrot.slane %v2706_v29, %v4017_v15  ;;  %v5550_v24 = vmul.f32 %v2710_v21, %v5215_v42  ;;  %v5560_v45 = vmul.f32 %v2710_v21, %v5207_v38  ;;  %v2731_v38 = vld [vmem:[%s5779_s12] sm:$0xff]  ;;  %v2733_v42 = vld [vmem:[%s5779_s12 + $0x10] sm:$0xff]  ;;  %v1738_v43 = vpop.xlane.xlu1 %1737 }
 0x4e0   : > { %v5547_v0 = vmul.f32 %v2714_v19, %v5193_v26  ;;  %v5555_v44 = vmul.f32 %v2714_v19, %v5179_v18  ;;  %v5565_v15 = vmul.f32 %v2714_v19, %v5173_v14  ;;  %v5570_v18 = vmul.f32 %v2710_v21, %v5200_v35  ;;  %v2735_v35 = vld [vmem:[%s5779_s12 + $0x20] sm:$0xff]  ;;  %v1741_v29 = vpop.xlane.xlu0 %1740 }
 0x4e1   : > { %v5575_v26 = vmul.f32 %v2714_v19, %v5167_v9  ;;  %v5580_v14 = vmul.f32 %v2710_v21, %v5187_v27  ;;  %v2732_v9 = vld [vmem:[%s5779_s12 + $0x8] sm:$0xff] }
 0x4e2   : > { %2796 = vmatprep.subr.mxu0 %v5547_v0  ;;  %3414 = vmatprep.subr.mxu1 %v5547_v0  ;;  %v2736_v27 = vld [vmem:[%s5779_s12 + $0x28] sm:$0xff]  ;;  %v5638_v21 = vpop.xlane.xlu1 %1743 }
 0x4e3   : > { %2797 = vmatpush1.msra.mxu0 %v5550_v24  ;;  %3418 = vmatpush1.msra.mxu1 %v5550_v24 }
 0x4e4   : > { %2798 = vmatprep.subr.mxu0 %v5555_v44  ;;  %3415 = vmatprep.subr.mxu1 %v5555_v44  ;;  %v1747_v19 = vpop.xlane.xlu0 %1746 }
 0x4e5   : > { %2799 = vmatpush1.msra.mxu0 %v5560_v45  ;;  %3419 = vmatpush1.msra.mxu1 %v5560_v45 }
 0x4e6   : > { %2800 = vmatprep.subr.mxu0 %v5565_v15  ;;  %3416 = vmatprep.subr.mxu1 %v5565_v15 }
 0x4e7   : > { %2801 = vmatpush1.msra.mxu0 %v5570_v18  ;;  %3420 = vmatpush1.msra.mxu1 %v5570_v18 }
 0x4e8   : > { %2802 = vmatprep.subr.mxu0 %v5575_v26  ;;  %3417 = vmatprep.subr.mxu1 %v5575_v26 }
 0x4e9   : > { %2803 = vmatpush1.msra.mxu0 %v5580_v14  ;;  %3421 = vmatpush1.msra.mxu1 %v5580_v14 }
 0x4ea   : > { %3396 = vmatmul.mubr.msk.f32.vlgmr.msra.gmra.mxu0 %vm2741_vm3, %v2731_v38  ;;  %3400 = vmatmul.mubr.msk.f32.vlgmr.msra.gmra.mxu1 %vm2741_vm3, %v2735_v35  ;;  %v1750_v38 = vpop.xlane.xlu1 %1749  ;;  %v5640_v35 = vpop.xlane.xlu0 %1752 }
 0x4eb   : > { %2842 = vmatprep.mubr.f32.mxu0 %v3528_v37  ;;  %2866 = vmatprep.mubr.f32.mxu1 %v3528_v37 }
 0x4ee   : > { %3397 = vmatmul.mubr.msk.f32.gmra.mxu0 %vm2741_vm3, %v2732_v9  ;;  %3401 = vmatmul.mubr.msk.f32.gmra.mxu1 %vm2741_vm3, %v2736_v27  ;;  %v5642_v9 = vpop.xlane.xlu1 %1755  ;;  %v5644_v27 = vpop.xlane.xlu0 %1758 }
 0x4ef   : > { %2848 = vmatprep.mubr.f32.mxu0 %v3528_v37  ;;  %2872 = vmatprep.mubr.f32.mxu1 %v3528_v37 }
 0x4f2   : > { %3398 = vmatmul.mubr.msk.f32.gmra.mxu0 %vm2741_vm3, %v2733_v42  ;;  %3402 = vmatmul.mubr.msk.f32.gmra.mxu1 %vm2741_vm3, %v2737_v46  ;;  %v5646_v42 = vpop.xlane.xlu1 %1761 }
 0x4f3   : > { %2854 = vmatprep.mubr.f32.mxu0 %v3528_v37  ;;  %2878 = vmatprep.mubr.f32.mxu1 %v3528_v37 }
 0x4f6   : > { %3399 = vmatmul.mubr.msk.f32.gmra.mxu0 %vm2741_vm3, %v2734_v47  ;;  %3403 = vmatmul.mubr.msk.f32.gmra.mxu1 %vm2741_vm3, %v2738_v48 }
 0x4f7   : > { %2884 = vmatprep.mubr.f32.mxu1 %v3528_v37 }
 0x4fa   : > { %3404 = vmatmul.mubr.msk.f32.gmra.mxu1 %vm2741_vm3, %v2739_v49 }
 0x4fb   : > { %2890 = vmatprep.mubr.f32.mxu1 %v3528_v37 }
 0x4fe   : > { %3405 = vmatmul.mubr.msk.f32.gmra.mxu1 %vm2741_vm3, %v2740_v7 }
 0x501   : > { %v2312_v46 = vpop.xlane.xlu0 %2311 }
 0x505   : > { %v2315_v47 = vpop.xlane.xlu1 %2314 }
 0x509   : > { %v2318_v48 = vpop.xlane.xlu0 %2317 }
 0x50d   : > { %v5648_v49 = vpop.xlane.xlu1 %2320 }
 0x511   : > { %v2324_v7 = vpop.xlane.xlu0 %2323 }
 0x5aa   : > { %v2838_v12 = vpop.f32.mrf.mxu0  ;;  %v2862_v50 = vpop.f32.mrf.mxu1 }
 0x5ac   : > { %v2840_v51 = vpop.f32.mrf.mxu0  ;;  %v2864_v52 = vpop.f32.mrf.mxu1 }
 0x5ad   : > { %v2897_v53 = vadd.f32 %v2840_v51, %v2838_v12  ;;  %v2909_v56 = vadd.f32 %v2864_v52, %v2862_v50  ;;  %v2327_v12 = vpop.xlane.xlu1 %2326  ;;  %v2330_v50 = vpop.xlane.xlu0 %2329  ;;  %v1196_v51 = vmul.f32 0.00390625, %v1168_v31  ;;  %v648_v52 = vld [vmem:[%s5780_s13] sm:$0xff] }
 0x5ae   : > { %v2844_v28 = vpop.f32.mrf.mxu0  ;;  %v2868_v10 = vpop.f32.mrf.mxu1 }
 0x5af   : > { %2898 = vadd.xlane.f32.xlu0 %v2897_v53  ;;  %v1763_v53 = vmul.f32 0.00390625, %v1735_v23 }
 0x5b0   : > { %v2846_v54 = vpop.f32.mrf.mxu0  ;;  %v2870_v55 = vpop.f32.mrf.mxu1 }
 0x5b1   : > { %v2900_v57 = vadd.f32 %v2846_v54, %v2844_v28  ;;  %v2912_v59 = vadd.f32 %v2870_v55, %v2868_v10  ;;  %v1197_v28 = vmul.f32 0.00390625, %v1171_v30  ;;  %v5653_v10 = vpop.xlane.xlu1 %2332  ;;  %v5655_v54 = vpop.xlane.xlu0 %2335  ;;  %v1206_v55 = vadd.f32 %v1196_v51, %v648_v52 }
 0x5b2   : > { %v2850_v58 = vpop.f32.mrf.mxu0  ;;  %v2874_v37 = vpop.f32.mrf.mxu1  ;;  %v2342_v52 = vmul.f32 0.00390625, %v2318_v48 }
 0x5b3   : > { %2910 = vadd.xlane.f32.xlu0 %v2909_v56  ;;  %2901 = vadd.xlane.f32.xlu1 %v2900_v57  ;;  %v649_v56 = vld [vmem:[%s5780_s13 + $0x8] sm:$0xff]  ;;  %v1200_v57 = vmul.f32 0.00390625, %v1180_v34 }
 0x5b4   : > { %v2852_v60 = vpop.f32.mrf.mxu0  ;;  %v2876_v61 = vpop.f32.mrf.mxu1 }
 0x5b5   : > { %v2903_v62 = vadd.f32 %v2852_v60, %v2850_v58  ;;  %v2915_v2 = vadd.f32 %v2876_v61, %v2874_v37  ;;  %v2340_v58 = vmul.f32 0.00390625, %v2312_v46  ;;  %v1198_v37 = vmul.f32 0.00390625, %v1174_v32  ;;  %v652_v60 = vld [vmem:[%s5780_s13 + $0x20] sm:$0xff] }
 0x5b6   : > { %v2856_v63 = vpop.f32.mrf.mxu0  ;;  %v2880_v1 = vpop.f32.mrf.mxu1  ;;  %v1764_v61 = vmul.f32 0.00390625, %v1738_v43  ;;  %v2344_v32 = vmul.f32 0.00390625, %v2324_v7  ;;  %v1204_v7 = vmul.f32 0.00390625, %v5634_v40 }
 0x5b7   : > { %2904 = vadd.xlane.f32.xlu0 %v2903_v62  ;;  %2913 = vadd.xlane.f32.xlu1 %v2912_v59  ;;  %v1199_v59 = vmul.f32 0.00390625, %v1177_v33  ;;  %v650_v62 = vld [vmem:[%s5780_s13 + $0x10] sm:$0xff] }
 0x5b8   : > { %v2858_v3 = vpop.f32.mrf.mxu0  ;;  %v2882_v4 = vpop.f32.mrf.mxu1  ;;  %v1208_v33 = vadd.f32 %v1198_v37, %v650_v62 }
 0x5b9   : > { %v2906_v5 = vadd.f32 %v2858_v3, %v2856_v63  ;;  %v2918_v8 = vadd.f32 %v2882_v4, %v2880_v1  ;;  %v651_v63 = vld [vmem:[%s5780_s13 + $0x18] sm:$0xff]  ;;  %v1201_v1 = vmul.f32 0.00390625, %v1183_v17  ;;  %v1773_v3 = vadd.f32 %v1763_v53, %v1206_v55 }
 0x5ba   : > { %v2886_v6 = vpop.f32.mrf.mxu1  ;;  %v1767_v4 = vmul.f32 0.00390625, %v1747_v19  ;;  %v1209_v34 = vadd.f32 %v1199_v59, %v651_v63  ;;  %v1769_v59 = vmul.f32 0.00390625, %v5640_v35  ;;  %v2343_v35 = vmul.f32 0.00390625, %v5648_v49 }
 0x5bb   : > { %2916 = vadd.xlane.f32.xlu0 %v2915_v2  ;;  %2907 = vadd.xlane.f32.xlu1 %v2906_v5  ;;  %v1202_v2 = vmul.f32 0.00390625, %v1186_v36  ;;  %v1207_v5 = vadd.f32 %v1197_v28, %v649_v56  ;;  %v2350_v31 = vadd.f32 %v2340_v58, %v1773_v3  ;;  %v1765_v36 = vmul.f32 0.00390625, %v1741_v29 }
 0x5bc   : > { %v2888_v11 = vpop.f32.mrf.mxu1  ;;  %v2345_v29 = vmul.f32 0.00390625, %v2327_v12 }
 0x5bd   : > { %v2921_v13 = vadd.f32 %v2888_v11, %v2886_v6  ;;  %v653_v6 = vld [vmem:[%s5780_s13 + $0x28] sm:$0xff]  ;;  %v1203_v11 = vmul.f32 0.00390625, %v1189_v39  ;;  %v1774_v17 = vadd.f32 %v1764_v61, %v1207_v5  ;;  %v1775_v37 = vadd.f32 %v1765_v36, %v1208_v33 }
 0x5be   : > { %v2892_v16 = vpop.f32.mrf.mxu1  ;;  %v1211_v23 = vadd.f32 %v1201_v1, %v653_v6 }
 0x5bf   : > { %2922 = vadd.xlane.f32.xlu0 %v2921_v13  ;;  %2919 = vadd.xlane.f32.xlu1 %v2918_v8  ;;  %v654_v8 = vld [vmem:[%s5780_s13 + $0x30] sm:$0xff]  ;;  %v2341_v13 = vmul.f32 0.00390625, %v2315_v47  ;;  %v1213_v46 = vadd.f32 %v1203_v11, %v655_v25  ;;  %v1768_v47 = vmul.f32 0.00390625, %v1750_v38  ;;  %v1205_v38 = vmul.f32 0.00390625, %v5636_v41  ;;  %v656_v41 = vld [vmem:[%s5780_s13 + $0x40] sm:$0xff] }
 0x5c0   : > { %v2894_v20 = vpop.f32.mrf.mxu1  ;;  %v1212_v43 = vadd.f32 %v1202_v2, %v654_v8  ;;  %v2352_v1 = vadd.f32 %v2342_v52, %v1775_v37  ;;  %v2346_v2 = vmul.f32 0.00390625, %v2330_v50  ;;  %v1770_v50 = vmul.f32 0.00390625, %v5642_v9 }
 0x5c1   : > { %v2924_v22 = vadd.f32 %v2894_v20, %v2892_v16  ;;  %v5675_v16 = vpop.xlane.xlu1 %2338  ;;  %v2351_v51 = vadd.f32 %v2341_v13, %v1774_v17  ;;  %v1778_v48 = vadd.f32 %v1768_v47, %v1211_v23  ;;  %v1771_v25 = vmul.f32 0.00390625, %v5644_v27 }
 0x5c2   : > { %v1779_v8 = vadd.f32 %v1769_v59, %v1212_v43  ;;  %v2347_v43 = vmul.f32 0.00390625, %v5653_v10  ;;  %v1214_v9 = vadd.f32 %v1204_v7, %v656_v41  ;;  %v1772_v27 = vmul.f32 0.00390625, %v5646_v42 }
 0x5c3   : > { %2925 = vadd.xlane.f32.xlu1 %v2924_v22  ;;  %v1210_v22 = vadd.f32 %v1200_v57, %v652_v60  ;;  %v1766_v60 = vmul.f32 0.00390625, %v5638_v21  ;;  %v2355_v12 = vadd.f32 %v2345_v29, %v1778_v48  ;;  %v2349_v37 = vmul.f32 0.00390625, %v5675_v16 }
 0x5c5   : > { %v1777_v19 = vadd.f32 %v1767_v4, %v1210_v22  ;;  %v1776_v21 = vadd.f32 %v1766_v60, %v1209_v34  ;;  %v657_v34 = vld [vmem:[%s5780_s13 + $0x48] sm:$0xff] }
 0x5c7   : > { %v2354_v55 = vadd.f32 %v2344_v32, %v1777_v19  ;;  %v2353_v23 = vadd.f32 %v2343_v35, %v1776_v21 }
 0x638   : > { %v2899_v20 = vpop.xlane.xlu0 %2898 }
 0x639   : > { %v2927_v30 = vmul.f32 0.00390625, %v2899_v20 }
 0x63b   : > { %v2937_v39 = vadd.f32 %v2927_v30, %v2350_v31  ;;  %v2356_v31 = vadd.f32 %v2346_v2, %v1779_v8 }
 0x63c   : > { %v2911_v53 = vpop.xlane.xlu0 %2910  ;;  %v2902_v28 = vpop.xlane.xlu1 %2901 }
 0x63d   : > { %v2947_v56 = vsub.f32 0.0, %v2937_v39  ;;  %v2931_v57 = vmul.f32 0.00390625, %v2911_v53  ;;  %v2928_v58 = vmul.f32 0.00390625, %v2902_v28  ;;  %v2348_v39 = vmul.f32 0.00390625, %v5655_v54 }
 0x63f   : > { %v2957_v61 = vmul.f32 1.442695, %v2947_v56  ;;  %v2941_v62 = vadd.f32 %v2931_v57, %v2354_v55  ;;  %v2938_v63 = vadd.f32 %v2928_v58, %v2351_v51  ;;  %v1780_v51 = vadd.f32 %v1770_v50, %v1213_v46 }
 0x640   : > { %v2905_v3 = vpop.xlane.xlu0 %2904  ;;  %v2914_v4 = vpop.xlane.xlu1 %2913  ;;  %v1215_v57 = vadd.f32 %v1205_v38, %v657_v34  ;;  %v1781_v58 = vadd.f32 %v1771_v25, %v1214_v9 }
 0x641   : > { %3467 = vpow2.f32 %v2957_v61  ;;  %v2951_v5 = vsub.f32 0.0, %v2941_v62  ;;  %v2948_v6 = vsub.f32 0.0, %v2938_v63  ;;  %v2929_v40 = vmul.f32 0.00390625, %v2905_v3 }
 0x642   : > { %v2932_v11 = vmul.f32 0.00390625, %v2914_v4  ;;  %v2357_v10 = vadd.f32 %v2347_v43, %v1780_v51  ;;  %v1782_v60 = vadd.f32 %v1772_v27, %v1215_v57  ;;  %v2358_v42 = vadd.f32 %v2348_v39, %v1781_v58 }
 0x643   : > { %v2965_v13 = vmul.f32 1.442695, %v2951_v5  ;;  %v2959_v20 = vmul.f32 1.442695, %v2948_v6  ;;  %v2939_v22 = vadd.f32 %v2929_v40, %v2352_v1 }
 0x644   : > { %v2942_v32 = vadd.f32 %v2932_v11, %v2355_v12  ;;  %v2917_v30 = vpop.xlane.xlu0 %2916  ;;  %v2908_v33 = vpop.xlane.xlu1 %2907  ;;  %v2359_v63 = vadd.f32 %v2349_v37, %v1782_v60 }
 0x645   : > { %3469 = vpow2.f32 %v2965_v13  ;;  %v2949_v49 = vsub.f32 0.0, %v2939_v22  ;;  %v2933_v17 = vmul.f32 0.00390625, %v2917_v30  ;;  %v2930_v36 = vmul.f32 0.00390625, %v2908_v33 }
 0x646   : > { %3471 = vpow2.f32 %v2959_v20  ;;  %v2952_v19 = vsub.f32 0.0, %v2942_v32 }
 0x647   : > { %v2943_v47 = vadd.f32 %v2933_v17, %v2356_v31  ;;  %v2961_v52 = vmul.f32 1.442695, %v2949_v49  ;;  %v2940_v28 = vadd.f32 %v2930_v36, %v2353_v23 }
 0x648   : > { %v2967_v53 = vmul.f32 1.442695, %v2952_v19  ;;  %v2923_v55 = vpop.xlane.xlu0 %2922  ;;  %v2920_v56 = vpop.xlane.xlu1 %2919 }
 0x649   : > { %v2953_v59 = vsub.f32 0.0, %v2943_v47  ;;  %v2935_v29 = vmul.f32 0.00390625, %v2923_v55  ;;  %v2934_v7 = vmul.f32 0.00390625, %v2920_v56  ;;  %v2950_v61 = vsub.f32 0.0, %v2940_v28 }
 0x64a   : > { %3473 = vpow2.f32 %v2967_v53 }
 0x64b   : > { %3475 = vpow2.f32 %v2961_v52  ;;  %v2969_v54 = vmul.f32 1.442695, %v2953_v59  ;;  %v2944_v46 = vadd.f32 %v2934_v7, %v2357_v10  ;;  %v2945_v2 = vadd.f32 %v2935_v29, %v2358_v42  ;;  %v2998_v42 = vld [vmem:[%s4283_s22] sm:$0xff] }
 0x64c   : > { %v2926_v62 = vpop.xlane.xlu1 %2925  ;;  %v2963_v16 = vmul.f32 1.442695, %v2950_v61  ;;  %v3008_v61 = vld [vmem:[%s3901_s1 + $0x8] sm:$0xff] }
 0x64d   : > { %v2936_v48 = vmul.f32 0.00390625, %v2926_v62  ;;  %v2954_v3 = vsub.f32 0.0, %v2944_v46  ;;  %3477 = vpow2.f32 %v2969_v54  ;;  %v2955_v40 = vsub.f32 0.0, %v2945_v2  ;;  %v3007_v54 = vld [vmem:[%s3901_s1] sm:$0xff]  ;;  %v2999_v62 = vld [vmem:[%s4283_s22 + $0x8] sm:$0xff]  ;;  %s5801_s1 = sshll.u32 %s5803_s28, 6 }
 0x64e   : > { %v3468_v1 = vpop.eup %3467  ;;  %s5732_s21 = scalar_lea.vmem %s5784_s17, %s5801_s1 }
 0x64f   : > { %v2977_v38 = vadd.f32 1.0, %v3468_v1  ;;  %v2946_v4 = vadd.f32 %v2936_v48, %v2359_v63  ;;  %v2971_v12 = vmul.f32 1.442695, %v2954_v3  ;;  %v2973_v20 = vmul.f32 1.442695, %v2955_v40  ;;  %v3050_v1 = vld [vmem:[%s5275_s3 + $0x10] sm:$0xff] }
 0x650   : > { %v3051_v3 = vld [vmem:[%s5275_s3 + $0x18] sm:$0xff] }
 0x651   : > { %v2956_v5 = vsub.f32 0.0, %v2946_v4  ;;  %3479 = vrcp.f32 %v2977_v38  ;;  %v3077_v4 = vld [vmem:[%s4663_s20 + $0x10] sm:$0xff] }
 0x652   : > { %v3470_v6 = vpop.eup %3469  ;;  %3481 = vpow2.f32 %v2963_v16  ;;  %v3078_v16 = vld [vmem:[%s4663_s20 + $0x18] sm:$0xff] }
 0x653   : > { %v3472_v8 = vpop.eup %3471  ;;  %v2981_v35 = vadd.f32 1.0, %v3470_v6  ;;  %v2975_v11 = vmul.f32 1.442695, %v2956_v5 }
 0x654   : > { %v2978_v21 = vadd.f32 1.0, %v3472_v8 }
 0x655   : > { %3483 = vpow2.f32 %v2975_v11  ;;  %v3016_v11 = vld [vmem:[%s4772_s26 + $0x8] sm:$0xff] }
 0x656   : > { %3485 = vrcp.f32 %v2981_v35 }
 0x657   : > { %v3474_v13 = vpop.eup %3473  ;;  %3487 = vpow2.f32 %v2971_v12  ;;  %v3015_v12 = vld [vmem:[%s4772_s26] sm:$0xff] }
 0x658   : > { %v2982_v22 = vadd.f32 1.0, %v3474_v13  ;;  %3489 = vrcp.f32 %v2978_v21  ;;  %v3476_v41 = vpop.eup %3475  ;;  %v3033_v21 = vld [vmem:[%s4195_s29] sm:$0xff]  ;;  %v3034_v13 = vld [vmem:[%s4195_s29 + $0x8] sm:$0xff] }
 0x659   : > { %3491 = vpow2.f32 %v2973_v20  ;;  %v2979_v50 = vadd.f32 1.0, %v3476_v41 }
 0x65a   : > { %3493 = vrcp.f32 %v2982_v22  ;;  %v3478_v25 = vpop.eup %3477 }
 0x65b   : > { %v2983_v32 = vadd.f32 1.0, %v3478_v25  ;;  %3495 = vrcp.f32 %v2979_v50 }
 0x65d   : > { %3497 = vrcp.f32 %v2983_v32  ;;  %v3053_v32 = vld [vmem:[%s5275_s3 + $0x28] sm:$0xff] }
 0x65e   : > { %v3480_v31 = vpop.eup %3479 }
 0x65f   : > { %v3482_v30 = vpop.eup %3481  ;;  %v2997_v33 = vadd.f32 1.0, %v3480_v31  ;;  %v3052_v31 = vld [vmem:[%s5275_s3 + $0x20] sm:$0xff] }
 0x660   : > { %v2980_v23 = vadd.f32 1.0, %v3482_v30  ;;  %v3079_v30 = vld [vmem:[%s4663_s20 + $0x20] sm:$0xff] }
 0x661   : > { %3002 = vperm.xlu0 %3433, %v2997_v33   ;;  %v3080_v33 = vld [vmem:[%s4663_s20 + $0x28] sm:$0xff] }
 0x662   : > { %v3484_v49 = vpop.eup %3483 }
 0x663   : > { %v3486_v17 = vpop.eup %3485  ;;  %v2986_v36 = vadd.f32 1.0, %v3484_v49 }
 0x664   : > { %v3488_v34 = vpop.eup %3487  ;;  %v3046_v43 = vadd.f32 1.0, %v3486_v17 }
 0x665   : > { %v3490_v19 = vpop.eup %3489  ;;  %3499 = vrcp.f32 %v2986_v36  ;;  %v2984_v27 = vadd.f32 1.0, %v3488_v34 }
 0x666   : > { %3061 = vperm.xlu1 %3434, %v3046_v43   ;;  %v3492_v9 = vpop.eup %3491  ;;  %v3013_v39 = vadd.f32 1.0, %v3490_v19  ;;  %3501 = vrcp.f32 %v2980_v23  ;;  %v3017_v43 = vld [vmem:[%s4772_s26 + $0x10] sm:$0xff]  ;;  %v3018_v19 = vld [vmem:[%s4772_s26 + $0x18] sm:$0xff] }
 0x667   : > { %v3494_v47 = vpop.eup %3493  ;;  %v2985_v51 = vadd.f32 1.0, %v3492_v9  ;;  %3503 = vrcp.f32 %v2984_v27  ;;  %v3035_v9 = vld [vmem:[%s4195_s29 + $0x10] sm:$0xff]  ;;  %v3036_v27 = vld [vmem:[%s4195_s29 + $0x18] sm:$0xff] }
 0x668   : > { %v3047_v52 = vadd.f32 1.0, %v3494_v47  ;;  %v3496_v53 = vpop.eup %3495 }
 0x669   : > { %v3014_v28 = vadd.f32 1.0, %v3496_v53  ;;  %3505 = vrcp.f32 %v2985_v51 }
 0x66a   : > { %3021 = vperm.xlu1 %3434, %v3013_v39   ;;  %v3498_v55 = vpop.eup %3497 }
 0x66b   : > { %v3093_v58 = vadd.f32 1.0, %v3498_v55 }
 0x66e   : > { %3066 = vperm.xlu1 %3434, %v3047_v52  }
 0x672   : > { %v3500_v56 = vpop.eup %3499  ;;  %3026 = vperm.xlu1 %3434, %v3014_v28  }
 0x673   : > { %v3096_v57 = vadd.f32 1.0, %v3500_v56  ;;  %v3502_v37 = vpop.eup %3501 }
 0x674   : > { %v3045_v59 = vadd.f32 1.0, %v3502_v37  ;;  %v3504_v10 = vpop.eup %3503 }
 0x675   : > { %3122 = vperm.xlu0 %3433, %v3096_v57   ;;  %v3094_v29 = vadd.f32 1.0, %v3504_v10 }
 0x676   : > { %3107 = vperm.xlu1 %3434, %v3093_v58   ;;  %v3506_v7 = vpop.eup %3505 }
 0x677   : > { %v3095_v60 = vadd.f32 1.0, %v3506_v7 }
 0x67a   : > { %3056 = vperm.xlu1 %3434, %v3045_v59   ;;  %v3513_v59 = vld [vmem:[%s5152_s19 + $0x38] sm:$0xff] }
 0x67e   : > { %3112 = vperm.xlu1 %3434, %v3094_v29   ;;  %v3514_v29 = vld [vmem:[%s5152_s19] sm:$0xff] }
 0x682   : > { %3117 = vperm.xlu1 %3434, %v3095_v60   ;;  %v3515_v60 = vld [vmem:[%s5152_s19 + $0x8] sm:$0xff] }
 0x6dc   : > { %v3003_v46 = vpop.permute.xlu0 %3002 }
 0x6dd   : > { %v3005_v63 = vmul.f32 %v3003_v46, %v2998_v42  ;;  %v3006_v48 = vmul.f32 %v3003_v46, %v2999_v62 }
 0x6df   : > { %v3009_v2 = vsub.f32 %v3005_v63, %v3007_v54  ;;  %v3010_v38 = vsub.f32 %v3006_v48, %v3008_v61  ;;  %v3048_v54 = vld [vmem:[%s5275_s3] sm:$0xff]  ;;  %v3049_v61 = vld [vmem:[%s5275_s3 + $0x8] sm:$0xff] }
 0x6e1   : > { %v3062_v5 = vpop.permute.xlu1 %3061  ;;  %3011 = vst [vmem:[%s4283_s22] sm:$0xff] %v3009_v2  ;;  %3012 = vst [vmem:[%s4283_s22 + $0x8] sm:$0xff] %v3010_v38 }
 0x6e2   : > { %v3071_v6 = vmul.f32 %v3062_v5, %v3050_v1  ;;  %v3072_v40 = vmul.f32 %v3062_v5, %v3051_v3  ;;  %v3517_v5 = vld [vmem:[%s5152_s19 + $0x18] sm:$0xff] }
 0x6e4   : > { %v3083_v8 = vsub.f32 %v3071_v6, %v3077_v4  ;;  %v3084_v35 = vsub.f32 %v3072_v40, %v3078_v16  ;;  %v3516_v4 = vld [vmem:[%s5152_s19 + $0x10] sm:$0xff] }
 0x6e5   : > { %v3022_v20 = vpop.permute.xlu1 %3021 }
 0x6e6   : > { %3089 = vst [vmem:[%s5275_s3 + $0x10] sm:$0xff] %v3083_v8  ;;  %3090 = vst [vmem:[%s5275_s3 + $0x18] sm:$0xff] %v3084_v35  ;;  %v3029_v22 = vmul.f32 %v3022_v20, %v3015_v12  ;;  %v3030_v41 = vmul.f32 %v3022_v20, %v3016_v11  ;;  %v3518_v12 = vld [vmem:[%s5152_s19 + $0x20] sm:$0xff] }
 0x6e8   : > { %v3037_v50 = vsub.f32 %v3029_v22, %v3033_v21  ;;  %v3038_v25 = vsub.f32 %v3030_v41, %v3034_v13  ;;  %v3519_v21 = vld [vmem:[%s5152_s19 + $0x28] sm:$0xff] }
 0x6e9   : > { %v3067_v49 = vpop.permute.xlu1 %3066 }
 0x6ea   : > { %3041 = vst [vmem:[%s4772_s26] sm:$0xff] %v3037_v50  ;;  %3042 = vst [vmem:[%s4772_s26 + $0x8] sm:$0xff] %v3038_v25  ;;  %v3073_v17 = vmul.f32 %v3067_v49, %v3052_v31  ;;  %v3074_v36 = vmul.f32 %v3067_v49, %v3053_v32 }
 0x6ec   : > { %v3085_v34 = vsub.f32 %v3073_v17, %v3079_v30  ;;  %v3086_v23 = vsub.f32 %v3074_v36, %v3080_v33 }
 0x6ed   : > { %v3027_v39 = vpop.permute.xlu1 %3026 }
 0x6ee   : > { %3091 = vst [vmem:[%s5275_s3 + $0x20] sm:$0xff] %v3085_v34  ;;  %3092 = vst [vmem:[%s5275_s3 + $0x28] sm:$0xff] %v3086_v23  ;;  %v3031_v47 = vmul.f32 %v3027_v39, %v3017_v43  ;;  %v3032_v51 = vmul.f32 %v3027_v39, %v3018_v19 }
 0x6f0   : > { %v3039_v52 = vsub.f32 %v3031_v47, %v3035_v9  ;;  %v3040_v53 = vsub.f32 %v3032_v51, %v3036_v27  ;;  %v3123_v28 = vpop.permute.xlu0 %3122 }
 0x6f1   : > { %v3131_v55 = vmul.f32 %v3123_v28, %v5550_v24  ;;  %v3132_v56 = vmul.f32 %v3123_v28, %v5547_v0  ;;  %v3108_v57 = vpop.permute.xlu1 %3107  ;;  %v3512_v0 = vld [vmem:[%s5152_s19 + $0x30] sm:$0xff] }
 0x6f2   : > { %3043 = vst [vmem:[%s4772_s26 + $0x10] sm:$0xff] %v3039_v52  ;;  %3044 = vst [vmem:[%s4772_s26 + $0x18] sm:$0xff] %v3040_v53  ;;  %v3125_v58 = vmul.f32 %v3108_v57, %v5580_v14  ;;  %v3126_v24 = vmul.f32 %v3108_v57, %v5575_v26  ;;  %v3075_v14 = vld [vmem:[%s4663_s20] sm:$0xff]  ;;  %v3076_v26 = vld [vmem:[%s4663_s20 + $0x8] sm:$0xff] }
 0x6f3   : > { %v3147_v37 = vsub.f32 %v3131_v55, %v3512_v0  ;;  %v3148_v10 = vsub.f32 %v3132_v56, %v3513_v59 }
 0x6f4   : > { %v3141_v7 = vsub.f32 %v3125_v58, %v3514_v29  ;;  %v3142_v42 = vsub.f32 %v3126_v24, %v3515_v60 }
 0x6f5   : > { %3155 = vst [vmem:[%s5732_s21 + $0x30] sm:$0xff] %v3147_v37  ;;  %3156 = vst [vmem:[%s5732_s21 + $0x38] sm:$0xff] %v3148_v10  ;;  %v3057_v46 = vpop.permute.xlu1 %3056 }
 0x6f6   : > { %3149 = vst [vmem:[%s5732_s21] sm:$0xff] %v3141_v7  ;;  %3150 = vst [vmem:[%s5732_s21 + $0x8] sm:$0xff] %v3142_v42  ;;  %v3069_v62 = vmul.f32 %v3057_v46, %v3048_v54  ;;  %v3070_v63 = vmul.f32 %v3057_v46, %v3049_v61 }
 0x6f8   : > { %v3081_v48 = vsub.f32 %v3069_v62, %v3075_v14  ;;  %v3082_v1 = vsub.f32 %v3070_v63, %v3076_v26 }
 0x6f9   : > { %v3113_v2 = vpop.permute.xlu1 %3112 }
 0x6fa   : > { %3087 = vst [vmem:[%s5275_s3] sm:$0xff] %v3081_v48  ;;  %3088 = vst [vmem:[%s5275_s3 + $0x8] sm:$0xff] %v3082_v1  ;;  %v3127_v38 = vmul.f32 %v3113_v2, %v5570_v18  ;;  %v3128_v3 = vmul.f32 %v3113_v2, %v5565_v15 }
 0x6fc   : > { %v3143_v16 = vsub.f32 %v3127_v38, %v3516_v4  ;;  %v3144_v6 = vsub.f32 %v3128_v3, %v3517_v5 }
 0x6fd   : > { %v3118_v40 = vpop.permute.xlu1 %3117 }
 0x6fe   : > { %3151 = vst [vmem:[%s5732_s21 + $0x10] sm:$0xff] %v3143_v16  ;;  %3152 = vst [vmem:[%s5732_s21 + $0x18] sm:$0xff] %v3144_v6  ;;  %v3129_v8 = vmul.f32 %v3118_v40, %v5560_v45  ;;  %v3130_v35 = vmul.f32 %v3118_v40, %v5555_v44 }
 0x700   : > { %v3145_v11 = vsub.f32 %v3129_v8, %v3518_v12  ;;  %v3146_v13 = vsub.f32 %v3130_v35, %v3519_v21 }
 0x702   : > { %3153 = vst [vmem:[%s5732_s21 + $0x20] sm:$0xff] %v3145_v11  ;;  %3154 = vst [vmem:[%s5732_s21 + $0x28] sm:$0xff] %v3146_v13 }
 0x703 PF: > { %s29_s27 = sadd.s32 1, %s3526_s27  }
 0x704   : > { %p26_p4 = scmp.ge.s32.totalorder %s29_s27, 4  }
 0x706   :  { %28 = sbr.rel (!%p26_p4) target bundleno = 13 (0xd), region = 151 }

</bundles_post_ra>
